<compile_context>
chip_gen: v6e
topology: v6e:2x2x1
jax: 0.10.0
libtpu: 0.0.40
codegen_flags: <defaults>
</compile_context>

<pallas_src>
import functools
import math

import jax
import jax.numpy as jnp
from jax.experimental import pallas as pl
from jax.experimental.pallas import tpu as pltpu

# ---------------- small config (consistent with VisionConfig semantics) ----------------
HIDDEN = 32
NUM_LAYERS = 2
NUM_HEADS = 4
HEAD_DIM = HIDDEN // NUM_HEADS
INTERMEDIATE = 64
NUM_CHANNELS = 3
IMAGE_SIZE = 32
PATCH_SIZE = 8
NUM_PATCHES = (IMAGE_SIZE // PATCH_SIZE) ** 2  # 16
LN_EPS = 1e-6
BATCH = 2
PATCH_DIM = NUM_CHANNELS * PATCH_SIZE * PATCH_SIZE  # 192
SLAB_W = 3 * HIDDEN                                 # widest packed weight row (wqkv) = 96


# ---------------- math helpers ----------------------------------------------------------
def _layer_norm_1pass(x, w, b, eps):
    # one-pass LN: E[x^2] - E[x]^2 (two independent lane-reductions instead of serial)
    mu = jnp.mean(x, axis=-1, keepdims=True)
    ms = jnp.mean(x * x, axis=-1, keepdims=True)
    inv = jax.lax.rsqrt(ms - mu * mu + eps)
    return (x - mu) * inv * w + b


def _layer_norm_ref(x, w, b, eps):
    mu = jnp.mean(x, axis=-1, keepdims=True)
    xc = x - mu
    var = jnp.mean(xc * xc, axis=-1, keepdims=True)
    return xc * jax.lax.rsqrt(var + eps) * w + b


def _gelu_tanh(x):
    # matches F.gelu(approximate='tanh')
    c = jnp.sqrt(2.0 / jnp.pi).astype(x.dtype)
    return 0.5 * x * (1.0 + jnp.tanh(c * (x + 0.044715 * x * x * x)))


def _softmax_last(x):
    x = x - jnp.max(x, axis=-1, keepdims=True)
    e = jnp.exp(x)
    return e / jnp.sum(e, axis=-1, keepdims=True)


# ---------------- fused Pallas kernel ----------------------------------------------------
def vision_fused_kernel(
    patches_ref,   # [B*S, K]   bf16
    posb_ref,      # [B*S, D]   f32   (pos table tiled over batch + conv bias, pre-folded)
    w_ref,         # [512, 96]  bf16  packed matmul weights (patch_w | per-layer wqkv/wo/w1/w2)
    f_ref,         # [18, 96]   f32   packed LN weights / biases (+ post-LN at the end)
    o_ref,         # [B*S, D]   f32
    *, num_layers, num_heads, head_dim, batch, seq, hidden, inter, eps,
):
    bf16 = jnp.bfloat16
    D = hidden
    hd = head_dim
    n = batch * seq
    K = patches_ref.shape[1]

    # --- patch embedding (Conv2d k=s=patch as a matmul) + (pos + conv bias) --------------
    x = jnp.dot(patches_ref[...], w_ref[0:K, 0:D],
                preferred_element_type=jnp.float32) + posb_ref[...]          # [N, D] f32

    lrows = 3 * D + inter  # rows per layer inside the weight slab
    for l in range(num_layers):                      # static unroll (2 layers)
        wb = K + l * lrows
        fb = l * 8
        ln1w = f_ref[fb + 0:fb + 1, 0:D]
        ln1b = f_ref[fb + 1:fb + 2, 0:D]
        bqkv = f_ref[fb + 2:fb + 3, 0:3 * D]
        bo   = f_ref[fb + 3:fb + 4, 0:D]
        ln2w = f_ref[fb + 4:fb + 5, 0:D]
        ln2b = f_ref[fb + 5:fb + 6, 0:D]
        b1   = f_ref[fb + 6:fb + 7, 0:inter]
        b2   = f_ref[fb + 7:fb + 8, 0:D]

        wqkv = w_ref[wb:wb + D, 0:3 * D]                       # [D, 3D] bf16
        wo   = w_ref[wb + D:wb + 2 * D, 0:D]                   # [D, D]
        w1   = w_ref[wb + 2 * D:wb + 3 * D, 0:inter]           # [D, I]
        w2   = w_ref[wb + 3 * D:wb + 3 * D + inter, 0:D]       # [I, D]

        # ---- pre-LN multi-head attention -------------------------------------------------
        h = _layer_norm_1pass(x, ln1w, ln1b, eps)                            # [N, D] f32
        # single fused QKV matmul (attention scale pre-folded into q columns/bias)
        qkv = jnp.dot(h.astype(bf16), wqkv,
                      preferred_element_type=jnp.float32) + bqkv             # [N, 3D] f32
        qkv_b = qkv.reshape(batch, seq, 3 * D).astype(bf16)                  # [B, S, 3D]

        o_heads = []
        for hh in range(num_heads):                  # static unroll; per-(b,h) matmuls are
            q3 = qkv_b[:, :, hh * hd:(hh + 1) * hd]              # inherent at this size
            k3 = qkv_b[:, :, D + hh * hd:D + (hh + 1) * hd]
            v3 = qkv_b[:, :, 2 * D + hh * hd:2 * D + (hh + 1) * hd]
            s = jnp.einsum('bqd,bkd->bqk', q3, k3,
                           preferred_element_type=jnp.float32)               # [B, S, S] f32
            s = s - jnp.max(s, axis=-1, keepdims=True)
            p = jnp.exp(s)
            p = p * pl.reciprocal(jnp.sum(p, axis=-1, keepdims=True), approx=True)
            o3 = jnp.einsum('bqk,bkd->bqd', p.astype(bf16), v3,
                            preferred_element_type=jnp.float32)              # [B, S, hd]
            o_heads.append(o3.reshape(n, hd))
        o_all = jnp.concatenate(o_heads, axis=-1)                            # [N, D] f32

        # single output projection over the full hidden dim (K = D = 32)
        attn = jnp.dot(o_all.astype(bf16), wo,
                       preferred_element_type=jnp.float32) + bo              # [N, D]
        x = x + attn

        # ---- pre-LN MLP -------------------------------------------------------------------
        h2 = _layer_norm_1pass(x, ln2w, ln2b, eps)
        m = jnp.dot(h2.astype(bf16), w1, preferred_element_type=jnp.float32) + b1
        m = _gelu_tanh(m)
        m = jnp.dot(m.astype(bf16), w2, preferred_element_type=jnp.float32) + b2
        x = x + m

    pb = num_layers * 8
    o_ref[...] = _layer_norm_1pass(x, f_ref[pb:pb + 1, 0:D], f_ref[pb + 1:pb + 2, 0:D], eps)


# ---------------- glue: NCHW -> patch vectors, params, packing, forward ------------------
def extract_patches(pixel_values):
    # [B, C, H, W] -> [B, P, C*ps*ps] matching Conv2d(kernel=stride=ps, padding='valid')
    B, C, H, W = pixel_values.shape
    ps = PATCH_SIZE
    x = pixel_values.reshape(B, C, H // ps, ps, W // ps, ps)
    x = x.transpose(0, 2, 4, 1, 3, 5)  # [B, Hp, Wp, C, ps, ps]
    return x.reshape(B, (H // ps) * (W // ps), C * ps * ps)


def init_params(key):
    keys = jax.random.split(key, 64)
    it = iter(keys)

    def nrm(shape, scale=0.02):
        return (scale * jax.random.normal(next(it), shape)).astype(jnp.float32)

    params = {
        "patch_w": nrm((PATCH_DIM, HIDDEN)),   # conv weight pre-flattened as [K, D]
        "patch_b": nrm((1, HIDDEN)),
        "pos": nrm((NUM_PATCHES, HIDDEN)),     # nn.Embedding(num_patches, D) table
        "postw": jnp.ones((1, HIDDEN), jnp.float32),
        "postb": jnp.zeros((1, HIDDEN), jnp.float32),
        "layers": [],
    }
    for _ in range(NUM_LAYERS):
        params["layers"].append({
            "ln1w": jnp.ones((1, HIDDEN), jnp.float32),
            "ln1b": jnp.zeros((1, HIDDEN), jnp.float32),
            "wq": nrm((HIDDEN, HIDDEN)), "bq": nrm((1, HIDDEN)),
            "wk": nrm((HIDDEN, HIDDEN)), "bk": nrm((1, HIDDEN)),
            "wv": nrm((HIDDEN, HIDDEN)), "bv": nrm((1, HIDDEN)),
            "wo": nrm((HIDDEN, HIDDEN)), "bo": nrm((1, HIDDEN)),
            "ln2w": jnp.ones((1, HIDDEN), jnp.float32),
            "ln2b": jnp.zeros((1, HIDDEN), jnp.float32),
            "w1": nrm((HIDDEN, INTERMEDIATE)), "b1": nrm((1, INTERMEDIATE)),
            "w2": nrm((INTERMEDIATE, HIDDEN)), "b2": nrm((1, HIDDEN)),
        })
    return params


def prepare_fused_params(params, batch):
    """Pack everything into 4 arrays (done once, wrapper-side, free):
       - wslab  [K + L*(3D+I), 3D] bf16 : patch_w, then per-layer [wqkv | wo | w1 | w2]
       - fslab  [8L + 2, 3D]      f32  : per-layer LN w/b + biases, then post-LN w/b
       - posb   [B*S, D]          f32  : pos table tiled over batch + conv bias
       The attention scale (head_dim**-0.5) is folded into the q columns / q bias."""
    bf16 = jnp.bfloat16
    D, I = HIDDEN, INTERMEDIATE
    scale = HEAD_DIM ** -0.5

    def wrows(w):  # pad lane dim to slab width
        return jnp.pad(w, ((0, 0), (0, SLAB_W - w.shape[1])))

    def frow(v):
        v = v.reshape(1, -1)
        return jnp.pad(v, ((0, 0), (0, SLAB_W - v.shape[1])))

    wparts = [wrows(params["patch_w"])]
    fparts = []
    for lp in params["layers"]:
        wqkv = jnp.concatenate([lp["wq"] * scale, lp["wk"], lp["wv"]], axis=1)   # [D, 3D]
        bqkv = jnp.concatenate([lp["bq"] * scale, lp["bk"], lp["bv"]], axis=1)   # [1, 3D]
        wparts += [wrows(wqkv), wrows(lp["wo"]), wrows(lp["w1"]), wrows(lp["w2"])]
        fparts += [frow(lp["ln1w"]), frow(lp["ln1b"]), frow(bqkv), frow(lp["bo"]),
                   frow(lp["ln2w"]), frow(lp["ln2b"]), frow(lp["b1"]), frow(lp["b2"])]
    fparts += [frow(params["postw"]), frow(params["postb"])]

    posb = jnp.tile(params["pos"], (batch, 1)) + params["patch_b"]               # [B*S, D]
    return {
        "wslab": jnp.concatenate(wparts, axis=0).astype(bf16),
        "fslab": jnp.concatenate(fparts, axis=0).astype(jnp.float32),
        "posb": posb.astype(jnp.float32),
    }


def _cost_estimate(batch, inputs):
    n = batch * NUM_PATCHES
    flops = 2 * n * PATCH_DIM * HIDDEN
    flops += NUM_LAYERS * (
        2 * n * HIDDEN * 3 * HIDDEN                                           # fused qkv
        + 2 * (2 * batch * NUM_HEADS * NUM_PATCHES * NUM_PATCHES * HEAD_DIM)  # scores + pv
        + 2 * n * HIDDEN * HIDDEN                                             # out proj
        + 2 * (2 * n * HIDDEN * INTERMEDIATE)                                 # mlp
    )
    transc = NUM_LAYERS * (batch * NUM_HEADS * NUM_PATCHES * NUM_PATCHES      # exp
                           + n * INTERMEDIATE) + (6 * NUM_LAYERS + 2) * n     # tanh + rsqrt
    bytes_accessed = sum(math.prod(a.shape) * a.dtype.itemsize for a in inputs)
    bytes_accessed += n * HIDDEN * 4  # output
    return pl.CostEstimate(flops=int(flops), transcendentals=int(transc),
                           bytes_accessed=int(bytes_accessed))


def _vision_model_forward(pixel_values, fused):
    B = pixel_values.shape[0]
    patches = extract_patches(pixel_values).reshape(B * NUM_PATCHES, -1).astype(jnp.bfloat16)
    inputs = (patches, fused["posb"], fused["wslab"], fused["fslab"])

    kern = functools.partial(
        vision_fused_kernel,
        num_layers=NUM_LAYERS, num_heads=NUM_HEADS, head_dim=HEAD_DIM,
        batch=B, seq=NUM_PATCHES, hidden=HIDDEN, inter=INTERMEDIATE, eps=LN_EPS,
    )
    vmem = pltpu.MemorySpace.VMEM
    out = pl.pallas_call(
        kern,
        out_shape=jax.ShapeDtypeStruct((B * NUM_PATCHES, HIDDEN), jnp.float32),
        in_specs=[pl.BlockSpec(memory_space=vmem)] * len(inputs),
        out_specs=pl.BlockSpec(memory_space=vmem),
        cost_estimate=_cost_estimate(B, inputs),
    )(*inputs)
    return out.reshape(B, NUM_PATCHES, HIDDEN)


vision_model_forward = jax.jit(_vision_model_forward)


# ---------------- pure-JAX f32 reference (sanity check only) -----------------------------
def reference_forward(pixel_values, params):
    B = pixel_values.shape[0]
    S, D, H, hd = NUM_PATCHES, HIDDEN, NUM_HEADS, HEAD_DIM
    patches = extract_patches(pixel_values)
    x = patches @ params["patch_w"] + params["patch_b"] + params["pos"][None]
    for lp in params["layers"]:
        r = x
        h = _layer_norm_ref(x, lp["ln1w"], lp["ln1b"], LN_EPS)
        q = (h @ lp["wq"] + lp["bq"]).reshape(B, S, H, hd).transpose(0, 2, 1, 3)
        k = (h @ lp["wk"] + lp["bk"]).reshape(B, S, H, hd).transpose(0, 2, 1, 3)
        v = (h @ lp["wv"] + lp["bv"]).reshape(B, S, H, hd).transpose(0, 2, 1, 3)
        s = jnp.einsum("bhqd,bhkd->bhqk", q, k) * (hd ** -0.5)
        p = _softmax_last(s)
        o = jnp.einsum("bhqk,bhkd->bhqd", p, v).transpose(0, 2, 1, 3).reshape(B, S, D)
        x = r + (o @ lp["wo"] + lp["bo"])
        r = x
        h2 = _layer_norm_ref(x, lp["ln2w"], lp["ln2b"], LN_EPS)
        x = r + (_gelu_tanh(h2 @ lp["w1"] + lp["b1"]) @ lp["w2"] + lp["b2"])
    return _layer_norm_ref(x, params["postw"], params["postb"], LN_EPS)


if __name__ == "__main__":
    key = jax.random.PRNGKey(0)
    pkey, xkey = jax.random.split(key)
    params = init_params(pkey)
    pixel_values = jax.random.normal(
        xkey, (BATCH, NUM_CHANNELS, IMAGE_SIZE, IMAGE_SIZE), dtype=jnp.float32
    )

    fused = prepare_fused_params(params, BATCH)
    out = vision_model_forward(pixel_values, fused)
    out = jax.block_until_ready(out)

    assert out.shape == (BATCH, NUM_PATCHES, HIDDEN), out.shape
    ref = reference_forward(pixel_values, params)
    max_diff = float(jnp.max(jnp.abs(out - ref)))
    # MXU operands are bf16 (f32 accumulation) and softmax uses an approximate reciprocal,
    # so compare against the all-f32 reference with a bf16-aware tolerance.
    assert max_diff < 3e-2, f"max diff vs f32 reference too large: {max_diff}"

    print("KERNEL_OK")
</pallas_src>

<mosaic_0001>
module attributes {stable_mosaic.version = 11 : i64} {
  func.func @vision_fused_kernel(%arg0: memref<32x192xbf16, #tpu.memory_space<vmem>>, %arg1: memref<32x32xf32, #tpu.memory_space<vmem>>, %arg2: memref<512x96xbf16, #tpu.memory_space<vmem>>, %arg3: memref<18x96xf32, #tpu.memory_space<vmem>>, %arg4: memref<32x32xf32, #tpu.memory_space<vmem>>) attributes {dimension_semantics = [], scalar_prefetch = 0 : i64, scratch_operands = 0 : i64, tpu.core_type = #tpu.core_type<tc>} {
    %c0 = arith.constant 0 : index
    %c0_0 = arith.constant 0 : index
    %0 = vector.load %arg0[%c0, %c0_0] : memref<32x192xbf16, #tpu.memory_space<vmem>>, vector<32x192xbf16>
    %c0_1 = arith.constant 0 : index
    %c0_2 = arith.constant 0 : index
    %1 = vector.load %arg2[%c0_1, %c0_2] : memref<512x96xbf16, #tpu.memory_space<vmem>>, vector<192x32xbf16>
    %cst = arith.constant dense<0.000000e+00> : vector<32x32xf32>
    %2 = tpu.matmul %0, %1, %cst {dimension_numbers = #tpu.dot_dimension_numbers<[1], [0], [0], [1], [0, 0, 1, 1], [], []>} : vector<32x192xbf16>, vector<192x32xbf16>, vector<32x32xf32> -> vector<32x32xf32>
    %c0_3 = arith.constant 0 : index
    %c0_4 = arith.constant 0 : index
    %3 = vector.load %arg1[%c0_3, %c0_4] : memref<32x32xf32, #tpu.memory_space<vmem>>, vector<32x32xf32>
    %4 = arith.addf %2, %3 : vector<32x32xf32>
    %c0_5 = arith.constant 0 : index
    %c0_6 = arith.constant 0 : index
    %5 = vector.load %arg3[%c0_5, %c0_6] : memref<18x96xf32, #tpu.memory_space<vmem>>, vector<1x32xf32>
    %c1 = arith.constant 1 : index
    %c0_7 = arith.constant 0 : index
    %6 = vector.load %arg3[%c1, %c0_7] : memref<18x96xf32, #tpu.memory_space<vmem>>, vector<1x32xf32>
    %c2 = arith.constant 2 : index
    %c0_8 = arith.constant 0 : index
    %7 = vector.load %arg3[%c2, %c0_8] : memref<18x96xf32, #tpu.memory_space<vmem>>, vector<1x96xf32>
    %c3 = arith.constant 3 : index
    %c0_9 = arith.constant 0 : index
    %8 = vector.load %arg3[%c3, %c0_9] : memref<18x96xf32, #tpu.memory_space<vmem>>, vector<1x32xf32>
    %c4 = arith.constant 4 : index
    %c0_10 = arith.constant 0 : index
    %9 = vector.load %arg3[%c4, %c0_10] : memref<18x96xf32, #tpu.memory_space<vmem>>, vector<1x32xf32>
    %c5 = arith.constant 5 : index
    %c0_11 = arith.constant 0 : index
    %10 = vector.load %arg3[%c5, %c0_11] : memref<18x96xf32, #tpu.memory_space<vmem>>, vector<1x32xf32>
    %c6 = arith.constant 6 : index
    %c0_12 = arith.constant 0 : index
    %11 = vector.load %arg3[%c6, %c0_12] : memref<18x96xf32, #tpu.memory_space<vmem>>, vector<1x64xf32>
    %c7 = arith.constant 7 : index
    %c0_13 = arith.constant 0 : index
    %12 = vector.load %arg3[%c7, %c0_13] : memref<18x96xf32, #tpu.memory_space<vmem>>, vector<1x32xf32>
    %c192 = arith.constant 192 : index
    %c0_14 = arith.constant 0 : index
    %13 = vector.load %arg2[%c192, %c0_14] : memref<512x96xbf16, #tpu.memory_space<vmem>>, vector<32x96xbf16>
    %c224 = arith.constant 224 : index
    %c0_15 = arith.constant 0 : index
    %14 = vector.load %arg2[%c224, %c0_15] : memref<512x96xbf16, #tpu.memory_space<vmem>>, vector<32x32xbf16>
    %c256 = arith.constant 256 : index
    %c0_16 = arith.constant 0 : index
    %15 = vector.load %arg2[%c256, %c0_16] : memref<512x96xbf16, #tpu.memory_space<vmem>>, vector<32x64xbf16>
    %c288 = arith.constant 288 : index
    %c0_17 = arith.constant 0 : index
    %16 = vector.load %arg2[%c288, %c0_17] : memref<512x96xbf16, #tpu.memory_space<vmem>>, vector<64x32xbf16>
    %cst_18 = arith.constant dense<0.000000e+00> : vector<32xf32>
    %17 = vector.multi_reduction <add>, %4, %cst_18 [1] : vector<32x32xf32> to vector<32xf32>
    %18 = vector.shape_cast %17 : vector<32xf32> to vector<32x1xf32>
    %cst_19 = arith.constant 3.200000e+01 : f32
    %19 = vector.broadcast %cst_19 : f32 to vector<32x1xf32>
    %20 = arith.divf %18, %19 : vector<32x1xf32>
    %21 = arith.mulf %4, %4 : vector<32x32xf32>
    %cst_20 = arith.constant dense<0.000000e+00> : vector<32xf32>
    %22 = vector.multi_reduction <add>, %21, %cst_20 [1] : vector<32x32xf32> to vector<32xf32>
    %23 = vector.shape_cast %22 : vector<32xf32> to vector<32x1xf32>
    %cst_21 = arith.constant 3.200000e+01 : f32
    %24 = vector.broadcast %cst_21 : f32 to vector<32x1xf32>
    %25 = arith.divf %23, %24 : vector<32x1xf32>
    %26 = arith.mulf %20, %20 : vector<32x1xf32>
    %27 = arith.subf %25, %26 : vector<32x1xf32>
    %cst_22 = arith.constant 9.99999997E-7 : f32
    %28 = vector.broadcast %cst_22 : f32 to vector<32x1xf32>
    %29 = arith.addf %27, %28 : vector<32x1xf32>
    %30 = math.rsqrt %29 : vector<32x1xf32>
    %31 = vector.broadcast %20 : vector<32x1xf32> to vector<32x32xf32>
    %32 = arith.subf %4, %31 : vector<32x32xf32>
    %33 = vector.broadcast %30 : vector<32x1xf32> to vector<32x32xf32>
    %34 = arith.mulf %32, %33 : vector<32x32xf32>
    %35 = vector.broadcast %5 : vector<1x32xf32> to vector<32x32xf32>
    %36 = arith.mulf %34, %35 : vector<32x32xf32>
    %37 = vector.broadcast %6 : vector<1x32xf32> to vector<32x32xf32>
    %38 = arith.addf %36, %37 : vector<32x32xf32>
    %39 = arith.truncf %38 : vector<32x32xf32> to vector<32x32xbf16>
    %cst_23 = arith.constant dense<0.000000e+00> : vector<32x96xf32>
    %40 = tpu.matmul %39, %13, %cst_23 {dimension_numbers = #tpu.dot_dimension_numbers<[1], [0], [0], [1], [0, 0, 1, 1], [], []>} : vector<32x32xbf16>, vector<32x96xbf16>, vector<32x96xf32> -> vector<32x96xf32>
    %41 = vector.broadcast %7 : vector<1x96xf32> to vector<32x96xf32>
    %42 = arith.addf %40, %41 : vector<32x96xf32>
    %43 = vector.shape_cast %42 : vector<32x96xf32> to vector<2x16x96xf32>
    %44 = arith.truncf %43 : vector<2x16x96xf32> to vector<2x16x96xbf16>
    %45 = vector.extract_strided_slice %44 {offsets = [0, 0, 0], sizes = [2, 16, 8], strides = [1, 1, 1]} : vector<2x16x96xbf16> to vector<2x16x8xbf16>
    %46 = vector.extract_strided_slice %44 {offsets = [0, 0, 32], sizes = [2, 16, 8], strides = [1, 1, 1]} : vector<2x16x96xbf16> to vector<2x16x8xbf16>
    %47 = vector.extract_strided_slice %44 {offsets = [0, 0, 64], sizes = [2, 16, 8], strides = [1, 1, 1]} : vector<2x16x96xbf16> to vector<2x16x8xbf16>
    "tpu.trace_start"() <{level = 10 : i32, message = "bqd,bkd->bqk"}> : () -> ()
    %cst_24 = arith.constant dense<0.000000e+00> : vector<2x16x16xf32>
    %48 = tpu.matmul %45, %46, %cst_24 {dimension_numbers = #tpu.dot_dimension_numbers<[2], [2], [1], [1], [0, 0, 0, 1, 1, 1], [0], [0]>} : vector<2x16x8xbf16>, vector<2x16x8xbf16>, vector<2x16x16xf32> -> vector<2x16x16xf32>
    "tpu.trace_stop"() : () -> ()
    %cst_25 = arith.constant dense<0xFF800000> : vector<2x16xf32>
    %49 = vector.multi_reduction <maximumf>, %48, %cst_25 [2] : vector<2x16x16xf32> to vector<2x16xf32>
    %50 = vector.shape_cast %49 : vector<2x16xf32> to vector<2x16x1xf32>
    %51 = vector.broadcast %50 : vector<2x16x1xf32> to vector<2x16x16xf32>
    %52 = arith.subf %48, %51 : vector<2x16x16xf32>
    %53 = math.exp %52 : vector<2x16x16xf32>
    %cst_26 = arith.constant dense<0.000000e+00> : vector<2x16xf32>
    %54 = vector.multi_reduction <add>, %53, %cst_26 [2] : vector<2x16x16xf32> to vector<2x16xf32>
    %55 = vector.shape_cast %54 : vector<2x16xf32> to vector<2x16x1xf32>
    %56 = tpu.reciprocal %55 {approx = true} : vector<2x16x1xf32> -> vector<2x16x1xf32>
    %57 = vector.broadcast %56 : vector<2x16x1xf32> to vector<2x16x16xf32>
    %58 = arith.mulf %53, %57 : vector<2x16x16xf32>
    %59 = arith.truncf %58 : vector<2x16x16xf32> to vector<2x16x16xbf16>
    "tpu.trace_start"() <{level = 10 : i32, message = "bqk,bkd->bqd"}> : () -> ()
    %cst_27 = arith.constant dense<0.000000e+00> : vector<2x16x8xf32>
    %60 = tpu.matmul %59, %47, %cst_27 {dimension_numbers = #tpu.dot_dimension_numbers<[2], [1], [1], [2], [0, 0, 0, 1, 1, 2], [0], [0]>} : vector<2x16x16xbf16>, vector<2x16x8xbf16>, vector<2x16x8xf32> -> vector<2x16x8xf32>
    "tpu.trace_stop"() : () -> ()
    %61 = vector.shape_cast %60 : vector<2x16x8xf32> to vector<32x8xf32>
    %62 = vector.extract_strided_slice %44 {offsets = [0, 0, 8], sizes = [2, 16, 8], strides = [1, 1, 1]} : vector<2x16x96xbf16> to vector<2x16x8xbf16>
    %63 = vector.extract_strided_slice %44 {offsets = [0, 0, 40], sizes = [2, 16, 8], strides = [1, 1, 1]} : vector<2x16x96xbf16> to vector<2x16x8xbf16>
    %64 = vector.extract_strided_slice %44 {offsets = [0, 0, 72], sizes = [2, 16, 8], strides = [1, 1, 1]} : vector<2x16x96xbf16> to vector<2x16x8xbf16>
    "tpu.trace_start"() <{level = 10 : i32, message = "bqd,bkd->bqk"}> : () -> ()
    %cst_28 = arith.constant dense<0.000000e+00> : vector<2x16x16xf32>
    %65 = tpu.matmul %62, %63, %cst_28 {dimension_numbers = #tpu.dot_dimension_numbers<[2], [2], [1], [1], [0, 0, 0, 1, 1, 1], [0], [0]>} : vector<2x16x8xbf16>, vector<2x16x8xbf16>, vector<2x16x16xf32> -> vector<2x16x16xf32>
    "tpu.trace_stop"() : () -> ()
    %cst_29 = arith.constant dense<0xFF800000> : vector<2x16xf32>
    %66 = vector.multi_reduction <maximumf>, %65, %cst_29 [2] : vector<2x16x16xf32> to vector<2x16xf32>
    %67 = vector.shape_cast %66 : vector<2x16xf32> to vector<2x16x1xf32>
    %68 = vector.broadcast %67 : vector<2x16x1xf32> to vector<2x16x16xf32>
    %69 = arith.subf %65, %68 : vector<2x16x16xf32>
    %70 = math.exp %69 : vector<2x16x16xf32>
    %cst_30 = arith.constant dense<0.000000e+00> : vector<2x16xf32>
    %71 = vector.multi_reduction <add>, %70, %cst_30 [2] : vector<2x16x16xf32> to vector<2x16xf32>
    %72 = vector.shape_cast %71 : vector<2x16xf32> to vector<2x16x1xf32>
    %73 = tpu.reciprocal %72 {approx = true} : vector<2x16x1xf32> -> vector<2x16x1xf32>
    %74 = vector.broadcast %73 : vector<2x16x1xf32> to vector<2x16x16xf32>
    %75 = arith.mulf %70, %74 : vector<2x16x16xf32>
    %76 = arith.truncf %75 : vector<2x16x16xf32> to vector<2x16x16xbf16>
    "tpu.trace_start"() <{level = 10 : i32, message = "bqk,bkd->bqd"}> : () -> ()
    %cst_31 = arith.constant dense<0.000000e+00> : vector<2x16x8xf32>
    %77 = tpu.matmul %76, %64, %cst_31 {dimension_numbers = #tpu.dot_dimension_numbers<[2], [1], [1], [2], [0, 0, 0, 1, 1, 2], [0], [0]>} : vector<2x16x16xbf16>, vector<2x16x8xbf16>, vector<2x16x8xf32> -> vector<2x16x8xf32>
    "tpu.trace_stop"() : () -> ()
    %78 = vector.shape_cast %77 : vector<2x16x8xf32> to vector<32x8xf32>
    %79 = vector.extract_strided_slice %44 {offsets = [0, 0, 16], sizes = [2, 16, 8], strides = [1, 1, 1]} : vector<2x16x96xbf16> to vector<2x16x8xbf16>
    %80 = vector.extract_strided_slice %44 {offsets = [0, 0, 48], sizes = [2, 16, 8], strides = [1, 1, 1]} : vector<2x16x96xbf16> to vector<2x16x8xbf16>
    %81 = vector.extract_strided_slice %44 {offsets = [0, 0, 80], sizes = [2, 16, 8], strides = [1, 1, 1]} : vector<2x16x96xbf16> to vector<2x16x8xbf16>
    "tpu.trace_start"() <{level = 10 : i32, message = "bqd,bkd->bqk"}> : () -> ()
    %cst_32 = arith.constant dense<0.000000e+00> : vector<2x16x16xf32>
    %82 = tpu.matmul %79, %80, %cst_32 {dimension_numbers = #tpu.dot_dimension_numbers<[2], [2], [1], [1], [0, 0, 0, 1, 1, 1], [0], [0]>} : vector<2x16x8xbf16>, vector<2x16x8xbf16>, vector<2x16x16xf32> -> vector<2x16x16xf32>
    "tpu.trace_stop"() : () -> ()
    %cst_33 = arith.constant dense<0xFF800000> : vector<2x16xf32>
    %83 = vector.multi_reduction <maximumf>, %82, %cst_33 [2] : vector<2x16x16xf32> to vector<2x16xf32>
    %84 = vector.shape_cast %83 : vector<2x16xf32> to vector<2x16x1xf32>
    %85 = vector.broadcast %84 : vector<2x16x1xf32> to vector<2x16x16xf32>
    %86 = arith.subf %82, %85 : vector<2x16x16xf32>
    %87 = math.exp %86 : vector<2x16x16xf32>
    %cst_34 = arith.constant dense<0.000000e+00> : vector<2x16xf32>
    %88 = vector.multi_reduction <add>, %87, %cst_34 [2] : vector<2x16x16xf32> to vector<2x16xf32>
    %89 = vector.shape_cast %88 : vector<2x16xf32> to vector<2x16x1xf32>
    %90 = tpu.reciprocal %89 {approx = true} : vector<2x16x1xf32> -> vector<2x16x1xf32>
    %91 = vector.broadcast %90 : vector<2x16x1xf32> to vector<2x16x16xf32>
    %92 = arith.mulf %87, %91 : vector<2x16x16xf32>
    %93 = arith.truncf %92 : vector<2x16x16xf32> to vector<2x16x16xbf16>
    "tpu.trace_start"() <{level = 10 : i32, message = "bqk,bkd->bqd"}> : () -> ()
    %cst_35 = arith.constant dense<0.000000e+00> : vector<2x16x8xf32>
    %94 = tpu.matmul %93, %81, %cst_35 {dimension_numbers = #tpu.dot_dimension_numbers<[2], [1], [1], [2], [0, 0, 0, 1, 1, 2], [0], [0]>} : vector<2x16x16xbf16>, vector<2x16x8xbf16>, vector<2x16x8xf32> -> vector<2x16x8xf32>
    "tpu.trace_stop"() : () -> ()
    %95 = vector.shape_cast %94 : vector<2x16x8xf32> to vector<32x8xf32>
    %96 = vector.extract_strided_slice %44 {offsets = [0, 0, 24], sizes = [2, 16, 8], strides = [1, 1, 1]} : vector<2x16x96xbf16> to vector<2x16x8xbf16>
    %97 = vector.extract_strided_slice %44 {offsets = [0, 0, 56], sizes = [2, 16, 8], strides = [1, 1, 1]} : vector<2x16x96xbf16> to vector<2x16x8xbf16>
    %98 = vector.extract_strided_slice %44 {offsets = [0, 0, 88], sizes = [2, 16, 8], strides = [1, 1, 1]} : vector<2x16x96xbf16> to vector<2x16x8xbf16>
    "tpu.trace_start"() <{level = 10 : i32, message = "bqd,bkd->bqk"}> : () -> ()
    %cst_36 = arith.constant dense<0.000000e+00> : vector<2x16x16xf32>
    %99 = tpu.matmul %96, %97, %cst_36 {dimension_numbers = #tpu.dot_dimension_numbers<[2], [2], [1], [1], [0, 0, 0, 1, 1, 1], [0], [0]>} : vector<2x16x8xbf16>, vector<2x16x8xbf16>, vector<2x16x16xf32> -> vector<2x16x16xf32>
    "tpu.trace_stop"() : () -> ()
    %cst_37 = arith.constant dense<0xFF800000> : vector<2x16xf32>
    %100 = vector.multi_reduction <maximumf>, %99, %cst_37 [2] : vector<2x16x16xf32> to vector<2x16xf32>
    %101 = vector.shape_cast %100 : vector<2x16xf32> to vector<2x16x1xf32>
    %102 = vector.broadcast %101 : vector<2x16x1xf32> to vector<2x16x16xf32>
    %103 = arith.subf %99, %102 : vector<2x16x16xf32>
    %104 = math.exp %103 : vector<2x16x16xf32>
    %cst_38 = arith.constant dense<0.000000e+00> : vector<2x16xf32>
    %105 = vector.multi_reduction <add>, %104, %cst_38 [2] : vector<2x16x16xf32> to vector<2x16xf32>
    %106 = vector.shape_cast %105 : vector<2x16xf32> to vector<2x16x1xf32>
    %107 = tpu.reciprocal %106 {approx = true} : vector<2x16x1xf32> -> vector<2x16x1xf32>
    %108 = vector.broadcast %107 : vector<2x16x1xf32> to vector<2x16x16xf32>
    %109 = arith.mulf %104, %108 : vector<2x16x16xf32>
    %110 = arith.truncf %109 : vector<2x16x16xf32> to vector<2x16x16xbf16>
    "tpu.trace_start"() <{level = 10 : i32, message = "bqk,bkd->bqd"}> : () -> ()
    %cst_39 = arith.constant dense<0.000000e+00> : vector<2x16x8xf32>
    %111 = tpu.matmul %110, %98, %cst_39 {dimension_numbers = #tpu.dot_dimension_numbers<[2], [1], [1], [2], [0, 0, 0, 1, 1, 2], [0], [0]>} : vector<2x16x16xbf16>, vector<2x16x8xbf16>, vector<2x16x8xf32> -> vector<2x16x8xf32>
    "tpu.trace_stop"() : () -> ()
    %112 = vector.shape_cast %111 : vector<2x16x8xf32> to vector<32x8xf32>
    %113 = tpu.concatenate %61, %78, %95, %112 in 1 : vector<32x8xf32>, vector<32x8xf32>, vector<32x8xf32>, vector<32x8xf32> -> vector<32x32xf32>
    %114 = arith.truncf %113 : vector<32x32xf32> to vector<32x32xbf16>
    %cst_40 = arith.constant dense<0.000000e+00> : vector<32x32xf32>
    %115 = tpu.matmul %114, %14, %cst_40 {dimension_numbers = #tpu.dot_dimension_numbers<[1], [0], [0], [1], [0, 0, 1, 1], [], []>} : vector<32x32xbf16>, vector<32x32xbf16>, vector<32x32xf32> -> vector<32x32xf32>
    %116 = vector.broadcast %8 : vector<1x32xf32> to vector<32x32xf32>
    %117 = arith.addf %115, %116 : vector<32x32xf32>
    %118 = arith.addf %4, %117 : vector<32x32xf32>
    %cst_41 = arith.constant dense<0.000000e+00> : vector<32xf32>
    %119 = vector.multi_reduction <add>, %118, %cst_41 [1] : vector<32x32xf32> to vector<32xf32>
    %120 = vector.shape_cast %119 : vector<32xf32> to vector<32x1xf32>
    %cst_42 = arith.constant 3.200000e+01 : f32
    %121 = vector.broadcast %cst_42 : f32 to vector<32x1xf32>
    %122 = arith.divf %120, %121 : vector<32x1xf32>
    %123 = arith.mulf %118, %118 : vector<32x32xf32>
    %cst_43 = arith.constant dense<0.000000e+00> : vector<32xf32>
    %124 = vector.multi_reduction <add>, %123, %cst_43 [1] : vector<32x32xf32> to vector<32xf32>
    %125 = vector.shape_cast %124 : vector<32xf32> to vector<32x1xf32>
    %cst_44 = arith.constant 3.200000e+01 : f32
    %126 = vector.broadcast %cst_44 : f32 to vector<32x1xf32>
    %127 = arith.divf %125, %126 : vector<32x1xf32>
    %128 = arith.mulf %122, %122 : vector<32x1xf32>
    %129 = arith.subf %127, %128 : vector<32x1xf32>
    %cst_45 = arith.constant 9.99999997E-7 : f32
    %130 = vector.broadcast %cst_45 : f32 to vector<32x1xf32>
    %131 = arith.addf %129, %130 : vector<32x1xf32>
    %132 = math.rsqrt %131 : vector<32x1xf32>
    %133 = vector.broadcast %122 : vector<32x1xf32> to vector<32x32xf32>
    %134 = arith.subf %118, %133 : vector<32x32xf32>
    %135 = vector.broadcast %132 : vector<32x1xf32> to vector<32x32xf32>
    %136 = arith.mulf %134, %135 : vector<32x32xf32>
    %137 = vector.broadcast %9 : vector<1x32xf32> to vector<32x32xf32>
    %138 = arith.mulf %136, %137 : vector<32x32xf32>
    %139 = vector.broadcast %10 : vector<1x32xf32> to vector<32x32xf32>
    %140 = arith.addf %138, %139 : vector<32x32xf32>
    %141 = arith.truncf %140 : vector<32x32xf32> to vector<32x32xbf16>
    %cst_46 = arith.constant dense<0.000000e+00> : vector<32x64xf32>
    %142 = tpu.matmul %141, %15, %cst_46 {dimension_numbers = #tpu.dot_dimension_numbers<[1], [0], [0], [1], [0, 0, 1, 1], [], []>} : vector<32x32xbf16>, vector<32x64xbf16>, vector<32x64xf32> -> vector<32x64xf32>
    %143 = vector.broadcast %11 : vector<1x64xf32> to vector<32x64xf32>
    %144 = arith.addf %142, %143 : vector<32x64xf32>
    %cst_47 = arith.constant 0.636619746 : f32
    %145 = math.sqrt %cst_47 : f32
    %cst_48 = arith.constant 5.000000e-01 : f32
    %146 = vector.broadcast %cst_48 : f32 to vector<32x64xf32>
    %147 = arith.mulf %146, %144 : vector<32x64xf32>
    %cst_49 = arith.constant 4.471500e-02 : f32
    %148 = vector.broadcast %cst_49 : f32 to vector<32x64xf32>
    %149 = arith.mulf %148, %144 : vector<32x64xf32>
    %150 = arith.mulf %149, %144 : vector<32x64xf32>
    %151 = arith.mulf %150, %144 : vector<32x64xf32>
    %152 = arith.addf %144, %151 : vector<32x64xf32>
    %153 = vector.broadcast %145 : f32 to vector<32x64xf32>
    %154 = arith.mulf %153, %152 : vector<32x64xf32>
    %155 = math.tanh %154 : vector<32x64xf32>
    %cst_50 = arith.constant 1.000000e+00 : f32
    %156 = vector.broadcast %cst_50 : f32 to vector<32x64xf32>
    %157 = arith.addf %156, %155 : vector<32x64xf32>
    %158 = arith.mulf %147, %157 : vector<32x64xf32>
    %159 = arith.truncf %158 : vector<32x64xf32> to vector<32x64xbf16>
    %cst_51 = arith.constant dense<0.000000e+00> : vector<32x32xf32>
    %160 = tpu.matmul %159, %16, %cst_51 {dimension_numbers = #tpu.dot_dimension_numbers<[1], [0], [0], [1], [0, 0, 1, 1], [], []>} : vector<32x64xbf16>, vector<64x32xbf16>, vector<32x32xf32> -> vector<32x32xf32>
    %161 = vector.broadcast %12 : vector<1x32xf32> to vector<32x32xf32>
    %162 = arith.addf %160, %161 : vector<32x32xf32>
    %163 = arith.addf %118, %162 : vector<32x32xf32>
    %c8 = arith.constant 8 : index
    %c0_52 = arith.constant 0 : index
    %164 = vector.load %arg3[%c8, %c0_52] : memref<18x96xf32, #tpu.memory_space<vmem>>, vector<1x32xf32>
    %c9 = arith.constant 9 : index
    %c0_53 = arith.constant 0 : index
    %165 = vector.load %arg3[%c9, %c0_53] : memref<18x96xf32, #tpu.memory_space<vmem>>, vector<1x32xf32>
    %c10 = arith.constant 10 : index
    %c0_54 = arith.constant 0 : index
    %166 = vector.load %arg3[%c10, %c0_54] : memref<18x96xf32, #tpu.memory_space<vmem>>, vector<1x96xf32>
    %c11 = arith.constant 11 : index
    %c0_55 = arith.constant 0 : index
    %167 = vector.load %arg3[%c11, %c0_55] : memref<18x96xf32, #tpu.memory_space<vmem>>, vector<1x32xf32>
    %c12 = arith.constant 12 : index
    %c0_56 = arith.constant 0 : index
    %168 = vector.load %arg3[%c12, %c0_56] : memref<18x96xf32, #tpu.memory_space<vmem>>, vector<1x32xf32>
    %c13 = arith.constant 13 : index
    %c0_57 = arith.constant 0 : index
    %169 = vector.load %arg3[%c13, %c0_57] : memref<18x96xf32, #tpu.memory_space<vmem>>, vector<1x32xf32>
    %c14 = arith.constant 14 : index
    %c0_58 = arith.constant 0 : index
    %170 = vector.load %arg3[%c14, %c0_58] : memref<18x96xf32, #tpu.memory_space<vmem>>, vector<1x64xf32>
    %c15 = arith.constant 15 : index
    %c0_59 = arith.constant 0 : index
    %171 = vector.load %arg3[%c15, %c0_59] : memref<18x96xf32, #tpu.memory_space<vmem>>, vector<1x32xf32>
    %c352 = arith.constant 352 : index
    %c0_60 = arith.constant 0 : index
    %172 = vector.load %arg2[%c352, %c0_60] : memref<512x96xbf16, #tpu.memory_space<vmem>>, vector<32x96xbf16>
    %c384 = arith.constant 384 : index
    %c0_61 = arith.constant 0 : index
    %173 = vector.load %arg2[%c384, %c0_61] : memref<512x96xbf16, #tpu.memory_space<vmem>>, vector<32x32xbf16>
    %c416 = arith.constant 416 : index
    %c0_62 = arith.constant 0 : index
    %174 = vector.load %arg2[%c416, %c0_62] : memref<512x96xbf16, #tpu.memory_space<vmem>>, vector<32x64xbf16>
    %c448 = arith.constant 448 : index
    %c0_63 = arith.constant 0 : index
    %175 = vector.load %arg2[%c448, %c0_63] : memref<512x96xbf16, #tpu.memory_space<vmem>>, vector<64x32xbf16>
    %cst_64 = arith.constant dense<0.000000e+00> : vector<32xf32>
    %176 = vector.multi_reduction <add>, %163, %cst_64 [1] : vector<32x32xf32> to vector<32xf32>
    %177 = vector.shape_cast %176 : vector<32xf32> to vector<32x1xf32>
    %cst_65 = arith.constant 3.200000e+01 : f32
    %178 = vector.broadcast %cst_65 : f32 to vector<32x1xf32>
    %179 = arith.divf %177, %178 : vector<32x1xf32>
    %180 = arith.mulf %163, %163 : vector<32x32xf32>
    %cst_66 = arith.constant dense<0.000000e+00> : vector<32xf32>
    %181 = vector.multi_reduction <add>, %180, %cst_66 [1] : vector<32x32xf32> to vector<32xf32>
    %182 = vector.shape_cast %181 : vector<32xf32> to vector<32x1xf32>
    %cst_67 = arith.constant 3.200000e+01 : f32
    %183 = vector.broadcast %cst_67 : f32 to vector<32x1xf32>
    %184 = arith.divf %182, %183 : vector<32x1xf32>
    %185 = arith.mulf %179, %179 : vector<32x1xf32>
    %186 = arith.subf %184, %185 : vector<32x1xf32>
    %cst_68 = arith.constant 9.99999997E-7 : f32
    %187 = vector.broadcast %cst_68 : f32 to vector<32x1xf32>
    %188 = arith.addf %186, %187 : vector<32x1xf32>
    %189 = math.rsqrt %188 : vector<32x1xf32>
    %190 = vector.broadcast %179 : vector<32x1xf32> to vector<32x32xf32>
    %191 = arith.subf %163, %190 : vector<32x32xf32>
    %192 = vector.broadcast %189 : vector<32x1xf32> to vector<32x32xf32>
    %193 = arith.mulf %191, %192 : vector<32x32xf32>
    %194 = vector.broadcast %164 : vector<1x32xf32> to vector<32x32xf32>
    %195 = arith.mulf %193, %194 : vector<32x32xf32>
    %196 = vector.broadcast %165 : vector<1x32xf32> to vector<32x32xf32>
    %197 = arith.addf %195, %196 : vector<32x32xf32>
    %198 = arith.truncf %197 : vector<32x32xf32> to vector<32x32xbf16>
    %cst_69 = arith.constant dense<0.000000e+00> : vector<32x96xf32>
    %199 = tpu.matmul %198, %172, %cst_69 {dimension_numbers = #tpu.dot_dimension_numbers<[1], [0], [0], [1], [0, 0, 1, 1], [], []>} : vector<32x32xbf16>, vector<32x96xbf16>, vector<32x96xf32> -> vector<32x96xf32>
    %200 = vector.broadcast %166 : vector<1x96xf32> to vector<32x96xf32>
    %201 = arith.addf %199, %200 : vector<32x96xf32>
    %202 = vector.shape_cast %201 : vector<32x96xf32> to vector<2x16x96xf32>
    %203 = arith.truncf %202 : vector<2x16x96xf32> to vector<2x16x96xbf16>
    %204 = vector.extract_strided_slice %203 {offsets = [0, 0, 0], sizes = [2, 16, 8], strides = [1, 1, 1]} : vector<2x16x96xbf16> to vector<2x16x8xbf16>
    %205 = vector.extract_strided_slice %203 {offsets = [0, 0, 32], sizes = [2, 16, 8], strides = [1, 1, 1]} : vector<2x16x96xbf16> to vector<2x16x8xbf16>
    %206 = vector.extract_strided_slice %203 {offsets = [0, 0, 64], sizes = [2, 16, 8], strides = [1, 1, 1]} : vector<2x16x96xbf16> to vector<2x16x8xbf16>
    "tpu.trace_start"() <{level = 10 : i32, message = "bqd,bkd->bqk"}> : () -> ()
    %cst_70 = arith.constant dense<0.000000e+00> : vector<2x16x16xf32>
    %207 = tpu.matmul %204, %205, %cst_70 {dimension_numbers = #tpu.dot_dimension_numbers<[2], [2], [1], [1], [0, 0, 0, 1, 1, 1], [0], [0]>} : vector<2x16x8xbf16>, vector<2x16x8xbf16>, vector<2x16x16xf32> -> vector<2x16x16xf32>
    "tpu.trace_stop"() : () -> ()
    %cst_71 = arith.constant dense<0xFF800000> : vector<2x16xf32>
    %208 = vector.multi_reduction <maximumf>, %207, %cst_71 [2] : vector<2x16x16xf32> to vector<2x16xf32>
    %209 = vector.shape_cast %208 : vector<2x16xf32> to vector<2x16x1xf32>
    %210 = vector.broadcast %209 : vector<2x16x1xf32> to vector<2x16x16xf32>
    %211 = arith.subf %207, %210 : vector<2x16x16xf32>
    %212 = math.exp %211 : vector<2x16x16xf32>
    %cst_72 = arith.constant dense<0.000000e+00> : vector<2x16xf32>
    %213 = vector.multi_reduction <add>, %212, %cst_72 [2] : vector<2x16x16xf32> to vector<2x16xf32>
    %214 = vector.shape_cast %213 : vector<2x16xf32> to vector<2x16x1xf32>
    %215 = tpu.reciprocal %214 {approx = true} : vector<2x16x1xf32> -> vector<2x16x1xf32>
    %216 = vector.broadcast %215 : vector<2x16x1xf32> to vector<2x16x16xf32>
    %217 = arith.mulf %212, %216 : vector<2x16x16xf32>
    %218 = arith.truncf %217 : vector<2x16x16xf32> to vector<2x16x16xbf16>
    "tpu.trace_start"() <{level = 10 : i32, message = "bqk,bkd->bqd"}> : () -> ()
    %cst_73 = arith.constant dense<0.000000e+00> : vector<2x16x8xf32>
    %219 = tpu.matmul %218, %206, %cst_73 {dimension_numbers = #tpu.dot_dimension_numbers<[2], [1], [1], [2], [0, 0, 0, 1, 1, 2], [0], [0]>} : vector<2x16x16xbf16>, vector<2x16x8xbf16>, vector<2x16x8xf32> -> vector<2x16x8xf32>
    "tpu.trace_stop"() : () -> ()
    %220 = vector.shape_cast %219 : vector<2x16x8xf32> to vector<32x8xf32>
    %221 = vector.extract_strided_slice %203 {offsets = [0, 0, 8], sizes = [2, 16, 8], strides = [1, 1, 1]} : vector<2x16x96xbf16> to vector<2x16x8xbf16>
    %222 = vector.extract_strided_slice %203 {offsets = [0, 0, 40], sizes = [2, 16, 8], strides = [1, 1, 1]} : vector<2x16x96xbf16> to vector<2x16x8xbf16>
    %223 = vector.extract_strided_slice %203 {offsets = [0, 0, 72], sizes = [2, 16, 8], strides = [1, 1, 1]} : vector<2x16x96xbf16> to vector<2x16x8xbf16>
    "tpu.trace_start"() <{level = 10 : i32, message = "bqd,bkd->bqk"}> : () -> ()
    %cst_74 = arith.constant dense<0.000000e+00> : vector<2x16x16xf32>
    %224 = tpu.matmul %221, %222, %cst_74 {dimension_numbers = #tpu.dot_dimension_numbers<[2], [2], [1], [1], [0, 0, 0, 1, 1, 1], [0], [0]>} : vector<2x16x8xbf16>, vector<2x16x8xbf16>, vector<2x16x16xf32> -> vector<2x16x16xf32>
    "tpu.trace_stop"() : () -> ()
    %cst_75 = arith.constant dense<0xFF800000> : vector<2x16xf32>
    %225 = vector.multi_reduction <maximumf>, %224, %cst_75 [2] : vector<2x16x16xf32> to vector<2x16xf32>
    %226 = vector.shape_cast %225 : vector<2x16xf32> to vector<2x16x1xf32>
    %227 = vector.broadcast %226 : vector<2x16x1xf32> to vector<2x16x16xf32>
    %228 = arith.subf %224, %227 : vector<2x16x16xf32>
    %229 = math.exp %228 : vector<2x16x16xf32>
    %cst_76 = arith.constant dense<0.000000e+00> : vector<2x16xf32>
    %230 = vector.multi_reduction <add>, %229, %cst_76 [2] : vector<2x16x16xf32> to vector<2x16xf32>
    %231 = vector.shape_cast %230 : vector<2x16xf32> to vector<2x16x1xf32>
    %232 = tpu.reciprocal %231 {approx = true} : vector<2x16x1xf32> -> vector<2x16x1xf32>
    %233 = vector.broadcast %232 : vector<2x16x1xf32> to vector<2x16x16xf32>
    %234 = arith.mulf %229, %233 : vector<2x16x16xf32>
    %235 = arith.truncf %234 : vector<2x16x16xf32> to vector<2x16x16xbf16>
    "tpu.trace_start"() <{level = 10 : i32, message = "bqk,bkd->bqd"}> : () -> ()
    %cst_77 = arith.constant dense<0.000000e+00> : vector<2x16x8xf32>
    %236 = tpu.matmul %235, %223, %cst_77 {dimension_numbers = #tpu.dot_dimension_numbers<[2], [1], [1], [2], [0, 0, 0, 1, 1, 2], [0], [0]>} : vector<2x16x16xbf16>, vector<2x16x8xbf16>, vector<2x16x8xf32> -> vector<2x16x8xf32>
    "tpu.trace_stop"() : () -> ()
    %237 = vector.shape_cast %236 : vector<2x16x8xf32> to vector<32x8xf32>
    %238 = vector.extract_strided_slice %203 {offsets = [0, 0, 16], sizes = [2, 16, 8], strides = [1, 1, 1]} : vector<2x16x96xbf16> to vector<2x16x8xbf16>
    %239 = vector.extract_strided_slice %203 {offsets = [0, 0, 48], sizes = [2, 16, 8], strides = [1, 1, 1]} : vector<2x16x96xbf16> to vector<2x16x8xbf16>
    %240 = vector.extract_strided_slice %203 {offsets = [0, 0, 80], sizes = [2, 16, 8], strides = [1, 1, 1]} : vector<2x16x96xbf16> to vector<2x16x8xbf16>
    "tpu.trace_start"() <{level = 10 : i32, message = "bqd,bkd->bqk"}> : () -> ()
    %cst_78 = arith.constant dense<0.000000e+00> : vector<2x16x16xf32>
    %241 = tpu.matmul %238, %239, %cst_78 {dimension_numbers = #tpu.dot_dimension_numbers<[2], [2], [1], [1], [0, 0, 0, 1, 1, 1], [0], [0]>} : vector<2x16x8xbf16>, vector<2x16x8xbf16>, vector<2x16x16xf32> -> vector<2x16x16xf32>
    "tpu.trace_stop"() : () -> ()
    %cst_79 = arith.constant dense<0xFF800000> : vector<2x16xf32>
    %242 = vector.multi_reduction <maximumf>, %241, %cst_79 [2] : vector<2x16x16xf32> to vector<2x16xf32>
    %243 = vector.shape_cast %242 : vector<2x16xf32> to vector<2x16x1xf32>
    %244 = vector.broadcast %243 : vector<2x16x1xf32> to vector<2x16x16xf32>
    %245 = arith.subf %241, %244 : vector<2x16x16xf32>
    %246 = math.exp %245 : vector<2x16x16xf32>
    %cst_80 = arith.constant dense<0.000000e+00> : vector<2x16xf32>
    %247 = vector.multi_reduction <add>, %246, %cst_80 [2] : vector<2x16x16xf32> to vector<2x16xf32>
    %248 = vector.shape_cast %247 : vector<2x16xf32> to vector<2x16x1xf32>
    %249 = tpu.reciprocal %248 {approx = true} : vector<2x16x1xf32> -> vector<2x16x1xf32>
    %250 = vector.broadcast %249 : vector<2x16x1xf32> to vector<2x16x16xf32>
    %251 = arith.mulf %246, %250 : vector<2x16x16xf32>
    %252 = arith.truncf %251 : vector<2x16x16xf32> to vector<2x16x16xbf16>
    "tpu.trace_start"() <{level = 10 : i32, message = "bqk,bkd->bqd"}> : () -> ()
    %cst_81 = arith.constant dense<0.000000e+00> : vector<2x16x8xf32>
    %253 = tpu.matmul %252, %240, %cst_81 {dimension_numbers = #tpu.dot_dimension_numbers<[2], [1], [1], [2], [0, 0, 0, 1, 1, 2], [0], [0]>} : vector<2x16x16xbf16>, vector<2x16x8xbf16>, vector<2x16x8xf32> -> vector<2x16x8xf32>
    "tpu.trace_stop"() : () -> ()
    %254 = vector.shape_cast %253 : vector<2x16x8xf32> to vector<32x8xf32>
    %255 = vector.extract_strided_slice %203 {offsets = [0, 0, 24], sizes = [2, 16, 8], strides = [1, 1, 1]} : vector<2x16x96xbf16> to vector<2x16x8xbf16>
    %256 = vector.extract_strided_slice %203 {offsets = [0, 0, 56], sizes = [2, 16, 8], strides = [1, 1, 1]} : vector<2x16x96xbf16> to vector<2x16x8xbf16>
    %257 = vector.extract_strided_slice %203 {offsets = [0, 0, 88], sizes = [2, 16, 8], strides = [1, 1, 1]} : vector<2x16x96xbf16> to vector<2x16x8xbf16>
    "tpu.trace_start"() <{level = 10 : i32, message = "bqd,bkd->bqk"}> : () -> ()
    %cst_82 = arith.constant dense<0.000000e+00> : vector<2x16x16xf32>
    %258 = tpu.matmul %255, %256, %cst_82 {dimension_numbers = #tpu.dot_dimension_numbers<[2], [2], [1], [1], [0, 0, 0, 1, 1, 1], [0], [0]>} : vector<2x16x8xbf16>, vector<2x16x8xbf16>, vector<2x16x16xf32> -> vector<2x16x16xf32>
    "tpu.trace_stop"() : () -> ()
    %cst_83 = arith.constant dense<0xFF800000> : vector<2x16xf32>
    %259 = vector.multi_reduction <maximumf>, %258, %cst_83 [2] : vector<2x16x16xf32> to vector<2x16xf32>
    %260 = vector.shape_cast %259 : vector<2x16xf32> to vector<2x16x1xf32>
    %261 = vector.broadcast %260 : vector<2x16x1xf32> to vector<2x16x16xf32>
    %262 = arith.subf %258, %261 : vector<2x16x16xf32>
    %263 = math.exp %262 : vector<2x16x16xf32>
    %cst_84 = arith.constant dense<0.000000e+00> : vector<2x16xf32>
    %264 = vector.multi_reduction <add>, %263, %cst_84 [2] : vector<2x16x16xf32> to vector<2x16xf32>
    %265 = vector.shape_cast %264 : vector<2x16xf32> to vector<2x16x1xf32>
    %266 = tpu.reciprocal %265 {approx = true} : vector<2x16x1xf32> -> vector<2x16x1xf32>
    %267 = vector.broadcast %266 : vector<2x16x1xf32> to vector<2x16x16xf32>
    %268 = arith.mulf %263, %267 : vector<2x16x16xf32>
    %269 = arith.truncf %268 : vector<2x16x16xf32> to vector<2x16x16xbf16>
    "tpu.trace_start"() <{level = 10 : i32, message = "bqk,bkd->bqd"}> : () -> ()
    %cst_85 = arith.constant dense<0.000000e+00> : vector<2x16x8xf32>
    %270 = tpu.matmul %269, %257, %cst_85 {dimension_numbers = #tpu.dot_dimension_numbers<[2], [1], [1], [2], [0, 0, 0, 1, 1, 2], [0], [0]>} : vector<2x16x16xbf16>, vector<2x16x8xbf16>, vector<2x16x8xf32> -> vector<2x16x8xf32>
    "tpu.trace_stop"() : () -> ()
    %271 = vector.shape_cast %270 : vector<2x16x8xf32> to vector<32x8xf32>
    %272 = tpu.concatenate %220, %237, %254, %271 in 1 : vector<32x8xf32>, vector<32x8xf32>, vector<32x8xf32>, vector<32x8xf32> -> vector<32x32xf32>
    %273 = arith.truncf %272 : vector<32x32xf32> to vector<32x32xbf16>
    %cst_86 = arith.constant dense<0.000000e+00> : vector<32x32xf32>
    %274 = tpu.matmul %273, %173, %cst_86 {dimension_numbers = #tpu.dot_dimension_numbers<[1], [0], [0], [1], [0, 0, 1, 1], [], []>} : vector<32x32xbf16>, vector<32x32xbf16>, vector<32x32xf32> -> vector<32x32xf32>
    %275 = vector.broadcast %167 : vector<1x32xf32> to vector<32x32xf32>
    %276 = arith.addf %274, %275 : vector<32x32xf32>
    %277 = arith.addf %163, %276 : vector<32x32xf32>
    %cst_87 = arith.constant dense<0.000000e+00> : vector<32xf32>
    %278 = vector.multi_reduction <add>, %277, %cst_87 [1] : vector<32x32xf32> to vector<32xf32>
    %279 = vector.shape_cast %278 : vector<32xf32> to vector<32x1xf32>
    %cst_88 = arith.constant 3.200000e+01 : f32
    %280 = vector.broadcast %cst_88 : f32 to vector<32x1xf32>
    %281 = arith.divf %279, %280 : vector<32x1xf32>
    %282 = arith.mulf %277, %277 : vector<32x32xf32>
    %cst_89 = arith.constant dense<0.000000e+00> : vector<32xf32>
    %283 = vector.multi_reduction <add>, %282, %cst_89 [1] : vector<32x32xf32> to vector<32xf32>
    %284 = vector.shape_cast %283 : vector<32xf32> to vector<32x1xf32>
    %cst_90 = arith.constant 3.200000e+01 : f32
    %285 = vector.broadcast %cst_90 : f32 to vector<32x1xf32>
    %286 = arith.divf %284, %285 : vector<32x1xf32>
    %287 = arith.mulf %281, %281 : vector<32x1xf32>
    %288 = arith.subf %286, %287 : vector<32x1xf32>
    %cst_91 = arith.constant 9.99999997E-7 : f32
    %289 = vector.broadcast %cst_91 : f32 to vector<32x1xf32>
    %290 = arith.addf %288, %289 : vector<32x1xf32>
    %291 = math.rsqrt %290 : vector<32x1xf32>
    %292 = vector.broadcast %281 : vector<32x1xf32> to vector<32x32xf32>
    %293 = arith.subf %277, %292 : vector<32x32xf32>
    %294 = vector.broadcast %291 : vector<32x1xf32> to vector<32x32xf32>
    %295 = arith.mulf %293, %294 : vector<32x32xf32>
    %296 = vector.broadcast %168 : vector<1x32xf32> to vector<32x32xf32>
    %297 = arith.mulf %295, %296 : vector<32x32xf32>
    %298 = vector.broadcast %169 : vector<1x32xf32> to vector<32x32xf32>
    %299 = arith.addf %297, %298 : vector<32x32xf32>
    %300 = arith.truncf %299 : vector<32x32xf32> to vector<32x32xbf16>
    %cst_92 = arith.constant dense<0.000000e+00> : vector<32x64xf32>
    %301 = tpu.matmul %300, %174, %cst_92 {dimension_numbers = #tpu.dot_dimension_numbers<[1], [0], [0], [1], [0, 0, 1, 1], [], []>} : vector<32x32xbf16>, vector<32x64xbf16>, vector<32x64xf32> -> vector<32x64xf32>
    %302 = vector.broadcast %170 : vector<1x64xf32> to vector<32x64xf32>
    %303 = arith.addf %301, %302 : vector<32x64xf32>
    %cst_93 = arith.constant 0.636619746 : f32
    %304 = math.sqrt %cst_93 : f32
    %cst_94 = arith.constant 5.000000e-01 : f32
    %305 = vector.broadcast %cst_94 : f32 to vector<32x64xf32>
    %306 = arith.mulf %305, %303 : vector<32x64xf32>
    %cst_95 = arith.constant 4.471500e-02 : f32
    %307 = vector.broadcast %cst_95 : f32 to vector<32x64xf32>
    %308 = arith.mulf %307, %303 : vector<32x64xf32>
    %309 = arith.mulf %308, %303 : vector<32x64xf32>
    %310 = arith.mulf %309, %303 : vector<32x64xf32>
    %311 = arith.addf %303, %310 : vector<32x64xf32>
    %312 = vector.broadcast %304 : f32 to vector<32x64xf32>
    %313 = arith.mulf %312, %311 : vector<32x64xf32>
    %314 = math.tanh %313 : vector<32x64xf32>
    %cst_96 = arith.constant 1.000000e+00 : f32
    %315 = vector.broadcast %cst_96 : f32 to vector<32x64xf32>
    %316 = arith.addf %315, %314 : vector<32x64xf32>
    %317 = arith.mulf %306, %316 : vector<32x64xf32>
    %318 = arith.truncf %317 : vector<32x64xf32> to vector<32x64xbf16>
    %cst_97 = arith.constant dense<0.000000e+00> : vector<32x32xf32>
    %319 = tpu.matmul %318, %175, %cst_97 {dimension_numbers = #tpu.dot_dimension_numbers<[1], [0], [0], [1], [0, 0, 1, 1], [], []>} : vector<32x64xbf16>, vector<64x32xbf16>, vector<32x32xf32> -> vector<32x32xf32>
    %320 = vector.broadcast %171 : vector<1x32xf32> to vector<32x32xf32>
    %321 = arith.addf %319, %320 : vector<32x32xf32>
    %322 = arith.addf %277, %321 : vector<32x32xf32>
    %c16 = arith.constant 16 : index
    %c0_98 = arith.constant 0 : index
    %323 = vector.load %arg3[%c16, %c0_98] : memref<18x96xf32, #tpu.memory_space<vmem>>, vector<1x32xf32>
    %c17 = arith.constant 17 : index
    %c0_99 = arith.constant 0 : index
    %324 = vector.load %arg3[%c17, %c0_99] : memref<18x96xf32, #tpu.memory_space<vmem>>, vector<1x32xf32>
    %cst_100 = arith.constant dense<0.000000e+00> : vector<32xf32>
    %325 = vector.multi_reduction <add>, %322, %cst_100 [1] : vector<32x32xf32> to vector<32xf32>
    %326 = vector.shape_cast %325 : vector<32xf32> to vector<32x1xf32>
    %cst_101 = arith.constant 3.200000e+01 : f32
    %327 = vector.broadcast %cst_101 : f32 to vector<32x1xf32>
    %328 = arith.divf %326, %327 : vector<32x1xf32>
    %329 = arith.mulf %322, %322 : vector<32x32xf32>
    %cst_102 = arith.constant dense<0.000000e+00> : vector<32xf32>
    %330 = vector.multi_reduction <add>, %329, %cst_102 [1] : vector<32x32xf32> to vector<32xf32>
    %331 = vector.shape_cast %330 : vector<32xf32> to vector<32x1xf32>
    %cst_103 = arith.constant 3.200000e+01 : f32
    %332 = vector.broadcast %cst_103 : f32 to vector<32x1xf32>
    %333 = arith.divf %331, %332 : vector<32x1xf32>
    %334 = arith.mulf %328, %328 : vector<32x1xf32>
    %335 = arith.subf %333, %334 : vector<32x1xf32>
    %cst_104 = arith.constant 9.99999997E-7 : f32
    %336 = vector.broadcast %cst_104 : f32 to vector<32x1xf32>
    %337 = arith.addf %335, %336 : vector<32x1xf32>
    %338 = math.rsqrt %337 : vector<32x1xf32>
    %339 = vector.broadcast %328 : vector<32x1xf32> to vector<32x32xf32>
    %340 = arith.subf %322, %339 : vector<32x32xf32>
    %341 = vector.broadcast %338 : vector<32x1xf32> to vector<32x32xf32>
    %342 = arith.mulf %340, %341 : vector<32x32xf32>
    %343 = vector.broadcast %323 : vector<1x32xf32> to vector<32x32xf32>
    %344 = arith.mulf %342, %343 : vector<32x32xf32>
    %345 = vector.broadcast %324 : vector<1x32xf32> to vector<32x32xf32>
    %346 = arith.addf %344, %345 : vector<32x32xf32>
    %c0_105 = arith.constant 0 : index
    %c0_106 = arith.constant 0 : index
    %347 = vector.load %arg4[%c0_105, %c0_106] : memref<32x32xf32, #tpu.memory_space<vmem>>, vector<32x32xf32>
    tpu.vector_store %arg4[%c0_105, %c0_106], %346 {strides = array<i32>} : memref<32x32xf32, #tpu.memory_space<vmem>>, vector<32x32xf32>,
    return
  }
}

</mosaic_0001>

<bundles_post_ra>
// kernel: _vision_model_forward.1
= control target key start
LH: loop header
LB: loop body
LE: loop exit
PB: predicated region body
PF: predicated region fallthrough
CT: control target
= control target key end

     0   :  { %v4203_v1 = vmov 0   ;;  %vm141_vm0 = vcmask 523264   ;;  %s5015_s0 = inlined_call_operand.vmem [shape: bf16[32,192], index: 0, kind: input, shape index: {}]   ;;  %s5016_s1 = inlined_call_operand.vmem [shape: f32[32,32], index: 1, kind: input, shape index: {}]   ;;  %s5017_s2 = inlined_call_operand.vmem [shape: bf16[512,96], index: 2, kind: input, shape index: {}]   ;;  %s5018_s3 = inlined_call_operand.vmem [shape: f32[18,96], index: 3, kind: input, shape index: {}]   ;;  %s5019_s4 = inlined_call_operand.hbm [shape: f32[32,32], index: 4, kind: output, shape index: {}]  }
   0x1   :  { %v3959_v0 = vld [vmem:[%s5017_s2 + $0x38] sm:$0xff]   ;;  %148 = vmatprep.subr.bf16.mxu0 %v4203_v1  ;;  %v3960_v2 = vld [vmem:[%s5017_s2 + $0x30] sm:$0xff]   ;;  %v3961_v3 = vld [vmem:[%s5017_s2 + $0x28] sm:$0xff]  }
   0x2   :  { %149 = vmatpush1.bf16.msra.mxu0 %v3959_v0  ;;  %v3962_v4 = vld [vmem:[%s5017_s2 + $0x20] sm:$0xff]   ;;  %v3963_v6 = vld [vmem:[%s5017_s2 + $0x18] sm:$0xff]   ;;  %v3964_v7 = vld [vmem:[%s5017_s2 + $0x10] sm:$0xff]  }
   0x3   :  { %150 = vmatprep.subr.bf16.mxu0 %v4203_v1  ;;  %v3973_v5 = vld [vmem:[%s5015_s0 + $0x4] ss:$8 sps:$4 sm:$0xff]  }
   0x4   :  { %3428 = vmatprep.mubr.msk.bf16.mxu0 %vm141_vm0, %v3973_v5  ;;  %v3965_v8 = vld [vmem:[%s5017_s2 + $0x8] sm:$0xff]   ;;  %v3966_v9 = vld [vmem:[%s5017_s2] sm:$0xff]  }
   0x6   :  { %151 = vmatpush1.bf16.msra.mxu0 %v3960_v2 }
   0x7   :  { %152 = vmatprep.subr.bf16.mxu0 %v4203_v1 }
   0xa   :  { %153 = vmatpush1.bf16.msra.mxu0 %v3961_v3 }
   0xb   :  { %154 = vmatprep.subr.bf16.mxu0 %v4203_v1 }
   0xe   :  { %155 = vmatpush1.bf16.msra.mxu0 %v3962_v4 }
   0xf   :  { %156 = vmatprep.subr.bf16.mxu0 %v4203_v1 }
  0x12   :  { %157 = vmatpush1.bf16.msra.mxu0 %v3963_v6 }
  0x13   :  { %158 = vmatprep.subr.bf16.mxu0 %v4203_v1 }
  0x16   :  { %159 = vmatpush1.bf16.msra.mxu0 %v3964_v7 }
  0x17   :  { %160 = vmatprep.subr.bf16.mxu0 %v4203_v1 }
  0x1a   :  { %161 = vmatpush1.bf16.msra.mxu0 %v3965_v8 }
  0x1b   :  { %162 = vmatprep.subr.bf16.mxu0 %v4203_v1 }
  0x1c   :  { %9 = vsyncpa [#allocation3], 0  ;;  %v3967_v10 = vld [vmem:[%s5017_s2 + $0x58] sm:$0xff]   ;;  %v3968_v11 = vld [vmem:[%s5017_s2 + $0x50] sm:$0xff]   ;;  %vm225_vm1 = vcmask 261120   ;;  %vm4205_vm2 = vmmov 0  }
  0x1d   :  { %v3969_v12 = vld [vmem:[%s5017_s2 + $0x48] sm:$0xff]   ;;  %v3970_v13 = vld [vmem:[%s5017_s2 + $0x40] sm:$0xff]   ;;  %v3974_v15 = vld [vmem:[%s5015_s0 + $0x14] ss:$8 sps:$4 sm:$0xff]   ;;  %s4206_s11 = smov 96   ;;  %vm381_vm3 = vcmask 64512  }
  0x1e   :  { %163 = vmatpush1.bf16.msra.mxu0 %v3966_v9  ;;  %v3971_v14 = vld [vmem:[%s5015_s0] ss:$8 sps:$4 sm:$0xff]   ;;  %v3976_v16 = vld [vmem:[%s5015_s0 + $0x10] ss:$8 sps:$4 sm:$0xff]   ;;  %vm479_vm4 = vcmask 130048   ;;  %s4207_s12 = smov 64  }
  0x1f   :  { %172 = vmatprep.subr.bf16.mxu0 %v4203_v1  ;;  %v47_v17 = vld [vmem:[%s5016_s1] sm:$0xff]  ;;  %v48_v21 = vld [vmem:[%s5016_s1 + $0x8] sm:$0xff]  ;;  %v49_v27 = vld [vmem:[%s5016_s1 + $0x10] sm:$0xff]  ;;  %s4208_s13 = smov 88   ;;  %s4209_s14 = smov 120   ;;  %vm1402_vm5 = vcmask 195584  }
  0x20   :  { %v50_v34 = vld [vmem:[%s5016_s1 + $0x18] sm:$0xff]  ;;  %v3977_v45 = vld [vmem:[%s5017_s2 + $0x68] sm:$0xff]   ;;  %v3978_v46 = vld [vmem:[%s5017_s2 + $0x60] sm:$0xff]   ;;  %s4210_s15 = smov 56   ;;  %s4211_s16 = smov 80  }
  0x21   :  { %3616 = vmatprep.subr.bf16.mxu1 %v3977_v45  ;;  %s4212_s17 = smov 112   ;;  %s4213_s18 = smov 48  }
  0x22   :  { %173 = vmatpush2.bf16.msra.mxu0 %v3967_v10  ;;  %3617 = vmatpush3.bf16.msra.mxu1 %v3977_v45  ;;  %s4214_s19 = smov 72   ;;  %s4215_s20 = smov 104  }
  0x23   :  { %174 = vmatprep.subr.bf16.mxu0 %v4203_v1  ;;  %3618 = vmatprep.subr.bf16.mxu1 %v3978_v46  ;;  %s4216_s21 = smov 40   ;;  %s4217_s22 = smov 8  }
  0x24   :  { %s4218_s23 = smov 16   ;;  %s4219_s25 = smov 24  }
  0x26   :  { %175 = vmatpush2.bf16.msra.mxu0 %v3968_v11  ;;  %3619 = vmatpush3.bf16.msra.mxu1 %v3978_v46 }
  0x27   :  { %176 = vmatprep.subr.bf16.mxu0 %v4203_v1 }
  0x2a   :  { %177 = vmatpush2.bf16.msra.mxu0 %v3969_v12 }
  0x2b   :  { %178 = vmatprep.subr.bf16.mxu0 %v4203_v1 }
  0x2e   :  { %179 = vmatpush2.bf16.msra.mxu0 %v3970_v13 }
  0x31   :  { %181 = vmatmul.mubr.bf16.vlgmr.msra.gmra.mxu0 %v3971_v14  ;;  %v3430_v14 = vld [vmem:[%s5018_s3] ss:$0 sm:$0xff] }
  0x32   :  { %3429 = vmatprep.mubr.msk.bf16.mxu0 %vm141_vm0, %v3974_v15 }
  0x39   :  { %189 = vmatmul.mubr.bf16.gmra.mxu0 %v3976_v16 }
  0xf1   :  { %v182_v18 = vpop.f32.mrf.mxu0 }
  0xf2   :  { %v4300_v19 = vadd.f32 %v182_v18, %v47_v17 }
  0xf3   :  { %v184_v20 = vpop.f32.mrf.mxu0 }
  0xf4   :  { %v226_v22 = vsel %vm225_vm1, %v4300_v19, 0.0  ;;  %v243_v23 = vmul.f32 %v4300_v19, %v4300_v19 }
  0xf5   :  { %v185_v24 = vpop.f32.mrf.mxu0  ;;  %227 = vadd.xlane.f32.xlu0 %v226_v22 }
  0xf6   :  { %v4309_v25 = vadd.f32 %v185_v24, %v48_v21  ;;  %v247_v28 = vsel %vm225_vm1, %v243_v23, 0.0  ;;  %v3431_v21 = vld [vmem:[%s5018_s3 + $0x1] ss:$0 sm:$0xff] }
  0xf7   :  { %v187_v26 = vpop.f32.mrf.mxu0 }
  0xf8   :  { %v244_v29 = vmul.f32 %v4309_v25, %v4309_v25  ;;  %v229_v35 = vsel %vm225_vm1, %v4309_v25, 0.0 }
  0xf9   :  { %v190_v30 = vpop.f32.mrf.mxu0  ;;  %248 = vadd.xlane.f32.xlu0 %v247_v28 }
  0xfa   :  { %v4317_v31 = vadd.f32 %v190_v30, %v49_v27  ;;  %v250_v32 = vsel %vm225_vm1, %v244_v29, 0.0 }
  0xfb   :  { %v192_v33 = vpop.f32.mrf.mxu0  ;;  %251 = vadd.xlane.f32.xlu1 %v250_v32 }
  0xfc   :  { %v232_v36 = vsel %vm225_vm1, %v4317_v31, 0.0  ;;  %v245_v37 = vmul.f32 %v4317_v31, %v4317_v31 }
  0xfd   :  { %v193_v38 = vpop.f32.mrf.mxu0  ;;  %230 = vadd.xlane.f32.xlu0 %v229_v35 }
  0xfe   :  { %v4329_v39 = vadd.f32 %v193_v38, %v50_v34  ;;  %v253_v40 = vsel %vm225_vm1, %v245_v37, 0.0  ;;  %v4204_v38 = vmov 0.0  }
  0xff   :  { %v195_v41 = vpop.f32.mrf.mxu0  ;;  %233 = vadd.xlane.f32.xlu1 %v232_v36  ;;  %3624 = vmatprep.subr.bf16.mxu1 %v4204_v38 }
 0x100   :  { %v235_v42 = vsel %vm225_vm1, %v4329_v39, 0.0  ;;  %v246_v43 = vmul.f32 %v4329_v39, %v4329_v39  ;;  %3660 = vmatprep.subr.bf16.mxu0 %v4204_v38  ;;  %3662 = vmatprep.mubr.msk.bf16.mxu0 %vm4205_vm2, %v4204_v38  ;;  %v3432_v41 = vld [vmem:[%s5018_s3 + $0x2] ss:$0 sm:$0xff] }
 0x101   :  { %254 = vadd.xlane.f32.xlu0 %v253_v40 }
 0x102   :  { %v256_v44 = vsel %vm225_vm1, %v246_v43, 0.0 }
 0x103   :  { %236 = vadd.xlane.f32.xlu1 %v235_v42 }
 0x107   :  { %257 = vadd.xlane.f32.xlu1 %v256_v44 }
 0x17e   :  { %v228_v47 = vpop.xlane.xlu0 %227 }
 0x17f   :  { %v239_v48 = vmul.f32 0.03125, %v228_v47 }
 0x181   :  { %v263_v50 = vmul.f32 %v239_v48, %v239_v48  ;;  %v279_v12 = vsub.f32 %v4300_v19, %v239_v48 }
 0x182   :  { %v249_v49 = vpop.xlane.xlu0 %248 }
 0x183   :  { %v259_v51 = vmul.f32 0.03125, %v249_v49 }
 0x184   :  { %v252_v52 = vpop.xlane.xlu1 %251 }
 0x185   :  { %v267_v53 = vsub.f32 %v259_v51, %v263_v50  ;;  %v260_v58 = vmul.f32 0.03125, %v252_v52 }
 0x186   :  { %v231_v54 = vpop.xlane.xlu0 %230 }
 0x187   :  { %v271_v55 = vadd.f32 1e-06, %v267_v53  ;;  %v240_v56 = vmul.f32 0.03125, %v231_v54 }
 0x188   :  { %v234_v57 = vpop.xlane.xlu1 %233 }
 0x189   :  { %3997 = vrsqrt.f32 %v271_v55  ;;  %v264_v59 = vmul.f32 %v240_v56, %v240_v56  ;;  %v241_v60 = vmul.f32 0.03125, %v234_v57  ;;  %v280_v15 = vsub.f32 %v4309_v25, %v240_v56 }
 0x18a   :  { %v255_v61 = vpop.xlane.xlu0 %254 }
 0x18b   :  { %v268_v62 = vsub.f32 %v260_v58, %v264_v59  ;;  %v265_v63 = vmul.f32 %v241_v60, %v241_v60  ;;  %v261_v0 = vmul.f32 0.03125, %v255_v61  ;;  %v281_v22 = vsub.f32 %v4317_v31, %v241_v60 }
 0x18c   :  { %v237_v1 = vpop.xlane.xlu1 %236 }
 0x18d   :  { %v272_v2 = vadd.f32 1e-06, %v268_v62  ;;  %v269_v3 = vsub.f32 %v261_v0, %v265_v63  ;;  %v242_v4 = vmul.f32 0.03125, %v237_v1 }
 0x18f   :  { %3999 = vrsqrt.f32 %v272_v2  ;;  %v273_v5 = vadd.f32 1e-06, %v269_v3  ;;  %v266_v7 = vmul.f32 %v242_v4, %v242_v4  ;;  %v282_v28 = vsub.f32 %v4329_v39, %v242_v4 }
 0x190   :  { %v258_v6 = vpop.xlane.xlu1 %257 }
 0x191   :  { %4001 = vrsqrt.f32 %v273_v5  ;;  %v262_v8 = vmul.f32 0.03125, %v258_v6 }
 0x193   :  { %v270_v9 = vsub.f32 %v262_v8, %v266_v7 }
 0x195   :  { %v274_v10 = vadd.f32 1e-06, %v270_v9 }
 0x196   :  { %v3998_v11 = vpop.eup %3997 }
 0x197   :  { %4003 = vrsqrt.f32 %v274_v10  ;;  %v283_v13 = vmul.f32 %v3998_v11, %v279_v12 }
 0x199   :  { %v291_v18 = vmul.f32 %v3430_v14, %v283_v13 }
 0x19b   :  { %v299_v24 = vadd.f32 %v3431_v21, %v291_v18 }
 0x19c   :  { %v4000_v16 = vpop.eup %3999 }
 0x19d   :  { %v284_v17 = vmul.f32 %v4000_v16, %v280_v15 }
 0x19e   :  { %v4002_v20 = vpop.eup %4001 }
 0x19f   :  { %v292_v23 = vmul.f32 %v3430_v14, %v284_v17  ;;  %v285_v27 = vmul.f32 %v4002_v20, %v281_v22 }
 0x1a1   :  { %v300_v26 = vadd.f32 %v3431_v21, %v292_v23  ;;  %v293_v33 = vmul.f32 %v3430_v14, %v285_v27 }
 0x1a3   :  { %v303_v29 = vpack.c.bf16 %v300_v26, %v299_v24  ;;  %v301_v35 = vadd.f32 %v3431_v21, %v293_v33 }
 0x1a4   :  { %v4004_v30 = vpop.eup %4003 }
 0x1a5   :  { %3620 = vmatprep.mubr.msk.bf16.mxu1 %vm225_vm1, %v303_v29  ;;  %v286_v32 = vmul.f32 %v4004_v30, %v282_v28 }
 0x1a7   :  { %v294_v34 = vmul.f32 %v3430_v14, %v286_v32 }
 0x1a9   :  { %v302_v36 = vadd.f32 %v3431_v21, %v294_v34 }
 0x1ab   :  { %v304_v37 = vpack.c.bf16 %v302_v36, %v301_v35 }
 0x1ad   :  { %3621 = vmatmul.mubr.msk.bf16.vlgmr.msra.gmra.mxu1 %vm225_vm1, %v304_v37 }
 0x1ae   :  { %3626 = vmatprep.mubr.msk.bf16.mxu1 %vm4205_vm2, %v4204_v38 }
 0x26d   :  { %v3622_v40 = vpop.f32.mrf.mxu1 }
 0x26e   :  { %v370_v44 = vadd.f32 %v3622_v40, %v3432_v41 }
 0x26f   :  { %v361_v42 = vpop.f32.mrf.mxu1 }
 0x270   :  { %v362_v47 = vadd.f32 %v3432_v41, %v361_v42 }
 0x271   :  { %v3623_v43 = vpop.f32.mrf.mxu1 }
 0x272   :  { %v373_v45 = vadd.f32 %v3623_v43, %v3432_v41 }
 0x273   :  { %v364_v46 = vpop.f32.mrf.mxu1 }
 0x274   :  { %v4364_v48 = vpack.c.bf16 %v373_v45, %v370_v44  ;;  %v365_v49 = vadd.f32 %v3432_v41, %v364_v46 }
 0x276   :  { %v4366_v50 = vpack.c.bf16 %v365_v49, %v362_v47  ;;  %430 = vrot.lane.b32.xlu1 %v4364_v48, %s4206_s11 }
 0x278   :  { %379 = vrot.lane.b32.xlu0 %v4366_v50, %s4206_s11 }
 0x2e8   :  { %v431_v53 = vpop.permute.xlu1 %430 }
 0x2e9   :  { %v436_v54 = vsel %vm381_vm3, %v431_v53, 0 }
 0x2ea   :  { %v380_v51 = vpop.permute.xlu0 %379 }
 0x2eb   :  { %v386_v52 = vsel %vm381_vm3, %v380_v51, 0 }
 0x2ec   :  { %3625 = vmatpush3.bf16.xpose.msra.mxu1 %v386_v52 }
 0x2ed   :  { %3630 = vmatprep.subr.bf16.mxu1 %v4204_v38 }
 0x2f3   :  { %3627 = vmatmul.mubr.msk.bf16.vlgmr.msra.gmra.mxu1 %vm381_vm3, %v4366_v50 }
 0x2f4   :  { %3631 = vmatpush3.bf16.xpose.msra.mxu1 %v436_v54  ;;  %3632 = vmatprep.mubr.msk.bf16.mxu1 %vm4205_vm2, %v4204_v38 }
 0x2f5   :  { %3636 = vmatprep.subr.bf16.mxu1 %v4204_v38 }
 0x2fb   :  { %3633 = vmatmul.mubr.msk.bf16.vlgmr.msra.gmra.mxu1 %vm381_vm3, %v4364_v48 }
 0x2fc   :  { %3638 = vmatprep.mubr.msk.bf16.mxu1 %vm4205_vm2, %v4204_v38 }
 0x3b3   :  { %v422_v55 = vpop.f32.mrf.mxu1 }
 0x3b4   :  { %v480_v56 = vsel %vm479_vm4, %v422_v55, -inf }
 0x3b5   :  { %481 = vmax.xlane.f32.xlu1 %v480_v56  ;;  %v3628_v57 = vpop.f32.mrf.mxu1 }
 0x3b7   :  { %v425_v58 = vpop.f32.mrf.mxu1 }
 0x3b8   :  { %v483_v59 = vsel %vm479_vm4, %v425_v58, -inf }
 0x3b9   :  { %484 = vmax.xlane.f32.xlu0 %v483_v59  ;;  %v3629_v60 = vpop.f32.mrf.mxu1 }
 0x3bb   :  { %v472_v61 = vpop.f32.mrf.mxu1 }
 0x3bc   :  { %v486_v62 = vsel %vm479_vm4, %v472_v61, -inf }
 0x3bd   :  { %487 = vmax.xlane.f32.xlu0 %v486_v62  ;;  %v3634_v63 = vpop.f32.mrf.mxu1 }
 0x3bf   :  { %v475_v0 = vpop.f32.mrf.mxu1 }
 0x3c0   :  { %v489_v1 = vsel %vm479_vm4, %v475_v0, -inf }
 0x3c1   :  { %490 = vmax.xlane.f32.xlu1 %v489_v1  ;;  %v3635_v2 = vpop.f32.mrf.mxu1 }
 0x43e   :  { %v482_v3 = vpop.xlane.xlu1 %481 }
 0x43f   :  { %v492_v4 = vsub.f32 %v422_v55, %v482_v3 }
 0x441   :  { %v496_v5 = vmul.f32 1.442695, %v492_v4 }
 0x442   :  { %v485_v6 = vpop.xlane.xlu0 %484 }
 0x443   :  { %4005 = vpow2.f32 %v496_v5  ;;  %v493_v7 = vsub.f32 %v425_v58, %v485_v6 }
 0x445   :  { %v498_v8 = vmul.f32 1.442695, %v493_v7 }
 0x446   :  { %v488_v9 = vpop.xlane.xlu0 %487 }
 0x447   :  { %4007 = vpow2.f32 %v498_v8  ;;  %v494_v10 = vsub.f32 %v472_v61, %v488_v9 }
 0x449   :  { %v500_v11 = vmul.f32 1.442695, %v494_v10 }
 0x44a   :  { %v491_v18 = vpop.xlane.xlu1 %490 }
 0x44b   :  { %4009 = vpow2.f32 %v500_v11  ;;  %v495_v20 = vsub.f32 %v475_v0, %v491_v18 }
 0x44d   :  { %v502_v21 = vmul.f32 1.442695, %v495_v20 }
 0x44f   :  { %4011 = vpow2.f32 %v502_v21 }
 0x450   :  { %v4006_v12 = vpop.eup %4005 }
 0x451   :  { %v504_v13 = vsel %vm479_vm4, %v4006_v12, 0.0 }
 0x452   :  { %505 = vadd.xlane.f32.xlu0 %v504_v13 }
 0x454   :  { %v4008_v14 = vpop.eup %4007 }
 0x455   :  { %v507_v15 = vsel %vm479_vm4, %v4008_v14, 0.0 }
 0x456   :  { %508 = vadd.xlane.f32.xlu1 %v507_v15 }
 0x458   :  { %v4010_v16 = vpop.eup %4009 }
 0x459   :  { %v510_v17 = vsel %vm479_vm4, %v4010_v16, 0.0 }
 0x45a   :  { %511 = vadd.xlane.f32.xlu0 %v510_v17 }
 0x45c   :  { %v4012_v22 = vpop.eup %4011 }
 0x45d   :  { %v513_v23 = vsel %vm479_vm4, %v4012_v22, 0.0 }
 0x467   :  { %573 = vrot.lane.b32.xlu1 %v4364_v48, %s4207_s12 }
 0x470   :  { %526 = vrot.lane.b32.xlu0 %v4366_v50, %s4207_s12 }
 0x474   :  { %673 = vrot.lane.b32.xlu0 %v4364_v48, %s4208_s13 }
 0x48b   :  { %514 = vadd.xlane.f32.xlu1 %v513_v23 }
 0x49c   :  { %622 = vrot.lane.b32.xlu1 %v4366_v50, %s4208_s13 }
 0x4a0   :  { %620 = vrot.lane.b32.xlu1 %v4366_v50, %s4209_s14 }
 0x4a4   :  { %671 = vrot.lane.b32.xlu1 %v4364_v48, %s4209_s14 }
 0x4db   :  { %v506_v24 = vpop.xlane.xlu0 %505 }
 0x4dc   :  { %4013 = vrcp.f32 %v506_v24 }
 0x4df   :  { %v509_v26 = vpop.xlane.xlu1 %508 }
 0x4e0   :  { %4015 = vrcp.f32 %v509_v26 }
 0x4e3   :  { %v512_v27 = vpop.xlane.xlu0 %511  ;;  %v574_v35 = vpop.permute.xlu1 %573 }
 0x4e4   :  { %4017 = vrcp.f32 %v512_v27 }
 0x4e7   :  { %v527_v28 = vpop.permute.xlu0 %526 }
 0x4e8   :  { %3637 = vmatpush3.bf16.msra.mxu1 %v527_v28 }
 0x4e9   :  { %3642 = vmatprep.subr.bf16.mxu1 %v4204_v38  ;;  %v4014_v29 = vpop.eup %4013 }
 0x4ea   :  { %v520_v32 = vmul.f32 %v4014_v29, %v4006_v12 }
 0x4eb   :  { %v674_v46 = vpop.permute.xlu0 %673 }
 0x4ec   :  { %v679_v49 = vsel %vm381_vm3, %v674_v46, 0 }
 0x4ed   :  { %v4016_v30 = vpop.eup %4015 }
 0x4ee   :  { %v521_v33 = vmul.f32 %v4016_v30, %v4008_v14 }
 0x4f0   :  { %v524_v34 = vpack.c.bf16 %v521_v33, %v520_v32 }
 0x4f1   :  { %v4018_v37 = vpop.eup %4017 }
 0x4f2   :  { %3639 = vmatmul.mubr.msk.bf16.vlgmr.msra.gmra.mxu1 %vm479_vm4, %v524_v34  ;;  %v522_v41 = vmul.f32 %v4018_v37, %v4010_v16 }
 0x4f3   :  { %3643 = vmatpush3.bf16.msra.mxu1 %v574_v35  ;;  %3644 = vmatprep.mubr.msk.bf16.mxu1 %vm4205_vm2, %v4204_v38 }
 0x4f4   :  { %3648 = vmatprep.subr.bf16.mxu1 %v4204_v38 }
 0x514   :  { %v515_v36 = vpop.xlane.xlu1 %514 }
 0x515   :  { %4019 = vrcp.f32 %v515_v36 }
 0x518   :  { %v623_v43 = vpop.permute.xlu1 %622 }
 0x519   :  { %v628_v45 = vsel %vm381_vm3, %v623_v43, 0 }
 0x51c   :  { %v621_v47 = vpop.permute.xlu1 %620 }
 0x520   :  { %v672_v51 = vpop.permute.xlu1 %671 }
 0x522   :  { %v4020_v40 = vpop.eup %4019 }
 0x523   :  { %v523_v42 = vmul.f32 %v4020_v40, %v4012_v22 }
 0x525   :  { %v525_v44 = vpack.c.bf16 %v523_v42, %v522_v41 }
 0x527   :  { %3645 = vmatmul.mubr.msk.bf16.vlgmr.msra.gmra.mxu1 %vm479_vm4, %v525_v44 }
 0x528   :  { %3649 = vmatpush3.bf16.xpose.msra.mxu1 %v628_v45  ;;  %3650 = vmatprep.mubr.msk.bf16.mxu1 %vm4205_vm2, %v4204_v38 }
 0x529   :  { %3654 = vmatprep.subr.bf16.mxu1 %v4204_v38 }
 0x52f   :  { %3651 = vmatmul.mubr.msk.bf16.vlgmr.msra.gmra.mxu1 %vm381_vm3, %v621_v47 }
 0x530   :  { %3655 = vmatpush3.bf16.xpose.msra.mxu1 %v679_v49  ;;  %3656 = vmatprep.mubr.msk.bf16.mxu1 %vm4205_vm2, %v4204_v38 }
 0x531   :  { %3666 = vmatprep.subr.bf16.mxu1 %v4204_v38 }
 0x537   :  { %3657 = vmatmul.mubr.msk.bf16.vlgmr.msra.gmra.mxu1 %vm381_vm3, %v672_v51 }
 0x538   :  { %3668 = vmatprep.mubr.msk.bf16.mxu1 %vm4205_vm2, %v4204_v38 }
 0x5b2   :  { %v4422_v52 = vpop.f32.mrf.mxu1 }
 0x5b4   :  { %v3640_v53 = vpop.f32.mrf.mxu1 }
 0x5b6   :  { %v4424_v54 = vpop.f32.mrf.mxu1 }
 0x5b8   :  { %v3641_v55 = vpop.f32.mrf.mxu1 }
 0x5e7   :  { %v4426_v56 = vpop.f32.mrf.mxu1 }
 0x5e9   :  { %v3646_v57 = vpop.f32.mrf.mxu1 }
 0x5eb   :  { %v4428_v58 = vpop.f32.mrf.mxu1 }
 0x5ed   :  { %v3647_v59 = vpop.f32.mrf.mxu1 }
 0x5ef   :  { %v664_v60 = vpop.f32.mrf.mxu1 }
 0x5f0   :  { %v722_v61 = vsel %vm479_vm4, %v664_v60, -inf }
 0x5f1   :  { %723 = vmax.xlane.f32.xlu0 %v722_v61  ;;  %v3652_v62 = vpop.f32.mrf.mxu1 }
 0x5f3   :  { %v667_v63 = vpop.f32.mrf.mxu1 }
 0x5f4   :  { %v725_v0 = vsel %vm479_vm4, %v667_v63, -inf }
 0x5f5   :  { %726 = vmax.xlane.f32.xlu1 %v725_v0  ;;  %v3653_v1 = vpop.f32.mrf.mxu1 }
 0x5f7   :  { %v715_v2 = vpop.f32.mrf.mxu1 }
 0x5f8   :  { %v728_v3 = vsel %vm479_vm4, %v715_v2, -inf }
 0x5f9   :  { %729 = vmax.xlane.f32.xlu0 %v728_v3  ;;  %v3658_v4 = vpop.f32.mrf.mxu1 }
 0x5fb   :  { %v718_v5 = vpop.f32.mrf.mxu1 }
 0x5fc   :  { %v731_v6 = vsel %vm479_vm4, %v718_v5, -inf }
 0x5fd   :  { %732 = vmax.xlane.f32.xlu0 %v731_v6  ;;  %v3659_v7 = vpop.f32.mrf.mxu1 }
 0x67a   :  { %v724_v8 = vpop.xlane.xlu0 %723 }
 0x67b   :  { %v734_v9 = vsub.f32 %v664_v60, %v724_v8 }
 0x67d   :  { %v738_v10 = vmul.f32 1.442695, %v734_v9 }
 0x67e   :  { %v727_v11 = vpop.xlane.xlu1 %726 }
 0x67f   :  { %4021 = vpow2.f32 %v738_v10  ;;  %v735_v12 = vsub.f32 %v667_v63, %v727_v11 }
 0x681   :  { %v740_v13 = vmul.f32 1.442695, %v735_v12 }
 0x682   :  { %v730_v14 = vpop.xlane.xlu0 %729 }
 0x683   :  { %4023 = vpow2.f32 %v740_v13  ;;  %v736_v15 = vsub.f32 %v715_v2, %v730_v14 }
 0x685   :  { %v742_v16 = vmul.f32 1.442695, %v736_v15 }
 0x686   :  { %v733_v24 = vpop.xlane.xlu0 %732 }
 0x687   :  { %4025 = vpow2.f32 %v742_v16  ;;  %v737_v26 = vsub.f32 %v718_v5, %v733_v24 }
 0x689   :  { %v744_v27 = vmul.f32 1.442695, %v737_v26 }
 0x68b   :  { %4027 = vpow2.f32 %v744_v27 }
 0x68c   :  { %v4022_v17 = vpop.eup %4021 }
 0x68d   :  { %v746_v18 = vsel %vm479_vm4, %v4022_v17, 0.0 }
 0x68e   :  { %747 = vadd.xlane.f32.xlu0 %v746_v18 }
 0x690   :  { %v4024_v20 = vpop.eup %4023 }
 0x691   :  { %v749_v21 = vsel %vm479_vm4, %v4024_v20, 0.0 }
 0x692   :  { %750 = vadd.xlane.f32.xlu1 %v749_v21 }
 0x694   :  { %v4026_v22 = vpop.eup %4025 }
 0x695   :  { %v752_v23 = vsel %vm479_vm4, %v4026_v22, 0.0 }
 0x696   :  { %753 = vadd.xlane.f32.xlu0 %v752_v23 }
 0x698   :  { %v4028_v28 = vpop.eup %4027 }
 0x699   :  { %v755_v29 = vsel %vm479_vm4, %v4028_v28, 0.0 }
 0x6a3   :  { %815 = vrot.lane.b32.xlu1 %v4364_v48, %s4210_s15 }
 0x6a7   :  { %864 = vrot.lane.b32.xlu1 %v4366_v50, %s4211_s16 }
 0x6ac   :  { %768 = vrot.lane.b32.xlu0 %v4366_v50, %s4210_s15 }
 0x6b0   :  { %862 = vrot.lane.b32.xlu0 %v4366_v50, %s4212_s17 }
 0x6cb   :  { %756 = vadd.xlane.f32.xlu1 %v755_v29 }
 0x6dc   :  { %915 = vrot.lane.b32.xlu1 %v4364_v48, %s4211_s16 }
 0x6e0   :  { %913 = vrot.lane.b32.xlu1 %v4364_v48, %s4212_s17 }
 0x717   :  { %v748_v30 = vpop.xlane.xlu0 %747 }
 0x718   :  { %4029 = vrcp.f32 %v748_v30 }
 0x71b   :  { %v751_v32 = vpop.xlane.xlu1 %750 }
 0x71c   :  { %4031 = vrcp.f32 %v751_v32 }
 0x71f   :  { %v816_v33 = vpop.permute.xlu1 %815  ;;  %v754_v34 = vpop.xlane.xlu0 %753 }
 0x720   :  { %3667 = vmatpush3.bf16.msra.mxu1 %v816_v33  ;;  %4033 = vrcp.f32 %v754_v34 }
 0x721   :  { %3678 = vmatprep.subr.bf16.mxu1 %v4204_v38 }
 0x723   :  { %v769_v35 = vpop.permute.xlu0 %768  ;;  %v865_v42 = vpop.permute.xlu1 %864 }
 0x724   :  { %3661 = vmatpush3.bf16.msra.mxu0 %v769_v35  ;;  %v870_v44 = vsel %vm381_vm3, %v865_v42, 0 }
 0x725   :  { %3672 = vmatprep.subr.bf16.mxu0 %v4204_v38  ;;  %v4030_v36 = vpop.eup %4029 }
 0x726   :  { %v762_v40 = vmul.f32 %v4030_v36, %v4022_v17 }
 0x727   :  { %v863_v45 = vpop.permute.xlu0 %862 }
 0x729   :  { %v4032_v37 = vpop.eup %4031 }
 0x72a   :  { %v763_v41 = vmul.f32 %v4032_v37, %v4024_v20 }
 0x72c   :  { %v766_v43 = vpack.c.bf16 %v763_v41, %v762_v40 }
 0x72d   :  { %v4034_v47 = vpop.eup %4033 }
 0x72e   :  { %3663 = vmatmul.mubr.msk.bf16.vlgmr.msra.gmra.mxu0 %vm479_vm4, %v766_v43  ;;  %v764_v51 = vmul.f32 %v4034_v47, %v4026_v22 }
 0x72f   :  { %3673 = vmatpush3.bf16.xpose.msra.mxu0 %v870_v44  ;;  %3674 = vmatprep.mubr.msk.bf16.mxu0 %vm4205_vm2, %v4204_v38 }
 0x730   :  { %3684 = vmatprep.subr.bf16.mxu0 %v4204_v38 }
 0x736   :  { %3675 = vmatmul.mubr.msk.bf16.vlgmr.msra.gmra.mxu0 %vm381_vm3, %v863_v45 }
 0x737   :  { %3686 = vmatprep.mubr.msk.bf16.mxu0 %vm4205_vm2, %v4204_v38 }
 0x754   :  { %v757_v46 = vpop.xlane.xlu1 %756 }
 0x755   :  { %4035 = vrcp.f32 %v757_v46 }
 0x758   :  { %v916_v55 = vpop.permute.xlu1 %915 }
 0x759   :  { %v921_v59 = vsel %vm381_vm3, %v916_v55, 0 }
 0x75c   :  { %v914_v60 = vpop.permute.xlu1 %913 }
 0x762   :  { %v4036_v49 = vpop.eup %4035 }
 0x763   :  { %v765_v53 = vmul.f32 %v4036_v49, %v4028_v28 }
 0x765   :  { %v767_v57 = vpack.c.bf16 %v765_v53, %v764_v51 }
 0x767   :  { %3669 = vmatmul.mubr.msk.bf16.vlgmr.msra.gmra.mxu1 %vm479_vm4, %v767_v57 }
 0x768   :  { %3679 = vmatpush3.bf16.xpose.msra.mxu1 %v921_v59  ;;  %3680 = vmatprep.mubr.msk.bf16.mxu1 %vm4205_vm2, %v4204_v38 }
 0x769   :  { %3690 = vmatprep.subr.bf16.mxu1 %v4204_v38 }
 0x76f   :  { %3681 = vmatmul.mubr.msk.bf16.vlgmr.msra.gmra.mxu1 %vm381_vm3, %v914_v60 }
 0x770   :  { %3692 = vmatprep.mubr.msk.bf16.mxu1 %vm4205_vm2, %v4204_v38 }
 0x7ee   :  { %v4468_v61 = vpop.f32.mrf.mxu0 }
 0x7f0   :  { %v3664_v62 = vpop.f32.mrf.mxu0 }
 0x7f2   :  { %v4470_v63 = vpop.f32.mrf.mxu0 }
 0x7f3   :  { %v3899_v0 = vpack.i.bf16 %v4470_v63, %v4468_v61 }
 0x7f4   :  { %v3665_v1 = vpop.f32.mrf.mxu0 }
 0x7f6   :  { %v906_v2 = vpop.f32.mrf.mxu0 }
 0x7f7   :  { %v964_v3 = vsel %vm479_vm4, %v906_v2, -inf }
 0x7f8   :  { %965 = vmax.xlane.f32.xlu0 %v964_v3  ;;  %v3676_v4 = vpop.f32.mrf.mxu0 }
 0x7fa   :  { %v909_v5 = vpop.f32.mrf.mxu0 }
 0x7fb   :  { %v967_v6 = vsel %vm479_vm4, %v909_v5, -inf }
 0x7fc   :  { %968 = vmax.xlane.f32.xlu1 %v967_v6  ;;  %v3677_v7 = vpop.f32.mrf.mxu0 }
 0x827   :  { %v4476_v8 = vpop.f32.mrf.mxu1 }
 0x829   :  { %v3670_v9 = vpop.f32.mrf.mxu1 }
 0x82b   :  { %v4478_v10 = vpop.f32.mrf.mxu1 }
 0x82c   :  { %v3904_v11 = vpack.i.bf16 %v4478_v10, %v4476_v8 }
 0x82d   :  { %v3671_v12 = vpop.f32.mrf.mxu1 }
 0x82f   :  { %v957_v13 = vpop.f32.mrf.mxu1 }
 0x830   :  { %v970_v14 = vsel %vm479_vm4, %v957_v13, -inf }
 0x831   :  { %971 = vmax.xlane.f32.xlu0 %v970_v14  ;;  %v3682_v15 = vpop.f32.mrf.mxu1 }
 0x833   :  { %v960_v16 = vpop.f32.mrf.mxu1 }
 0x834   :  { %v973_v17 = vsel %vm479_vm4, %v960_v16, -inf }
 0x835   :  { %974 = vmax.xlane.f32.xlu0 %v973_v17  ;;  %v3683_v18 = vpop.f32.mrf.mxu1 }
 0x881   :  { %v966_v20 = vpop.xlane.xlu0 %965 }
 0x882   :  { %v976_v21 = vsub.f32 %v906_v2, %v966_v20 }
 0x884   :  { %v980_v22 = vmul.f32 1.442695, %v976_v21 }
 0x885   :  { %v969_v23 = vpop.xlane.xlu1 %968 }
 0x886   :  { %4037 = vpow2.f32 %v980_v22  ;;  %v977_v24 = vsub.f32 %v909_v5, %v969_v23 }
 0x888   :  { %v982_v26 = vmul.f32 1.442695, %v977_v24 }
 0x88a   :  { %4039 = vpow2.f32 %v982_v26 }
 0x893   :  { %v4038_v27 = vpop.eup %4037 }
 0x894   :  { %v988_v28 = vsel %vm479_vm4, %v4038_v27, 0.0 }
 0x895   :  { %989 = vadd.xlane.f32.xlu0 %v988_v28 }
 0x897   :  { %v4040_v29 = vpop.eup %4039 }
 0x898   :  { %v991_v30 = vsel %vm479_vm4, %v4040_v29, 0.0 }
 0x899   :  { %992 = vadd.xlane.f32.xlu1 %v991_v30 }
 0x8aa   :  { %1057 = vrot.lane.b32.xlu1 %v4364_v48, %s4213_s18 }
 0x8ae   :  { %1106 = vrot.lane.b32.xlu1 %v4366_v50, %s4214_s19 }
 0x8ba   :  { %v972_v32 = vpop.xlane.xlu0 %971 }
 0x8bb   :  { %v978_v33 = vsub.f32 %v957_v13, %v972_v32 }
 0x8bd   :  { %v984_v34 = vmul.f32 1.442695, %v978_v33 }
 0x8be   :  { %v975_v35 = vpop.xlane.xlu0 %974 }
 0x8bf   :  { %4041 = vpow2.f32 %v984_v34  ;;  %v979_v36 = vsub.f32 %v960_v16, %v975_v35 }
 0x8c1   :  { %v986_v37 = vmul.f32 1.442695, %v979_v36 }
 0x8c3   :  { %4043 = vpow2.f32 %v986_v37 }
 0x8cc   :  { %v4042_v40 = vpop.eup %4041 }
 0x8cd   :  { %v994_v41 = vsel %vm479_vm4, %v4042_v40, 0.0 }
 0x8ce   :  { %995 = vadd.xlane.f32.xlu0 %v994_v41 }
 0x8d0   :  { %v4044_v42 = vpop.eup %4043 }
 0x8d1   :  { %v997_v43 = vsel %vm479_vm4, %v4044_v42, 0.0 }
 0x8d2   :  { %998 = vadd.xlane.f32.xlu1 %v997_v43 }
 0x8e3   :  { %1157 = vrot.lane.b32.xlu1 %v4364_v48, %s4214_s19 }
 0x8e4   :  { %1010 = vrot.lane.b32.xlu0 %v4366_v50, %s4213_s18 }
 0x8e7   :  { %1155 = vrot.lane.b32.xlu1 %v4364_v48, %s4215_s20 }
 0x8e8   :  { %1104 = vrot.lane.b32.xlu0 %v4366_v50, %s4215_s20 }
 0x91e   :  { %v990_v46 = vpop.xlane.xlu0 %989 }
 0x922   :  { %v993_v44 = vpop.xlane.xlu1 %992 }
 0x923   :  { %4045 = vrcp.f32 %v993_v44 }
 0x924   :  { %4047 = vrcp.f32 %v990_v46 }
 0x926   :  { %v1058_v45 = vpop.permute.xlu1 %1057 }
 0x927   :  { %3691 = vmatpush3.bf16.msra.mxu1 %v1058_v45 }
 0x928   :  { %3702 = vmatprep.subr.bf16.mxu1 %v4204_v38 }
 0x92a   :  { %v1107_v49 = vpop.permute.xlu1 %1106 }
 0x92b   :  { %v1112_v1 = vsel %vm381_vm3, %v1107_v49, 0 }
 0x930   :  { %v4046_v47 = vpop.eup %4045 }
 0x931   :  { %v4048_v53 = vpop.eup %4047  ;;  %v1005_v55 = vmul.f32 %v4046_v47, %v4040_v29 }
 0x932   :  { %v1004_v60 = vmul.f32 %v4048_v53, %v4038_v27 }
 0x934   :  { %v1008_v62 = vpack.c.bf16 %v1005_v55, %v1004_v60 }
 0x957   :  { %v996_v51 = vpop.xlane.xlu0 %995 }
 0x958   :  { %4049 = vrcp.f32 %v996_v51 }
 0x95b   :  { %v999_v57 = vpop.xlane.xlu1 %998  ;;  %v1011_v59 = vpop.permute.xlu0 %1010 }
 0x95c   :  { %4051 = vrcp.f32 %v999_v57  ;;  %3685 = vmatpush3.bf16.msra.mxu0 %v1011_v59 }
 0x95d   :  { %3696 = vmatprep.subr.bf16.mxu0 %v4204_v38 }
 0x95f   :  { %3687 = vmatmul.mubr.msk.bf16.vlgmr.msra.gmra.mxu0 %vm479_vm4, %v1008_v62  ;;  %v1105_v2 = vpop.permute.xlu0 %1104  ;;  %v1158_v7 = vpop.permute.xlu1 %1157 }
 0x960   :  { %3697 = vmatpush3.bf16.xpose.msra.mxu0 %v1112_v1  ;;  %3698 = vmatprep.mubr.msk.bf16.mxu0 %vm4205_vm2, %v4204_v38  ;;  %v1163_v12 = vsel %vm381_vm3, %v1158_v7, 0 }
 0x961   :  { %3708 = vmatprep.subr.bf16.mxu0 %v4204_v38 }
 0x963   :  { %v1156_v13 = vpop.permute.xlu1 %1155 }
 0x965   :  { %v4050_v3 = vpop.eup %4049 }
 0x966   :  { %v1006_v5 = vmul.f32 %v4050_v3, %v4042_v40 }
 0x967   :  { %3699 = vmatmul.mubr.msk.bf16.vlgmr.msra.gmra.mxu0 %vm381_vm3, %v1105_v2 }
 0x968   :  { %3710 = vmatprep.mubr.msk.bf16.mxu0 %vm4205_vm2, %v4204_v38 }
 0x969   :  { %v4052_v4 = vpop.eup %4051 }
 0x96a   :  { %v1007_v6 = vmul.f32 %v4052_v4, %v4044_v42 }
 0x96c   :  { %v1009_v9 = vpack.c.bf16 %v1007_v6, %v1006_v5 }
 0x96e   :  { %3693 = vmatmul.mubr.msk.bf16.vlgmr.msra.gmra.mxu1 %vm479_vm4, %v1009_v9 }
 0x96f   :  { %3703 = vmatpush3.bf16.xpose.msra.mxu1 %v1163_v12  ;;  %3704 = vmatprep.mubr.msk.bf16.mxu1 %vm4205_vm2, %v4204_v38 }
 0x970   :  { %3714 = vmatprep.subr.bf16.mxu1 %v4204_v38 }
 0x976   :  { %3705 = vmatmul.mubr.msk.bf16.vlgmr.msra.gmra.mxu1 %vm381_vm3, %v1156_v13 }
 0x977   :  { %3716 = vmatprep.mubr.msk.bf16.mxu1 %vm4205_vm2, %v4204_v38 }
 0xa1f   :  { %v1050_v14 = vpop.f32.mrf.mxu0 }
 0xa21   :  { %v3688_v15 = vpop.f32.mrf.mxu0 }
 0xa23   :  { %v1053_v16 = vpop.f32.mrf.mxu0 }
 0xa24   :  { %v3909_v17 = vpack.i.bf16 %v1053_v16, %v1050_v14 }
 0xa25   :  { %v3689_v18 = vpop.f32.mrf.mxu0 }
 0xa27   :  { %v1148_v20 = vpop.f32.mrf.mxu0 }
 0xa28   :  { %v1206_v21 = vsel %vm479_vm4, %v1148_v20, -inf }
 0xa29   :  { %1207 = vmax.xlane.f32.xlu0 %v1206_v21  ;;  %v3700_v22 = vpop.f32.mrf.mxu0 }
 0xa2b   :  { %v1151_v23 = vpop.f32.mrf.mxu0 }
 0xa2c   :  { %v1209_v24 = vsel %vm479_vm4, %v1151_v23, -inf }
 0xa2d   :  { %1210 = vmax.xlane.f32.xlu1 %v1209_v24  ;;  %v3701_v26 = vpop.f32.mrf.mxu0  ;;  %v3980_v24 = vld [vmem:[%s5017_s2 + $0x70] sm:$0xff]  }
 0xa2e   :  { %v1097_v27 = vpop.f32.mrf.mxu1 }
 0xa30   :  { %v3694_v28 = vpop.f32.mrf.mxu1 }
 0xa32   :  { %v1100_v29 = vpop.f32.mrf.mxu1 }
 0xa33   :  { %v3914_v30 = vpack.i.bf16 %v1100_v29, %v1097_v27 }
 0xa34   :  { %v3695_v32 = vpop.f32.mrf.mxu1 }
 0xa36   :  { %v1199_v33 = vpop.f32.mrf.mxu1 }
 0xa37   :  { %v1212_v34 = vsel %vm479_vm4, %v1199_v33, -inf }
 0xa38   :  { %1213 = vmax.xlane.f32.xlu0 %v1212_v34  ;;  %v3706_v35 = vpop.f32.mrf.mxu1 }
 0xa3a   :  { %v1202_v36 = vpop.f32.mrf.mxu1 }
 0xa3b   :  { %v1215_v37 = vsel %vm479_vm4, %v1202_v36, -inf }
 0xa3c   :  { %1216 = vmax.xlane.f32.xlu0 %v1215_v37  ;;  %v3707_v40 = vpop.f32.mrf.mxu1 }
 0xab2   :  { %v1208_v41 = vpop.xlane.xlu0 %1207 }
 0xab3   :  { %v1218_v42 = vsub.f32 %v1148_v20, %v1208_v41 }
 0xab5   :  { %v1222_v43 = vmul.f32 1.442695, %v1218_v42 }
 0xab6   :  { %v1211_v44 = vpop.xlane.xlu1 %1210 }
 0xab7   :  { %4053 = vpow2.f32 %v1222_v43  ;;  %v1219_v45 = vsub.f32 %v1151_v23, %v1211_v44 }
 0xab9   :  { %v1224_v46 = vmul.f32 1.442695, %v1219_v45 }
 0xabb   :  { %4055 = vpow2.f32 %v1224_v46 }
 0xac1   :  { %v1214_v47 = vpop.xlane.xlu0 %1213 }
 0xac2   :  { %v1220_v49 = vsub.f32 %v1199_v33, %v1214_v47 }
 0xac4   :  { %v4054_v51 = vpop.eup %4053  ;;  %v1226_v53 = vmul.f32 1.442695, %v1220_v49 }
 0xac5   :  { %v1217_v55 = vpop.xlane.xlu0 %1216  ;;  %v1230_v57 = vsel %vm479_vm4, %v4054_v51, 0.0 }
 0xac6   :  { %4057 = vpow2.f32 %v1226_v53  ;;  %v1221_v59 = vsub.f32 %v1202_v36, %v1217_v55  ;;  %1231 = vadd.xlane.f32.xlu0 %v1230_v57 }
 0xac8   :  { %v4056_v60 = vpop.eup %4055  ;;  %v1228_v62 = vmul.f32 1.442695, %v1221_v59 }
 0xac9   :  { %v1233_v1 = vsel %vm479_vm4, %v4056_v60, 0.0 }
 0xaca   :  { %4059 = vpow2.f32 %v1228_v62  ;;  %1234 = vadd.xlane.f32.xlu1 %v1233_v1 }
 0xad3   :  { %v4058_v2 = vpop.eup %4057 }
 0xad4   :  { %v1236_v3 = vsel %vm479_vm4, %v4058_v2, 0.0 }
 0xad5   :  { %1237 = vadd.xlane.f32.xlu0 %v1236_v3 }
 0xad7   :  { %v4060_v4 = vpop.eup %4059 }
 0xad8   :  { %v1239_v5 = vsel %vm479_vm4, %v4060_v4, 0.0 }
 0xad9   :  { %1240 = vadd.xlane.f32.xlu1 %v1239_v5 }
 0xaea   :  { %1299 = vrot.lane.b32.xlu1 %v4364_v48, %s4216_s21 }
 0xaeb   :  { %1252 = vrot.lane.b32.xlu0 %v4366_v50, %s4216_s21 }
 0xaee   :  { %3900 = vrot.lane.b32.xlu1 %v3899_v0, %s4217_s22 }
 0xaef   :  { %3910 = vrot.lane.b32.xlu0 %v3909_v17, %s4218_s23  ;;  %v3979_v17 = vld [vmem:[%s5017_s2 + $0x78] sm:$0xff]  }
 0xaf2   :  { %3905 = vrot.lane.b32.xlu1 %v3904_v11, %s4217_s22 }
 0xaf6   :  { %3915 = vrot.lane.b32.xlu1 %v3914_v30, %s4218_s23 }
 0xb4f   :  { %v1232_v48 = vpop.xlane.xlu0 %1231 }
 0xb50   :  { %4061 = vrcp.f32 %v1232_v48 }
 0xb53   :  { %v1235_v6 = vpop.xlane.xlu1 %1234 }
 0xb54   :  { %4063 = vrcp.f32 %v1235_v6 }
 0xb5d   :  { %v4062_v7 = vpop.eup %4061 }
 0xb5e   :  { %v1238_v50 = vpop.xlane.xlu0 %1237  ;;  %v1246_v0 = vmul.f32 %v4062_v7, %v4054_v51 }
 0xb5f   :  { %4065 = vrcp.f32 %v1238_v50 }
 0xb61   :  { %v4064_v9 = vpop.eup %4063 }
 0xb62   :  { %v1241_v61 = vpop.xlane.xlu1 %1240  ;;  %v1253_v63 = vpop.permute.xlu0 %1252  ;;  %v1247_v12 = vmul.f32 %v4064_v9, %v4056_v60 }
 0xb63   :  { %4067 = vrcp.f32 %v1241_v61  ;;  %3709 = vmatpush3.bf16.msra.mxu0 %v1253_v63 }
 0xb64   :  { %v1250_v13 = vpack.c.bf16 %v1247_v12, %v1246_v0  ;;  %3720 = vmatprep.subr.bf16.mxu0 %v3979_v17 }
 0xb66   :  { %v1300_v14 = vpop.permute.xlu1 %1299  ;;  %3711 = vmatmul.mubr.msk.bf16.vlgmr.msra.gmra.mxu0 %vm479_vm4, %v1250_v13  ;;  %v3911_v35 = vpop.permute.xlu0 %3910 }
 0xb67   :  { %3715 = vmatpush3.bf16.msra.mxu1 %v1300_v14  ;;  %3721 = vmatpush3.bf16.msra.mxu0 %v3979_v17  ;;  %v3913_v40 = vunpack.i.h.bf16 %v3911_v35  ;;  %v3912_v41 = vunpack.i.l.bf16 %v3911_v35 }
 0xb68   :  { %3722 = vmatprep.subr.bf16.mxu0 %v3980_v24 }
 0xb6a   :  { %v3901_v32 = vpop.permute.xlu1 %3900 }
 0xb6b   :  { %3723 = vmatpush3.bf16.msra.mxu0 %v3980_v24  ;;  %v3903_v33 = vunpack.i.h.bf16 %v3901_v32  ;;  %v3902_v34 = vunpack.i.l.bf16 %v3901_v32  ;;  %v3981_v24 = vld [vmem:[%s5017_s2 + $0x88] sm:$0xff]  }
 0xb6c   :  { %v4066_v8 = vpop.eup %4065  ;;  %3728 = vmatprep.subr.bf16.mxu1 %v3981_v24 }
 0xb6d   :  { %v1248_v11 = vmul.f32 %v4066_v8, %v4058_v2  ;;  %v1395_v36 = vsel %vm381_vm3, %v4424_v54, %v3903_v33  ;;  %v1394_v37 = vsel %vm381_vm3, %v4422_v52, %v3902_v34 }
 0xb6e   :  { %v1398_v45 = vsel %vm479_vm4, %v1394_v37, %v3912_v41  ;;  %v1399_v46 = vsel %vm479_vm4, %v1395_v36, %v3913_v40  ;;  %v3906_v51 = vpop.permute.xlu1 %3905 }
 0xb6f   :  { %v3908_v52 = vunpack.i.h.bf16 %v3906_v51  ;;  %v3907_v55 = vunpack.i.l.bf16 %v3906_v51 }
 0xb70   :  { %v4068_v10 = vpop.eup %4067 }
 0xb71   :  { %v1249_v15 = vmul.f32 %v4068_v10, %v4060_v4  ;;  %v1397_v62 = vsel %vm381_vm3, %v4428_v58, %v3908_v52  ;;  %v1396_v1 = vsel %vm381_vm3, %v4426_v56, %v3907_v55  ;;  %v3453_v58 = vld [vmem:[%s5018_s3 + $0x3] ss:$0 sm:$0xff] }
 0xb72   :  { %v3916_v54 = vpop.permute.xlu1 %3915 }
 0xb73   :  { %v1251_v16 = vpack.c.bf16 %v1249_v15, %v1248_v11  ;;  %v3918_v57 = vunpack.i.h.bf16 %v3916_v54  ;;  %v3917_v59 = vunpack.i.l.bf16 %v3916_v54 }
 0xb75   :  { %3717 = vmatmul.mubr.msk.bf16.vlgmr.msra.gmra.mxu1 %vm479_vm4, %v1251_v16  ;;  %v1400_v4 = vsel %vm479_vm4, %v1396_v1, %v3917_v59  ;;  %v1401_v5 = vsel %vm479_vm4, %v1397_v62, %v3918_v57 }
 0xb76   :  { %3729 = vmatpush3.bf16.msra.mxu1 %v3981_v24 }
 0xc26   :  { %v1292_v18 = vpop.f32.mrf.mxu0 }
 0xc28   :  { %v3712_v20 = vpop.f32.mrf.mxu0 }
 0xc2a   :  { %v1295_v21 = vpop.f32.mrf.mxu0 }
 0xc2b   :  { %v3919_v22 = vpack.i.bf16 %v1295_v21, %v1292_v18 }
 0xc2c   :  { %v3713_v23 = vpop.f32.mrf.mxu0 }
 0xc2d   :  { %3920 = vrot.lane.b32.xlu0 %v3919_v22, %s4219_s25 }
 0xc35   :  { %v1339_v26 = vpop.f32.mrf.mxu1 }
 0xc37   :  { %v3718_v27 = vpop.f32.mrf.mxu1 }
 0xc39   :  { %v1342_v28 = vpop.f32.mrf.mxu1 }
 0xc3a   :  { %v3924_v29 = vpack.i.bf16 %v1342_v28, %v1339_v26  ;;  %v3982_v26 = vld [vmem:[%s5017_s2 + $0x80] sm:$0xff]  }
 0xc3b   :  { %v3719_v30 = vpop.f32.mrf.mxu1  ;;  %3730 = vmatprep.subr.bf16.mxu1 %v3982_v26 }
 0xc3c   :  { %3925 = vrot.lane.b32.xlu1 %v3924_v29, %s4219_s25  ;;  %3731 = vmatpush3.bf16.msra.mxu1 %v3982_v26 }
 0xc9f   :  { %v3921_v42 = vpop.permute.xlu0 %3920 }
 0xca0   :  { %v3923_v43 = vunpack.i.h.bf16 %v3921_v42  ;;  %v3922_v44 = vunpack.i.l.bf16 %v3921_v42 }
 0xca2   :  { %v1403_v47 = vsel %vm1402_vm5, %v1398_v45, %v3922_v44  ;;  %v1404_v49 = vsel %vm1402_vm5, %v1399_v46, %v3923_v43 }
 0xca3   :  { %v1407_v53 = vpack.c.bf16 %v1404_v49, %v1403_v47 }
 0xca5   :  { %3724 = vmatprep.mubr.msk.bf16.mxu0 %vm225_vm1, %v1407_v53 }
 0xcae   :  { %v3926_v60 = vpop.permute.xlu1 %3925 }
 0xcaf   :  { %v3928_v2 = vunpack.i.h.bf16 %v3926_v60  ;;  %v3927_v3 = vunpack.i.l.bf16 %v3926_v60 }
 0xcb1   :  { %v1406_v48 = vsel %vm1402_vm5, %v1401_v5, %v3928_v2  ;;  %v1405_v6 = vsel %vm1402_vm5, %v1400_v4, %v3927_v3  ;;  %v3458_v3 = vld [vmem:[%s5018_s3 + $0x4] ss:$0 sm:$0xff] }
 0xcb2   :  { %v1408_v50 = vpack.c.bf16 %v1406_v48, %v1405_v6 }
 0xcb4   :  { %3725 = vmatmul.mubr.msk.bf16.vlgmr.msra.gmra.mxu0 %vm225_vm1, %v1408_v50 }
 0xd74   :  { %v3726_v7 = vpop.f32.mrf.mxu0 }
 0xd75   :  { %v1474_v9 = vadd.f32 %v3726_v7, %v3453_v58 }
 0xd76   :  { %v1465_v56 = vpop.f32.mrf.mxu0 }
 0xd77   :  { %v4572_v61 = vadd.f32 %v1474_v9, %v4317_v31  ;;  %v1466_v63 = vadd.f32 %v3453_v58, %v1465_v56  ;;  %v3459_v9 = vld [vmem:[%s5018_s3 + $0x5] ss:$0 sm:$0xff] }
 0xd78   :  { %v3727_v0 = vpop.f32.mrf.mxu0 }
 0xd79   :  { %v4575_v12 = vadd.f32 %v1466_v63, %v4300_v19  ;;  %v1477_v13 = vadd.f32 %v3727_v0, %v3453_v58  ;;  %v1490_v14 = vsel %vm225_vm1, %v4572_v61, 0.0  ;;  %v1502_v21 = vmul.f32 %v4572_v61, %v4572_v61 }
 0xd7a   :  { %1491 = vadd.xlane.f32.xlu0 %v1490_v14  ;;  %v1468_v8 = vpop.f32.mrf.mxu0 }
 0xd7b   :  { %v1469_v10 = vadd.f32 %v3453_v58, %v1468_v8  ;;  %v4580_v11 = vadd.f32 %v1477_v13, %v4329_v39  ;;  %v1484_v31 = vsel %vm225_vm1, %v4575_v12, 0.0  ;;  %v1500_v39 = vmul.f32 %v4575_v12, %v4575_v12 }
 0xd7c   :  { %v1510_v23 = vsel %vm225_vm1, %v1502_v21, 0.0  ;;  %v3985_v21 = vld [vmem:[%s5017_s2 + $0x98] sm:$0xff]  }
 0xd7d   :  { %v4583_v15 = vadd.f32 %v1469_v10, %v4309_v25  ;;  %v1493_v17 = vsel %vm225_vm1, %v4580_v11, 0.0  ;;  %v1503_v18 = vmul.f32 %v4580_v11, %v4580_v11  ;;  %v1504_v20 = vsel %vm225_vm1, %v1500_v39, 0.0 }
 0xd7e   :  { %1485 = vadd.xlane.f32.xlu0 %v1484_v31 }
 0xd7f   :  { %v1487_v19 = vsel %vm225_vm1, %v4583_v15, 0.0  ;;  %v1501_v16 = vmul.f32 %v4583_v15, %v4583_v15  ;;  %v1513_v22 = vsel %vm225_vm1, %v1503_v18, 0.0  ;;  %v3983_v18 = vld [vmem:[%s5017_s2 + $0xa8] sm:$0xff]  }
 0xd80   :  { %1488 = vadd.xlane.f32.xlu1 %v1487_v19  ;;  %3736 = vmatprep.subr.bf16.mxu0 %v3983_v18 }
 0xd81   :  { %v1507_v25 = vsel %vm225_vm1, %v1501_v16, 0.0  ;;  %3737 = vmatpush3.bf16.msra.mxu0 %v3983_v18 }
 0xd82   :  { %1494 = vadd.xlane.f32.xlu0 %v1493_v17 }
 0xd84   :  { %1508 = vadd.xlane.f32.xlu1 %v1507_v25 }
 0xd86   :  { %1505 = vadd.xlane.f32.xlu0 %v1504_v20  ;;  %v3984_v20 = vld [vmem:[%s5017_s2 + $0xa0] sm:$0xff]  }
 0xd87   :  { %3738 = vmatprep.subr.bf16.mxu0 %v3984_v20 }
 0xd88   :  { %1514 = vadd.xlane.f32.xlu1 %v1513_v22  ;;  %3739 = vmatpush3.bf16.msra.mxu0 %v3984_v20  ;;  %v3986_v22 = vld [vmem:[%s5017_s2 + $0x90] sm:$0xff]  }
 0xd89   :  { %3740 = vmatprep.subr.bf16.mxu0 %v3985_v21 }
 0xd8a   :  { %1511 = vadd.xlane.f32.xlu0 %v1510_v23  ;;  %v3460_v23 = vld [vmem:[%s5018_s3 + $0x6] ss:$0 sm:$0xff] }
 0xd8c   :  { %3741 = vmatpush3.bf16.msra.mxu0 %v3985_v21 }
 0xd8d   :  { %3742 = vmatprep.subr.bf16.mxu0 %v3986_v22 }
 0xd90   :  { %3743 = vmatpush3.bf16.msra.mxu0 %v3986_v22 }
 0xd91   :  { %3762 = vmatprep.subr.bf16.mxu0 %v4204_v38 }
 0xe03   :  { %v1492_v27 = vpop.xlane.xlu0 %1491 }
 0xe04   :  { %v1498_v40 = vmul.f32 0.03125, %v1492_v27 }
 0xe06   :  { %v1522_v53 = vmul.f32 %v1498_v40, %v1498_v40  ;;  %v1538_v56 = vsub.f32 %v4572_v61, %v1498_v40 }
 0xe07   :  { %v1486_v28 = vpop.xlane.xlu0 %1485 }
 0xe08   :  { %v1496_v33 = vmul.f32 0.03125, %v1486_v28 }
 0xe09   :  { %v1489_v29 = vpop.xlane.xlu1 %1488 }
 0xe0a   :  { %v1497_v30 = vmul.f32 0.03125, %v1489_v29  ;;  %v1520_v42 = vmul.f32 %v1496_v33, %v1496_v33  ;;  %v1536_v4 = vsub.f32 %v4575_v12, %v1496_v33 }
 0xe0b   :  { %v1495_v32 = vpop.xlane.xlu0 %1494 }
 0xe0c   :  { %v1521_v35 = vmul.f32 %v1497_v30, %v1497_v30  ;;  %v1499_v36 = vmul.f32 0.03125, %v1495_v32  ;;  %v1537_v1 = vsub.f32 %v4583_v15, %v1497_v30 }
 0xe0d   :  { %v1509_v34 = vpop.xlane.xlu1 %1508 }
 0xe0e   :  { %v1517_v37 = vmul.f32 0.03125, %v1509_v34  ;;  %v1523_v46 = vmul.f32 %v1499_v36, %v1499_v36  ;;  %v1539_v6 = vsub.f32 %v4580_v11, %v1499_v36 }
 0xe0f   :  { %v1506_v41 = vpop.xlane.xlu0 %1505 }
 0xe10   :  { %v1525_v43 = vsub.f32 %v1517_v37, %v1521_v35  ;;  %v1516_v44 = vmul.f32 0.03125, %v1506_v41 }
 0xe11   :  { %v1515_v45 = vpop.xlane.xlu1 %1514 }
 0xe12   :  { %v1529_v47 = vadd.f32 1e-06, %v1525_v43  ;;  %v1524_v49 = vsub.f32 %v1516_v44, %v1520_v42  ;;  %v1519_v51 = vmul.f32 0.03125, %v1515_v45 }
 0xe13   :  { %v1512_v54 = vpop.xlane.xlu0 %1511 }
 0xe14   :  { %4069 = vrsqrt.f32 %v1529_v47  ;;  %v1528_v52 = vadd.f32 1e-06, %v1524_v49  ;;  %v1527_v55 = vsub.f32 %v1519_v51, %v1523_v46  ;;  %v1518_v57 = vmul.f32 0.03125, %v1512_v54 }
 0xe16   :  { %4071 = vrsqrt.f32 %v1528_v52  ;;  %v1531_v59 = vadd.f32 1e-06, %v1527_v55  ;;  %v1526_v60 = vsub.f32 %v1518_v57, %v1522_v53 }
 0xe18   :  { %4073 = vrsqrt.f32 %v1531_v59  ;;  %v1530_v62 = vadd.f32 1e-06, %v1526_v60 }
 0xe1a   :  { %4075 = vrsqrt.f32 %v1530_v62 }
 0xe21   :  { %v4070_v2 = vpop.eup %4069 }
 0xe22   :  { %v1541_v5 = vmul.f32 %v4070_v2, %v1537_v1 }
 0xe23   :  { %v4072_v48 = vpop.eup %4071 }
 0xe24   :  { %v1540_v50 = vmul.f32 %v4072_v48, %v1536_v4  ;;  %v1549_v58 = vmul.f32 %v3458_v3, %v1541_v5 }
 0xe25   :  { %v4074_v7 = vpop.eup %4073 }
 0xe26   :  { %v1543_v63 = vmul.f32 %v4074_v7, %v1539_v6  ;;  %v1548_v0 = vmul.f32 %v3458_v3, %v1540_v50  ;;  %v1557_v10 = vadd.f32 %v3459_v9, %v1549_v58 }
 0xe27   :  { %v4076_v13 = vpop.eup %4075 }
 0xe28   :  { %v1542_v14 = vmul.f32 %v4076_v13, %v1538_v56  ;;  %v1556_v8 = vadd.f32 %v3459_v9, %v1548_v0  ;;  %v1551_v31 = vmul.f32 %v3458_v3, %v1543_v63 }
 0xe2a   :  { %v1560_v19 = vpack.c.bf16 %v1557_v10, %v1556_v8  ;;  %v1550_v16 = vmul.f32 %v3458_v3, %v1542_v14  ;;  %v1559_v39 = vadd.f32 %v3459_v9, %v1551_v31  ;;  %v3465_v8 = vld [vmem:[%s5018_s3 + $0x7] ss:$0 sm:$0xff] }
 0xe2c   :  { %3732 = vmatprep.mubr.msk.bf16.mxu1 %vm225_vm1, %v1560_v19  ;;  %v1558_v17 = vadd.f32 %v3459_v9, %v1550_v16 }
 0xe2e   :  { %v1561_v25 = vpack.c.bf16 %v1559_v39, %v1558_v17 }
 0xe30   :  { %3733 = vmatmul.mubr.msk.bf16.vlgmr.msra.gmra.mxu1 %vm225_vm1, %v1561_v25 }
 0xef0   :  { %v3734_v24 = vpop.f32.mrf.mxu1 }
 0xef1   :  { %v1627_v26 = vadd.f32 %v3734_v24, %v3460_v23 }
 0xef2   :  { %v1618_v27 = vpop.f32.mrf.mxu1 }
 0xef3   :  { %v1639_v28 = vmul.f32 0.044715, %v1627_v26  ;;  %v1619_v29 = vadd.f32 %v3460_v23, %v1618_v27  ;;  %v1635_v7 = vmul.f32 0.5, %v1627_v26 }
 0xef4   :  { %v3735_v30 = vpop.f32.mrf.mxu1 }
 0xef5   :  { %v1643_v32 = vmul.f32 %v1639_v28, %v1627_v26  ;;  %v1637_v33 = vmul.f32 0.044715, %v1619_v29  ;;  %v1630_v34 = vadd.f32 %v3735_v30, %v3460_v23  ;;  %v1633_v6 = vmul.f32 0.5, %v1619_v29 }
 0xef6   :  { %v1621_v35 = vpop.f32.mrf.mxu1 }
 0xef7   :  { %v1647_v36 = vmul.f32 %v1643_v32, %v1627_v26  ;;  %v1641_v37 = vmul.f32 %v1637_v33, %v1619_v29  ;;  %v1640_v40 = vmul.f32 0.044715, %v1630_v34  ;;  %v1622_v41 = vadd.f32 %v3460_v23, %v1621_v35  ;;  %v3988_v35 = vld [vmem:[%s5017_s2 + $0xb0] sm:$0xff]  }
 0xef8   :  { %v1636_v5 = vmul.f32 0.5, %v1630_v34 }
 0xef9   :  { %v1651_v42 = vadd.f32 %v1647_v36, %v1627_v26  ;;  %v1645_v43 = vmul.f32 %v1641_v37, %v1619_v29  ;;  %v1644_v44 = vmul.f32 %v1640_v40, %v1630_v34  ;;  %v1638_v45 = vmul.f32 0.044715, %v1622_v41 }
 0xefa   :  { %v1634_v50 = vmul.f32 0.5, %v1622_v41 }
 0xefb   :  { %v1655_v46 = vmul.f32 0.7978845, %v1651_v42  ;;  %v1649_v47 = vadd.f32 %v1645_v43, %v1619_v29  ;;  %v1648_v49 = vmul.f32 %v1644_v44, %v1630_v34  ;;  %v1642_v51 = vmul.f32 %v1638_v45, %v1622_v41 }
 0xefd   :  { %v1653_v53 = vmul.f32 0.7978845, %v1649_v47  ;;  %v1652_v54 = vadd.f32 %v1648_v49, %v1630_v34  ;;  %v1646_v52 = vmul.f32 %v1642_v51, %v1622_v41  ;;  %4077 = vtanh.f32 %v1655_v46  ;;  %v3987_v34 = vld [vmem:[%s5017_s2 + $0xb8] sm:$0xff]  }
 0xefe   :  { %3748 = vmatprep.subr.bf16.mxu1 %v3987_v34 }
 0xeff   :  { %v1656_v55 = vmul.f32 0.7978845, %v1652_v54  ;;  %4079 = vtanh.f32 %v1653_v53  ;;  %v1650_v57 = vadd.f32 %v1646_v52, %v1622_v41  ;;  %3749 = vmatpush3.bf16.msra.mxu1 %v3987_v34 }
 0xf00   :  { %3750 = vmatprep.subr.bf16.mxu1 %v3988_v35 }
 0xf01   :  { %4081 = vtanh.f32 %v1656_v55  ;;  %v1654_v59 = vmul.f32 0.7978845, %v1650_v57 }
 0xf03   :  { %4083 = vtanh.f32 %v1654_v59  ;;  %3751 = vmatpush3.bf16.msra.mxu1 %v3988_v35 }
 0xf04   :  { %3756 = vmatprep.subr.bf16.mxu1 %v4204_v38 }
 0xf0a   :  { %v4078_v60 = vpop.eup %4077 }
 0xf0b   :  { %v1663_v48 = vadd.f32 1.0, %v4078_v60 }
 0xf0c   :  { %v4080_v62 = vpop.eup %4079 }
 0xf0d   :  { %v1661_v3 = vadd.f32 1.0, %v4080_v62  ;;  %v1667_v0 = vmul.f32 %v1663_v48, %v1635_v7 }
 0xf0e   :  { %v4082_v1 = vpop.eup %4081 }
 0xf0f   :  { %v1664_v2 = vadd.f32 1.0, %v4082_v1  ;;  %v1665_v56 = vmul.f32 %v1661_v3, %v1633_v6 }
 0xf10   :  { %v4084_v4 = vpop.eup %4083 }
 0xf11   :  { %v1662_v58 = vadd.f32 1.0, %v4084_v4  ;;  %v1668_v9 = vmul.f32 %v1664_v2, %v1636_v5 }
 0xf13   :  { %v1666_v63 = vmul.f32 %v1662_v58, %v1634_v50  ;;  %v1670_v14 = vpack.c.bf16 %v1668_v9, %v1667_v0 }
 0xf15   :  { %v1669_v13 = vpack.c.bf16 %v1666_v63, %v1665_v56  ;;  %v3472_v56 = vld [vmem:[%s5018_s3 + $0x8] ss:$0 sm:$0xff] }
 0xf17   :  { %3744 = vmatprep.mubr.msk.bf16.mxu0 %vm141_vm0, %v1669_v13 }
 0xf18   :  { %3745 = vmatmul.mubr.msk.bf16.vlgmr.msra.gmra.mxu0 %vm141_vm0, %v1670_v14 }
 0xf19   :  { %3764 = vmatprep.mubr.msk.bf16.mxu0 %vm4205_vm2, %v4204_v38 }
 0xfd8   :  { %v3746_v10 = vpop.f32.mrf.mxu0 }
 0xfd9   :  { %v1748_v31 = vadd.f32 %v3746_v10, %v3465_v8 }
 0xfda   :  { %v1739_v19 = vpop.f32.mrf.mxu0 }
 0xfdb   :  { %v4645_v16 = vadd.f32 %v1748_v31, %v4572_v61  ;;  %v1740_v17 = vadd.f32 %v3465_v8, %v1739_v19  ;;  %v3473_v19 = vld [vmem:[%s5018_s3 + $0x9] ss:$0 sm:$0xff] }
 0xfdc   :  { %v3747_v39 = vpop.f32.mrf.mxu0 }
 0xfdd   :  { %v4648_v25 = vadd.f32 %v1740_v17, %v4575_v12  ;;  %v1751_v18 = vadd.f32 %v3747_v39, %v3465_v8  ;;  %v1792_v20 = vsel %vm225_vm1, %v4645_v16, 0.0  ;;  %v1804_v28 = vmul.f32 %v4645_v16, %v4645_v16 }
 0xfde   :  { %1793 = vadd.xlane.f32.xlu0 %v1792_v20  ;;  %v1742_v21 = vpop.f32.mrf.mxu0 }
 0xfdf   :  { %v4653_v22 = vadd.f32 %v1751_v18, %v4580_v11  ;;  %v1743_v23 = vadd.f32 %v3465_v8, %v1742_v21  ;;  %v1786_v12 = vsel %vm225_vm1, %v4648_v25, 0.0  ;;  %v1802_v26 = vmul.f32 %v4648_v25, %v4648_v25 }
 0xfe0   :  { %v1812_v30 = vsel %vm225_vm1, %v1804_v28, 0.0 }
 0xfe1   :  { %v4656_v24 = vadd.f32 %v1743_v23, %v4583_v15  ;;  %v1795_v61 = vsel %vm225_vm1, %v4653_v22, 0.0  ;;  %v1806_v11 = vsel %vm225_vm1, %v1802_v26, 0.0  ;;  %v1805_v32 = vmul.f32 %v4653_v22, %v4653_v22 }
 0xfe2   :  { %1796 = vadd.xlane.f32.xlu1 %v1795_v61  ;;  %1787 = vadd.xlane.f32.xlu0 %v1786_v12 }
 0xfe3   :  { %v1789_v27 = vsel %vm225_vm1, %v4656_v24, 0.0  ;;  %v1803_v15 = vmul.f32 %v4656_v24, %v4656_v24  ;;  %v1815_v33 = vsel %vm225_vm1, %v1805_v32, 0.0 }
 0xfe5   :  { %v1809_v29 = vsel %vm225_vm1, %v1803_v15, 0.0 }
 0xfe6   :  { %1790 = vadd.xlane.f32.xlu1 %v1789_v27  ;;  %1807 = vadd.xlane.f32.xlu0 %v1806_v11 }
 0xfea   :  { %1810 = vadd.xlane.f32.xlu1 %v1809_v29  ;;  %1813 = vadd.xlane.f32.xlu0 %v1812_v30  ;;  %v3474_v29 = vld [vmem:[%s5018_s3 + $0xa] ss:$0 sm:$0xff] }
 0xfee   :  { %1816 = vadd.xlane.f32.xlu1 %v1815_v33 }
0x1067   :  { %v1794_v36 = vpop.xlane.xlu0 %1793 }
0x1068   :  { %v1800_v42 = vmul.f32 0.03125, %v1794_v36 }
0x106a   :  { %v1824_v51 = vmul.f32 %v1800_v42, %v1800_v42  ;;  %v1840_v13 = vsub.f32 %v4645_v16, %v1800_v42 }
0x106b   :  { %v1797_v37 = vpop.xlane.xlu1 %1796  ;;  %v1788_v40 = vpop.xlane.xlu0 %1787 }
0x106c   :  { %v1798_v41 = vmul.f32 0.03125, %v1788_v40  ;;  %v1801_v53 = vmul.f32 0.03125, %v1797_v37 }
0x106e   :  { %v1822_v45 = vmul.f32 %v1798_v41, %v1798_v41  ;;  %v1825_v3 = vmul.f32 %v1801_v53, %v1801_v53  ;;  %v1838_v58 = vsub.f32 %v4648_v25, %v1798_v41  ;;  %v1841_v17 = vsub.f32 %v4653_v22, %v1801_v53 }
0x106f   :  { %v1791_v43 = vpop.xlane.xlu1 %1790  ;;  %v1808_v44 = vpop.xlane.xlu0 %1807 }
0x1070   :  { %v1799_v46 = vmul.f32 0.03125, %v1791_v43  ;;  %v1818_v47 = vmul.f32 0.03125, %v1808_v44 }
0x1072   :  { %v1826_v49 = vsub.f32 %v1818_v47, %v1822_v45  ;;  %v1823_v55 = vmul.f32 %v1799_v46, %v1799_v46  ;;  %v1839_v63 = vsub.f32 %v4656_v24, %v1799_v46 }
0x1073   :  { %v1811_v54 = vpop.xlane.xlu1 %1810  ;;  %v1814_v52 = vpop.xlane.xlu0 %1813 }
0x1074   :  { %v1830_v57 = vadd.f32 1e-06, %v1826_v49  ;;  %v1819_v59 = vmul.f32 0.03125, %v1811_v54  ;;  %v1820_v60 = vmul.f32 0.03125, %v1814_v52 }
0x1076   :  { %4085 = vrsqrt.f32 %v1830_v57  ;;  %v1827_v62 = vsub.f32 %v1819_v59, %v1823_v55  ;;  %v1828_v1 = vsub.f32 %v1820_v60, %v1824_v51 }
0x1077   :  { %v1817_v2 = vpop.xlane.xlu1 %1816 }
0x1078   :  { %v1831_v4 = vadd.f32 1e-06, %v1827_v62  ;;  %v1832_v5 = vadd.f32 1e-06, %v1828_v1  ;;  %v1821_v48 = vmul.f32 0.03125, %v1817_v2 }
0x107a   :  { %4087 = vrsqrt.f32 %v1831_v4  ;;  %v1829_v6 = vsub.f32 %v1821_v48, %v1825_v3 }
0x107b   :  { %4089 = vrsqrt.f32 %v1832_v5 }
0x107c   :  { %v1833_v50 = vadd.f32 1e-06, %v1829_v6 }
0x107e   :  { %4091 = vrsqrt.f32 %v1833_v50 }
0x1083   :  { %v4086_v7 = vpop.eup %4085 }
0x1084   :  { %v1842_v9 = vmul.f32 %v4086_v7, %v1838_v58 }
0x1086   :  { %v1850_v10 = vmul.f32 %v3472_v56, %v1842_v9 }
0x1087   :  { %v4088_v0 = vpop.eup %4087 }
0x1088   :  { %v4090_v14 = vpop.eup %4089  ;;  %v1843_v8 = vmul.f32 %v4088_v0, %v1839_v63  ;;  %v1858_v21 = vadd.f32 %v3473_v19, %v1850_v10 }
0x1089   :  { %v1844_v31 = vmul.f32 %v4090_v14, %v1840_v13 }
0x108a   :  { %v1851_v39 = vmul.f32 %v3472_v56, %v1843_v8 }
0x108b   :  { %v4092_v18 = vpop.eup %4091  ;;  %v1852_v61 = vmul.f32 %v3472_v56, %v1844_v31 }
0x108c   :  { %v1845_v20 = vmul.f32 %v4092_v18, %v1841_v17  ;;  %v1859_v23 = vadd.f32 %v3473_v19, %v1851_v39 }
0x108d   :  { %v1860_v27 = vadd.f32 %v3473_v19, %v1852_v61 }
0x108e   :  { %v1862_v12 = vpack.c.bf16 %v1859_v23, %v1858_v21  ;;  %v1853_v26 = vmul.f32 %v3472_v56, %v1845_v20 }
0x1090   :  { %3752 = vmatprep.mubr.msk.bf16.mxu1 %vm225_vm1, %v1862_v12  ;;  %v1861_v11 = vadd.f32 %v3473_v19, %v1853_v26 }
0x1092   :  { %v1863_v15 = vpack.c.bf16 %v1861_v11, %v1860_v27 }
0x1094   :  { %3753 = vmatmul.mubr.msk.bf16.vlgmr.msra.gmra.mxu1 %vm225_vm1, %v1863_v15 }
0x1095   :  { %3758 = vmatprep.mubr.msk.bf16.mxu1 %vm4205_vm2, %v4204_v38 }
0x1154   :  { %v3754_v28 = vpop.f32.mrf.mxu1 }
0x1155   :  { %v1929_v33 = vadd.f32 %v3754_v28, %v3474_v29 }
0x1156   :  { %v1920_v30 = vpop.f32.mrf.mxu1 }
0x1157   :  { %v1921_v36 = vadd.f32 %v3474_v29, %v1920_v30 }
0x1158   :  { %v3755_v32 = vpop.f32.mrf.mxu1 }
0x1159   :  { %v1932_v34 = vadd.f32 %v3755_v32, %v3474_v29 }
0x115a   :  { %v1923_v35 = vpop.f32.mrf.mxu1 }
0x115b   :  { %v4700_v37 = vpack.c.bf16 %v1932_v34, %v1929_v33  ;;  %v1924_v40 = vadd.f32 %v3474_v29, %v1923_v35 }
0x115d   :  { %v4702_v41 = vpack.c.bf16 %v1924_v40, %v1921_v36  ;;  %1988 = vrot.lane.b32.xlu1 %v4700_v37, %s4206_s11 }
0x115f   :  { %1938 = vrot.lane.b32.xlu0 %v4702_v41, %s4206_s11 }
0x11cf   :  { %v1989_v42 = vpop.permute.xlu1 %1988 }
0x11d0   :  { %v1994_v43 = vsel %vm381_vm3, %v1989_v42, 0 }
0x11d1   :  { %3763 = vmatpush3.bf16.xpose.msra.mxu0 %v1994_v43  ;;  %v1939_v44 = vpop.permute.xlu0 %1938 }
0x11d2   :  { %v1944_v45 = vsel %vm381_vm3, %v1939_v44, 0  ;;  %3774 = vmatprep.subr.bf16.mxu0 %v4204_v38 }
0x11d3   :  { %3757 = vmatpush3.bf16.xpose.msra.mxu1 %v1944_v45 }
0x11d4   :  { %3768 = vmatprep.subr.bf16.mxu1 %v4204_v38 }
0x11d8   :  { %3765 = vmatmul.mubr.msk.bf16.vlgmr.msra.gmra.mxu0 %vm381_vm3, %v4700_v37 }
0x11d9   :  { %3776 = vmatprep.mubr.msk.bf16.mxu0 %vm4205_vm2, %v4204_v38 }
0x11da   :  { %3759 = vmatmul.mubr.msk.bf16.vlgmr.msra.gmra.mxu1 %vm381_vm3, %v4702_v41 }
0x11db   :  { %3770 = vmatprep.mubr.msk.bf16.mxu1 %vm4205_vm2, %v4204_v38 }
0x1298   :  { %v2030_v46 = vpop.f32.mrf.mxu0 }
0x1299   :  { %v2043_v62 = vsel %vm479_vm4, %v2030_v46, -inf }
0x129a   :  { %v1980_v47 = vpop.f32.mrf.mxu1  ;;  %v3766_v49 = vpop.f32.mrf.mxu0 }
0x129b   :  { %v2037_v51 = vsel %vm479_vm4, %v1980_v47, -inf }
0x129c   :  { %v2033_v53 = vpop.f32.mrf.mxu0  ;;  %2038 = vmax.xlane.f32.xlu1 %v2037_v51  ;;  %v3760_v54 = vpop.f32.mrf.mxu1 }
0x129d   :  { %v2046_v57 = vsel %vm479_vm4, %v2033_v53, -inf }
0x129e   :  { %v1983_v52 = vpop.f32.mrf.mxu1  ;;  %v3767_v55 = vpop.f32.mrf.mxu0 }
0x129f   :  { %v2040_v59 = vsel %vm479_vm4, %v1983_v52, -inf }
0x12a0   :  { %2047 = vmax.xlane.f32.xlu1 %v2046_v57  ;;  %2041 = vmax.xlane.f32.xlu0 %v2040_v59  ;;  %v3761_v60 = vpop.f32.mrf.mxu1 }
0x12a4   :  { %2044 = vmax.xlane.f32.xlu0 %v2043_v62 }
0x12b1   :  { %2130 = vrot.lane.b32.xlu1 %v4700_v37, %s4207_s12 }
0x12b5   :  { %2179 = vrot.lane.b32.xlu1 %v4702_v41, %s4208_s13 }
0x1325   :  { %v2039_v1 = vpop.xlane.xlu1 %2038 }
0x1326   :  { %v2049_v48 = vsub.f32 %v1980_v47, %v2039_v1 }
0x1328   :  { %v2053_v56 = vmul.f32 1.442695, %v2049_v48 }
0x1329   :  { %v2048_v2 = vpop.xlane.xlu1 %2047  ;;  %v2042_v3 = vpop.xlane.xlu0 %2041 }
0x132a   :  { %v2052_v4 = vsub.f32 %v2033_v53, %v2048_v2  ;;  %v2050_v5 = vsub.f32 %v1983_v52, %v2042_v3 }
0x132c   :  { %v2059_v6 = vmul.f32 1.442695, %v2052_v4  ;;  %v2055_v50 = vmul.f32 1.442695, %v2050_v5 }
0x132d   :  { %v2131_v58 = vpop.permute.xlu1 %2130  ;;  %v2045_v7 = vpop.xlane.xlu0 %2044 }
0x132e   :  { %4093 = vpow2.f32 %v2059_v6  ;;  %v2051_v9 = vsub.f32 %v2030_v46, %v2045_v7  ;;  %3775 = vmatpush3.bf16.msra.mxu0 %v2131_v58 }
0x132f   :  { %3786 = vmatprep.subr.bf16.mxu0 %v4204_v38  ;;  %4095 = vpow2.f32 %v2055_v50 }
0x1330   :  { %v2057_v63 = vmul.f32 1.442695, %v2051_v9 }
0x1331   :  { %v2180_v39 = vpop.permute.xlu1 %2179 }
0x1332   :  { %4097 = vpow2.f32 %v2057_v63  ;;  %v2185_v36 = vsel %vm381_vm3, %v2180_v39, 0 }
0x1333   :  { %4099 = vpow2.f32 %v2053_v56 }
0x133b   :  { %v4094_v0 = vpop.eup %4093 }
0x133c   :  { %v2070_v13 = vsel %vm479_vm4, %v4094_v0, 0.0  ;;  %v4096_v14 = vpop.eup %4095 }
0x133d   :  { %2071 = vadd.xlane.f32.xlu1 %v2070_v13  ;;  %v2064_v10 = vsel %vm479_vm4, %v4096_v14, 0.0 }
0x133f   :  { %v4098_v8 = vpop.eup %4097 }
0x1340   :  { %v2067_v31 = vsel %vm479_vm4, %v4098_v8, 0.0  ;;  %v4100_v19 = vpop.eup %4099 }
0x1341   :  { %2065 = vadd.xlane.f32.xlu1 %v2064_v10  ;;  %2068 = vadd.xlane.f32.xlu0 %v2067_v31  ;;  %v2061_v17 = vsel %vm479_vm4, %v4100_v19, 0.0 }
0x1345   :  { %2062 = vadd.xlane.f32.xlu0 %v2061_v17 }
0x1352   :  { %2230 = vrot.lane.b32.xlu1 %v4700_v37, %s4208_s13 }
0x1356   :  { %2228 = vrot.lane.b32.xlu1 %v4700_v37, %s4209_s14 }
0x135b   :  { %2083 = vrot.lane.b32.xlu0 %v4702_v41, %s4207_s12 }
0x135f   :  { %2177 = vrot.lane.b32.xlu0 %v4702_v41, %s4209_s14 }
0x13c6   :  { %v2072_v18 = vpop.xlane.xlu1 %2071 }
0x13c7   :  { %4101 = vrcp.f32 %v2072_v18 }
0x13ca   :  { %v2066_v20 = vpop.xlane.xlu1 %2065  ;;  %v2069_v21 = vpop.xlane.xlu0 %2068 }
0x13cb   :  { %4103 = vrcp.f32 %v2069_v21 }
0x13cc   :  { %4105 = vrcp.f32 %v2066_v20 }
0x13ce   :  { %v2063_v23 = vpop.xlane.xlu0 %2062  ;;  %v2231_v28 = vpop.permute.xlu1 %2230 }
0x13cf   :  { %4107 = vrcp.f32 %v2063_v23  ;;  %v2236_v34 = vsel %vm381_vm3, %v2231_v28, 0 }
0x13d2   :  { %v2084_v61 = vpop.permute.xlu0 %2083  ;;  %v2229_v40 = vpop.permute.xlu1 %2228 }
0x13d3   :  { %3769 = vmatpush3.bf16.msra.mxu1 %v2084_v61 }
0x13d4   :  { %3780 = vmatprep.subr.bf16.mxu1 %v4204_v38  ;;  %v4102_v12 = vpop.eup %4101 }
0x13d5   :  { %v2080_v15 = vmul.f32 %v4102_v12, %v4094_v0 }
0x13d6   :  { %v2178_v42 = vpop.permute.xlu0 %2177 }
0x13d8   :  { %v4104_v26 = vpop.eup %4103 }
0x13d9   :  { %v4106_v27 = vpop.eup %4105  ;;  %v2079_v11 = vmul.f32 %v4104_v26, %v4098_v8 }
0x13da   :  { %v2078_v33 = vmul.f32 %v4106_v27, %v4096_v14 }
0x13db   :  { %v2082_v30 = vpack.c.bf16 %v2080_v15, %v2079_v11 }
0x13dc   :  { %v4108_v29 = vpop.eup %4107 }
0x13dd   :  { %v2077_v32 = vmul.f32 %v4108_v29, %v4100_v19  ;;  %3777 = vmatmul.mubr.msk.bf16.vlgmr.msra.gmra.mxu0 %vm479_vm4, %v2082_v30 }
0x13de   :  { %3787 = vmatpush3.bf16.xpose.msra.mxu0 %v2236_v34  ;;  %3788 = vmatprep.mubr.msk.bf16.mxu0 %vm4205_vm2, %v4204_v38 }
0x13df   :  { %v2081_v35 = vpack.c.bf16 %v2078_v33, %v2077_v32  ;;  %3798 = vmatprep.subr.bf16.mxu0 %v4204_v38 }
0x13e1   :  { %3771 = vmatmul.mubr.msk.bf16.vlgmr.msra.gmra.mxu1 %vm479_vm4, %v2081_v35 }
0x13e2   :  { %3781 = vmatpush3.bf16.xpose.msra.mxu1 %v2185_v36  ;;  %3782 = vmatprep.mubr.msk.bf16.mxu1 %vm4205_vm2, %v4204_v38 }
0x13e3   :  { %3792 = vmatprep.subr.bf16.mxu1 %v4204_v38 }
0x13e5   :  { %3789 = vmatmul.mubr.msk.bf16.vlgmr.msra.gmra.mxu0 %vm381_vm3, %v2229_v40 }
0x13e6   :  { %3800 = vmatprep.mubr.msk.bf16.mxu0 %vm4205_vm2, %v4204_v38 }
0x13e9   :  { %3783 = vmatmul.mubr.msk.bf16.vlgmr.msra.gmra.mxu1 %vm381_vm3, %v2178_v42 }
0x13ea   :  { %3794 = vmatprep.mubr.msk.bf16.mxu1 %vm4205_vm2, %v4204_v38 }
0x149d   :  { %v4758_v43 = vpop.f32.mrf.mxu0 }
0x149f   :  { %v3778_v44 = vpop.f32.mrf.mxu0 }
0x14a1   :  { %v4760_v45 = vpop.f32.mrf.mxu1  ;;  %v4762_v46 = vpop.f32.mrf.mxu0 }
0x14a3   :  { %v3772_v47 = vpop.f32.mrf.mxu1  ;;  %v3779_v49 = vpop.f32.mrf.mxu0 }
0x14a5   :  { %v4764_v51 = vpop.f32.mrf.mxu1  ;;  %v2272_v53 = vpop.f32.mrf.mxu0 }
0x14a6   :  { %v2285_v2 = vsel %vm479_vm4, %v2272_v53, -inf }
0x14a7   :  { %v3773_v54 = vpop.f32.mrf.mxu1  ;;  %v3790_v52 = vpop.f32.mrf.mxu0 }
0x14a9   :  { %v2221_v55 = vpop.f32.mrf.mxu1  ;;  %v2275_v57 = vpop.f32.mrf.mxu0 }
0x14aa   :  { %v2279_v59 = vsel %vm479_vm4, %v2221_v55, -inf  ;;  %v2288_v5 = vsel %vm479_vm4, %v2275_v57, -inf }
0x14ab   :  { %2280 = vmax.xlane.f32.xlu0 %v2279_v59  ;;  %v3784_v60 = vpop.f32.mrf.mxu1  ;;  %v3791_v62 = vpop.f32.mrf.mxu0 }
0x14ad   :  { %v2224_v1 = vpop.f32.mrf.mxu1 }
0x14ae   :  { %v2282_v3 = vsel %vm479_vm4, %v2224_v1, -inf }
0x14af   :  { %2286 = vmax.xlane.f32.xlu0 %v2285_v2  ;;  %2283 = vmax.xlane.f32.xlu1 %v2282_v3  ;;  %v3785_v4 = vpop.f32.mrf.mxu1 }
0x14b3   :  { %2289 = vmax.xlane.f32.xlu0 %v2288_v5 }
0x14c0   :  { %2372 = vrot.lane.b32.xlu1 %v4700_v37, %s4210_s15 }
0x14c4   :  { %2421 = vrot.lane.b32.xlu1 %v4702_v41, %s4211_s16 }
0x1534   :  { %v2281_v48 = vpop.xlane.xlu0 %2280 }
0x1535   :  { %v2291_v6 = vsub.f32 %v2221_v55, %v2281_v48 }
0x1537   :  { %v2295_v9 = vmul.f32 1.442695, %v2291_v6 }
0x1538   :  { %v2287_v50 = vpop.xlane.xlu0 %2286  ;;  %v2284_v58 = vpop.xlane.xlu1 %2283 }
0x1539   :  { %v2293_v7 = vsub.f32 %v2272_v53, %v2287_v50  ;;  %v2292_v63 = vsub.f32 %v2224_v1, %v2284_v58 }
0x153b   :  { %v2299_v56 = vmul.f32 1.442695, %v2293_v7  ;;  %v2297_v8 = vmul.f32 1.442695, %v2292_v63 }
0x153c   :  { %v2290_v0 = vpop.xlane.xlu0 %2289  ;;  %v2373_v13 = vpop.permute.xlu1 %2372 }
0x153d   :  { %4109 = vpow2.f32 %v2299_v56  ;;  %v2294_v14 = vsub.f32 %v2275_v57, %v2290_v0  ;;  %3799 = vmatpush3.bf16.msra.mxu0 %v2373_v13 }
0x153e   :  { %3810 = vmatprep.subr.bf16.mxu0 %v4204_v38  ;;  %4111 = vpow2.f32 %v2295_v9 }
0x153f   :  { %v2301_v10 = vmul.f32 1.442695, %v2294_v14 }
0x1540   :  { %v2422_v61 = vpop.permute.xlu1 %2421 }
0x1541   :  { %4113 = vpow2.f32 %v2301_v10  ;;  %v2427_v49 = vsel %vm381_vm3, %v2422_v61, 0 }
0x1542   :  { %4115 = vpow2.f32 %v2297_v8 }
0x154a   :  { %v4110_v31 = vpop.eup %4109 }
0x154b   :  { %v2309_v19 = vsel %vm479_vm4, %v4110_v31, 0.0  ;;  %v4112_v17 = vpop.eup %4111 }
0x154c   :  { %2310 = vadd.xlane.f32.xlu0 %v2309_v19  ;;  %v2303_v18 = vsel %vm479_vm4, %v4112_v17, 0.0 }
0x154e   :  { %v4114_v39 = vpop.eup %4113 }
0x154f   :  { %v2312_v20 = vsel %vm479_vm4, %v4114_v39, 0.0  ;;  %v4116_v21 = vpop.eup %4115 }
0x1550   :  { %2304 = vadd.xlane.f32.xlu0 %v2303_v18  ;;  %2313 = vadd.xlane.f32.xlu1 %v2312_v20  ;;  %v2306_v23 = vsel %vm479_vm4, %v4116_v21, 0.0 }
0x1554   :  { %2307 = vadd.xlane.f32.xlu1 %v2306_v23 }
0x1565   :  { %2472 = vrot.lane.b32.xlu1 %v4700_v37, %s4211_s16 }
0x1566   :  { %2325 = vrot.lane.b32.xlu0 %v4702_v41, %s4210_s15 }
0x1569   :  { %2470 = vrot.lane.b32.xlu1 %v4700_v37, %s4212_s17 }
0x156a   :  { %2419 = vrot.lane.b32.xlu0 %v4702_v41, %s4212_s17 }
0x15d5   :  { %v2311_v12 = vpop.xlane.xlu0 %2310 }
0x15d6   :  { %4117 = vrcp.f32 %v2311_v12 }
0x15d9   :  { %v2305_v26 = vpop.xlane.xlu0 %2304  ;;  %v2314_v27 = vpop.xlane.xlu1 %2313 }
0x15da   :  { %4119 = vrcp.f32 %v2314_v27 }
0x15db   :  { %4121 = vrcp.f32 %v2305_v26 }
0x15dd   :  { %v2326_v11 = vpop.permute.xlu0 %2325  ;;  %v2308_v15 = vpop.xlane.xlu1 %2307 }
0x15de   :  { %4123 = vrcp.f32 %v2308_v15  ;;  %3793 = vmatpush3.bf16.msra.mxu1 %v2326_v11 }
0x15df   :  { %3804 = vmatprep.subr.bf16.mxu1 %v4204_v38 }
0x15e1   :  { %v2473_v34 = vpop.permute.xlu1 %2472  ;;  %v2420_v54 = vpop.permute.xlu0 %2419 }
0x15e2   :  { %v2478_v44 = vsel %vm381_vm3, %v2473_v34, 0 }
0x15e3   :  { %v4118_v28 = vpop.eup %4117 }
0x15e4   :  { %v2321_v32 = vmul.f32 %v4118_v28, %v4110_v31 }
0x15e5   :  { %v2471_v53 = vpop.permute.xlu1 %2470 }
0x15e7   :  { %v4120_v29 = vpop.eup %4119 }
0x15e8   :  { %v4122_v30 = vpop.eup %4121  ;;  %v2322_v33 = vmul.f32 %v4120_v29, %v4114_v39 }
0x15e9   :  { %v2319_v40 = vmul.f32 %v4122_v30, %v4112_v17 }
0x15ea   :  { %v2324_v36 = vpack.c.bf16 %v2322_v33, %v2321_v32 }
0x15eb   :  { %v4124_v35 = vpop.eup %4123 }
0x15ec   :  { %v2320_v42 = vmul.f32 %v4124_v35, %v4116_v21  ;;  %3801 = vmatmul.mubr.msk.bf16.vlgmr.msra.gmra.mxu0 %vm479_vm4, %v2324_v36 }
0x15ed   :  { %3811 = vmatpush3.bf16.xpose.msra.mxu0 %v2478_v44  ;;  %3812 = vmatprep.mubr.msk.bf16.mxu0 %vm4205_vm2, %v4204_v38 }
0x15ee   :  { %v2323_v47 = vpack.c.bf16 %v2320_v42, %v2319_v40  ;;  %3822 = vmatprep.subr.bf16.mxu0 %v4204_v38 }
0x15f0   :  { %3795 = vmatmul.mubr.msk.bf16.vlgmr.msra.gmra.mxu1 %vm479_vm4, %v2323_v47 }
0x15f1   :  { %3805 = vmatpush3.bf16.xpose.msra.mxu1 %v2427_v49  ;;  %3806 = vmatprep.mubr.msk.bf16.mxu1 %vm4205_vm2, %v4204_v38 }
0x15f2   :  { %3816 = vmatprep.subr.bf16.mxu1 %v4204_v38 }
0x15f4   :  { %3813 = vmatmul.mubr.msk.bf16.vlgmr.msra.gmra.mxu0 %vm381_vm3, %v2471_v53 }
0x15f5   :  { %3824 = vmatprep.mubr.msk.bf16.mxu0 %vm4205_vm2, %v4204_v38 }
0x15f8   :  { %3807 = vmatmul.mubr.msk.bf16.vlgmr.msra.gmra.mxu1 %vm381_vm3, %v2420_v54 }
0x15f9   :  { %3818 = vmatprep.mubr.msk.bf16.mxu1 %vm4205_vm2, %v4204_v38 }
0x16ac   :  { %v4804_v52 = vpop.f32.mrf.mxu0 }
0x16ae   :  { %v3802_v55 = vpop.f32.mrf.mxu0 }
0x16b0   :  { %v4806_v57 = vpop.f32.mrf.mxu1  ;;  %v4808_v59 = vpop.f32.mrf.mxu0 }
0x16b1   :  { %v3934_v60 = vpack.i.bf16 %v4808_v59, %v4804_v52 }
0x16b2   :  { %v3796_v62 = vpop.f32.mrf.mxu1  ;;  %v3803_v1 = vpop.f32.mrf.mxu0 }
0x16b4   :  { %v4812_v2 = vpop.f32.mrf.mxu1  ;;  %v2514_v4 = vpop.f32.mrf.mxu0 }
0x16b5   :  { %v3929_v3 = vpack.i.bf16 %v4812_v2, %v4806_v57  ;;  %v2527_v63 = vsel %vm479_vm4, %v2514_v4, -inf }
0x16b6   :  { %v3797_v5 = vpop.f32.mrf.mxu1  ;;  %v3814_v48 = vpop.f32.mrf.mxu0 }
0x16b8   :  { %v2463_v6 = vpop.f32.mrf.mxu1  ;;  %v2517_v50 = vpop.f32.mrf.mxu0 }
0x16b9   :  { %v2521_v58 = vsel %vm479_vm4, %v2463_v6, -inf  ;;  %v2530_v14 = vsel %vm479_vm4, %v2517_v50, -inf }
0x16ba   :  { %2522 = vmax.xlane.f32.xlu0 %v2521_v58  ;;  %v3808_v7 = vpop.f32.mrf.mxu1  ;;  %v3815_v9 = vpop.f32.mrf.mxu0 }
0x16bc   :  { %v2466_v56 = vpop.f32.mrf.mxu1 }
0x16bd   :  { %v2524_v0 = vsel %vm479_vm4, %v2466_v56, -inf }
0x16be   :  { %2528 = vmax.xlane.f32.xlu0 %v2527_v63  ;;  %2525 = vmax.xlane.f32.xlu1 %v2524_v0  ;;  %v3809_v13 = vpop.f32.mrf.mxu1 }
0x16c2   :  { %2531 = vmax.xlane.f32.xlu0 %v2530_v14 }
0x16cf   :  { %2614 = vrot.lane.b32.xlu1 %v4700_v37, %s4213_s18 }
0x16d3   :  { %2663 = vrot.lane.b32.xlu1 %v4702_v41, %s4214_s19 }
0x1743   :  { %v2523_v8 = vpop.xlane.xlu0 %2522 }
0x1744   :  { %v2533_v10 = vsub.f32 %v2463_v6, %v2523_v8 }
0x1746   :  { %v2537_v39 = vmul.f32 1.442695, %v2533_v10 }
0x1747   :  { %v2529_v31 = vpop.xlane.xlu0 %2528  ;;  %v2526_v19 = vpop.xlane.xlu1 %2525 }
0x1748   :  { %v2535_v17 = vsub.f32 %v2514_v4, %v2529_v31  ;;  %v2534_v20 = vsub.f32 %v2466_v56, %v2526_v19 }
0x174a   :  { %v2541_v18 = vmul.f32 1.442695, %v2535_v17  ;;  %v2539_v12 = vmul.f32 1.442695, %v2534_v20 }
0x174b   :  { %v2532_v21 = vpop.xlane.xlu0 %2531  ;;  %v2615_v23 = vpop.permute.xlu1 %2614 }
0x174c   :  { %4125 = vpow2.f32 %v2541_v18  ;;  %v2536_v61 = vsub.f32 %v2517_v50, %v2532_v21  ;;  %3823 = vmatpush3.bf16.msra.mxu0 %v2615_v23 }
0x174d   :  { %3834 = vmatprep.subr.bf16.mxu0 %v4204_v38  ;;  %4127 = vpow2.f32 %v2537_v39 }
0x174e   :  { %v2543_v26 = vmul.f32 1.442695, %v2536_v61 }
0x174f   :  { %v2664_v34 = vpop.permute.xlu1 %2663 }
0x1750   :  { %4129 = vpow2.f32 %v2543_v26  ;;  %v2669_v58 = vsel %vm381_vm3, %v2664_v34, 0 }
0x1751   :  { %4131 = vpow2.f32 %v2539_v12 }
0x1759   :  { %v4126_v27 = vpop.eup %4125 }
0x175a   :  { %v2551_v11 = vsel %vm479_vm4, %v4126_v27, 0.0  ;;  %v4128_v15 = vpop.eup %4127 }
0x175b   :  { %2552 = vadd.xlane.f32.xlu0 %v2551_v11  ;;  %v2545_v29 = vsel %vm479_vm4, %v4128_v15, 0.0 }
0x175d   :  { %v4130_v28 = vpop.eup %4129 }
0x175e   :  { %v2554_v30 = vsel %vm479_vm4, %v4130_v28, 0.0  ;;  %v4132_v32 = vpop.eup %4131 }
0x175f   :  { %2546 = vadd.xlane.f32.xlu0 %v2545_v29  ;;  %2555 = vadd.xlane.f32.xlu1 %v2554_v30  ;;  %v2548_v33 = vsel %vm479_vm4, %v4132_v32, 0.0 }
0x1763   :  { %2549 = vadd.xlane.f32.xlu1 %v2548_v33 }
0x1774   :  { %2714 = vrot.lane.b32.xlu1 %v4700_v37, %s4214_s19 }
0x1775   :  { %2567 = vrot.lane.b32.xlu0 %v4702_v41, %s4213_s18 }
0x1778   :  { %2712 = vrot.lane.b32.xlu1 %v4700_v37, %s4215_s20 }
0x1779   :  { %2661 = vrot.lane.b32.xlu0 %v4702_v41, %s4215_s20 }
0x17e4   :  { %v2553_v35 = vpop.xlane.xlu0 %2552 }
0x17e5   :  { %4133 = vrcp.f32 %v2553_v35 }
0x17e8   :  { %v2547_v36 = vpop.xlane.xlu0 %2546  ;;  %v2556_v40 = vpop.xlane.xlu1 %2555 }
0x17e9   :  { %4135 = vrcp.f32 %v2556_v40 }
0x17ea   :  { %4137 = vrcp.f32 %v2547_v36 }
0x17ec   :  { %v2568_v42 = vpop.permute.xlu0 %2567  ;;  %v2550_v44 = vpop.xlane.xlu1 %2549 }
0x17ed   :  { %4139 = vrcp.f32 %v2550_v44  ;;  %3817 = vmatpush3.bf16.msra.mxu1 %v2568_v42 }
0x17ee   :  { %3828 = vmatprep.subr.bf16.mxu1 %v4204_v38 }
0x17f0   :  { %v2715_v62 = vpop.permute.xlu1 %2714  ;;  %v2662_v9 = vpop.permute.xlu0 %2661 }
0x17f1   :  { %v2720_v6 = vsel %vm381_vm3, %v2715_v62, 0 }
0x17f2   :  { %v4134_v47 = vpop.eup %4133 }
0x17f3   :  { %v2563_v54 = vmul.f32 %v4134_v47, %v4126_v27 }
0x17f4   :  { %v2713_v7 = vpop.permute.xlu1 %2712 }
0x17f6   :  { %v4136_v49 = vpop.eup %4135 }
0x17f7   :  { %v4138_v53 = vpop.eup %4137  ;;  %v2564_v55 = vmul.f32 %v4136_v49, %v4130_v28 }
0x17f8   :  { %v2561_v5 = vmul.f32 %v4138_v53, %v4128_v15 }
0x17f9   :  { %v2566_v4 = vpack.c.bf16 %v2564_v55, %v2563_v54 }
0x17fa   :  { %v4140_v1 = vpop.eup %4139 }
0x17fb   :  { %v2562_v48 = vmul.f32 %v4140_v1, %v4132_v32  ;;  %3825 = vmatmul.mubr.msk.bf16.vlgmr.msra.gmra.mxu0 %vm479_vm4, %v2566_v4 }
0x17fc   :  { %3835 = vmatpush3.bf16.xpose.msra.mxu0 %v2720_v6  ;;  %3836 = vmatprep.mubr.msk.bf16.mxu0 %vm4205_vm2, %v4204_v38 }
0x17fd   :  { %v2565_v50 = vpack.c.bf16 %v2562_v48, %v2561_v5  ;;  %3846 = vmatprep.subr.bf16.mxu0 %v4204_v38 }
0x17ff   :  { %3819 = vmatmul.mubr.msk.bf16.vlgmr.msra.gmra.mxu1 %vm479_vm4, %v2565_v50 }
0x1800   :  { %3829 = vmatpush3.bf16.xpose.msra.mxu1 %v2669_v58  ;;  %3830 = vmatprep.mubr.msk.bf16.mxu1 %vm4205_vm2, %v4204_v38 }
0x1801   :  { %3840 = vmatprep.subr.bf16.mxu1 %v4204_v38 }
0x1803   :  { %3837 = vmatmul.mubr.msk.bf16.vlgmr.msra.gmra.mxu0 %vm381_vm3, %v2713_v7 }
0x1804   :  { %3848 = vmatprep.mubr.msk.bf16.mxu0 %vm4205_vm2, %v4204_v38 }
0x1807   :  { %3831 = vmatmul.mubr.msk.bf16.vlgmr.msra.gmra.mxu1 %vm381_vm3, %v2662_v9 }
0x1808   :  { %3842 = vmatprep.mubr.msk.bf16.mxu1 %vm4205_vm2, %v4204_v38 }
0x18bb   :  { %v2654_v56 = vpop.f32.mrf.mxu0 }
0x18bd   :  { %v3826_v63 = vpop.f32.mrf.mxu0 }
0x18bf   :  { %v2607_v0 = vpop.f32.mrf.mxu1  ;;  %v2657_v13 = vpop.f32.mrf.mxu0 }
0x18c0   :  { %v3944_v14 = vpack.i.bf16 %v2657_v13, %v2654_v56  ;;  %v3990_v13 = vld [vmem:[%s5017_s2 + $0xc0] sm:$0xff]  }
0x18c1   :  { %v3820_v8 = vpop.f32.mrf.mxu1  ;;  %v3827_v10 = vpop.f32.mrf.mxu0 }
0x18c3   :  { %v2610_v31 = vpop.f32.mrf.mxu1  ;;  %v2756_v17 = vpop.f32.mrf.mxu0 }
0x18c4   :  { %v3939_v19 = vpack.i.bf16 %v2610_v31, %v2607_v0  ;;  %v2769_v26 = vsel %vm479_vm4, %v2756_v17, -inf  ;;  %v3989_v0 = vld [vmem:[%s5017_s2 + $0xc8] sm:$0xff]  }
0x18c5   :  { %v3821_v39 = vpop.f32.mrf.mxu1  ;;  %v3838_v18 = vpop.f32.mrf.mxu0 }
0x18c7   :  { %v2705_v20 = vpop.f32.mrf.mxu1  ;;  %v2759_v21 = vpop.f32.mrf.mxu0 }
0x18c8   :  { %v2763_v23 = vsel %vm479_vm4, %v2705_v20, -inf  ;;  %v2772_v15 = vsel %vm479_vm4, %v2759_v21, -inf }
0x18c9   :  { %2764 = vmax.xlane.f32.xlu0 %v2763_v23  ;;  %v3832_v61 = vpop.f32.mrf.mxu1  ;;  %v3839_v12 = vpop.f32.mrf.mxu0 }
0x18cb   :  { %v2708_v38 = vpop.f32.mrf.mxu1 }
0x18cc   :  { %v2766_v27 = vsel %vm479_vm4, %v2708_v38, -inf }
0x18cd   :  { %2770 = vmax.xlane.f32.xlu0 %v2769_v26  ;;  %2767 = vmax.xlane.f32.xlu1 %v2766_v27  ;;  %v3833_v11 = vpop.f32.mrf.mxu1 }
0x18d1   :  { %2773 = vmax.xlane.f32.xlu0 %v2772_v15 }
0x1952   :  { %v2765_v28 = vpop.xlane.xlu0 %2764 }
0x1953   :  { %v2775_v29 = vsub.f32 %v2705_v20, %v2765_v28 }
0x1955   :  { %v2779_v34 = vmul.f32 1.442695, %v2775_v29 }
0x1956   :  { %v2771_v30 = vpop.xlane.xlu0 %2770  ;;  %v2768_v32 = vpop.xlane.xlu1 %2767 }
0x1957   :  { %v2777_v33 = vsub.f32 %v2756_v17, %v2771_v30  ;;  %v2776_v36 = vsub.f32 %v2708_v38, %v2768_v32 }
0x1959   :  { %v2783_v35 = vmul.f32 1.442695, %v2777_v33  ;;  %v2781_v44 = vmul.f32 1.442695, %v2776_v36 }
0x195a   :  { %v2774_v40 = vpop.xlane.xlu0 %2773 }
0x195b   :  { %4141 = vpow2.f32 %v2783_v35  ;;  %v2778_v42 = vsub.f32 %v2759_v21, %v2774_v40 }
0x195c   :  { %4143 = vpow2.f32 %v2779_v34 }
0x195d   :  { %v2785_v47 = vmul.f32 1.442695, %v2778_v42 }
0x195f   :  { %4145 = vpow2.f32 %v2785_v47 }
0x1960   :  { %4147 = vpow2.f32 %v2781_v44 }
0x1968   :  { %v4142_v49 = vpop.eup %4141 }
0x1969   :  { %v2793_v53 = vsel %vm479_vm4, %v4142_v49, 0.0  ;;  %v4144_v54 = vpop.eup %4143 }
0x196a   :  { %2794 = vadd.xlane.f32.xlu0 %v2793_v53  ;;  %v2787_v62 = vsel %vm479_vm4, %v4144_v54, 0.0 }
0x196c   :  { %v4146_v55 = vpop.eup %4145 }
0x196d   :  { %v2796_v1 = vsel %vm479_vm4, %v4146_v55, 0.0  ;;  %v4148_v4 = vpop.eup %4147 }
0x196e   :  { %2788 = vadd.xlane.f32.xlu0 %v2787_v62  ;;  %2797 = vadd.xlane.f32.xlu1 %v2796_v1  ;;  %v2790_v5 = vsel %vm479_vm4, %v4148_v4, 0.0 }
0x1972   :  { %2791 = vadd.xlane.f32.xlu1 %v2790_v5 }
0x1983   :  { %2856 = vrot.lane.b32.xlu1 %v4700_v37, %s4216_s21 }
0x1984   :  { %2809 = vrot.lane.b32.xlu0 %v4702_v41, %s4216_s21 }
0x1987   :  { %3930 = vrot.lane.b32.xlu1 %v3929_v3, %s4217_s22 }
0x1988   :  { %3940 = vrot.lane.b32.xlu0 %v3939_v19, %s4218_s23 }
0x198b   :  { %3935 = vrot.lane.b32.xlu1 %v3934_v60, %s4217_s22 }
0x198f   :  { %3945 = vrot.lane.b32.xlu1 %v3944_v14, %s4218_s23 }
0x19f3   :  { %v2795_v48 = vpop.xlane.xlu0 %2794 }
0x19f4   :  { %4149 = vrcp.f32 %v2795_v48  ;;  %v3495_v48 = vld [vmem:[%s5018_s3 + $0xb] ss:$0 sm:$0xff] }
0x19f7   :  { %v2789_v37 = vpop.xlane.xlu0 %2788  ;;  %v2798_v6 = vpop.xlane.xlu1 %2797 }
0x19f8   :  { %4151 = vrcp.f32 %v2798_v6 }
0x19f9   :  { %4153 = vrcp.f32 %v2789_v37 }
0x19fb   :  { %v2810_v41 = vpop.permute.xlu0 %2809  ;;  %v2792_v50 = vpop.xlane.xlu1 %2791 }
0x19fc   :  { %4155 = vrcp.f32 %v2792_v50  ;;  %3841 = vmatpush3.bf16.msra.mxu1 %v2810_v41 }
0x19fd   :  { %3852 = vmatprep.subr.bf16.mxu1 %v3989_v0 }
0x19ff   :  { %v2857_v57 = vpop.permute.xlu1 %2856  ;;  %v3941_v27 = vpop.permute.xlu0 %3940 }
0x1a00   :  { %3847 = vmatpush3.bf16.msra.mxu0 %v2857_v57  ;;  %v3943_v36 = vunpack.i.h.bf16 %v3941_v27  ;;  %v3942_v40 = vunpack.i.l.bf16 %v3941_v27 }
0x1a01   :  { %v4150_v2 = vpop.eup %4149 }
0x1a02   :  { %v2805_v7 = vmul.f32 %v4150_v2, %v4142_v49 }
0x1a03   :  { %v3931_v23 = vpop.permute.xlu1 %3930 }
0x1a04   :  { %v3933_v38 = vunpack.i.h.bf16 %v3931_v23  ;;  %v3932_v26 = vunpack.i.l.bf16 %v3931_v23 }
0x1a05   :  { %v4152_v3 = vpop.eup %4151 }
0x1a06   :  { %v4154_v58 = vpop.eup %4153  ;;  %v2806_v52 = vmul.f32 %v4152_v3, %v4146_v55  ;;  %v2952_v34 = vsel %vm381_vm3, %v4764_v51, %v3933_v38  ;;  %v2951_v35 = vsel %vm381_vm3, %v4760_v45, %v3932_v26 }
0x1a07   :  { %v2803_v9 = vmul.f32 %v4154_v58, %v4144_v54  ;;  %v3936_v61 = vpop.permute.xlu1 %3935  ;;  %v2955_v45 = vsel %vm479_vm4, %v2951_v35, %v3942_v40  ;;  %v2956_v1 = vsel %vm479_vm4, %v2952_v34, %v3943_v36 }
0x1a08   :  { %v2808_v60 = vpack.c.bf16 %v2806_v52, %v2805_v7  ;;  %v3938_v11 = vunpack.i.h.bf16 %v3936_v61  ;;  %v3937_v15 = vunpack.i.l.bf16 %v3936_v61 }
0x1a09   :  { %v4156_v59 = vpop.eup %4155 }
0x1a0a   :  { %v2804_v56 = vmul.f32 %v4156_v59, %v4148_v4  ;;  %3849 = vmatmul.mubr.msk.bf16.vlgmr.msra.gmra.mxu0 %vm479_vm4, %v2808_v60  ;;  %v2954_v42 = vsel %vm381_vm3, %v4762_v46, %v3938_v11  ;;  %v2953_v44 = vsel %vm381_vm3, %v4758_v43, %v3937_v15 }
0x1a0b   :  { %v3946_v12 = vpop.permute.xlu1 %3945 }
0x1a0c   :  { %v2807_v63 = vpack.c.bf16 %v2804_v56, %v2803_v9  ;;  %v3948_v28 = vunpack.i.h.bf16 %v3946_v12  ;;  %v3947_v29 = vunpack.i.l.bf16 %v3946_v12 }
0x1a0e   :  { %3843 = vmatmul.mubr.msk.bf16.vlgmr.msra.gmra.mxu1 %vm479_vm4, %v2807_v63  ;;  %v2957_v49 = vsel %vm479_vm4, %v2953_v44, %v3947_v29  ;;  %v2958_v53 = vsel %vm479_vm4, %v2954_v42, %v3948_v28 }
0x1a0f   :  { %3853 = vmatpush3.bf16.msra.mxu1 %v3989_v0 }
0x1a10   :  { %3854 = vmatprep.subr.bf16.mxu1 %v3990_v13 }
0x1a13   :  { %3855 = vmatpush3.bf16.msra.mxu1 %v3990_v13 }
0x1aca   :  { %v2896_v14 = vpop.f32.mrf.mxu0 }
0x1acc   :  { %v3850_v8 = vpop.f32.mrf.mxu0 }
0x1ace   :  { %v2849_v10 = vpop.f32.mrf.mxu1  ;;  %v2899_v31 = vpop.f32.mrf.mxu0 }
0x1acf   :  { %v3954_v19 = vpack.i.bf16 %v2899_v31, %v2896_v14  ;;  %v3991_v31 = vld [vmem:[%s5017_s2 + $0xd8] sm:$0xff]  }
0x1ad0   :  { %v3844_v17 = vpop.f32.mrf.mxu1  ;;  %v3851_v39 = vpop.f32.mrf.mxu0  ;;  %3860 = vmatprep.subr.bf16.mxu0 %v3991_v31 }
0x1ad1   :  { %3955 = vrot.lane.b32.xlu1 %v3954_v19, %s4219_s25  ;;  %v3992_v19 = vld [vmem:[%s5017_s2 + $0xd0] sm:$0xff]   ;;  %3861 = vmatpush3.bf16.msra.mxu0 %v3991_v31 }
0x1ad2   :  { %v2852_v18 = vpop.f32.mrf.mxu1  ;;  %3862 = vmatprep.subr.bf16.mxu0 %v3992_v19 }
0x1ad3   :  { %v3949_v20 = vpack.i.bf16 %v2852_v18, %v2849_v10 }
0x1ad4   :  { %v3845_v21 = vpop.f32.mrf.mxu1 }
0x1ad5   :  { %3950 = vrot.lane.b32.xlu0 %v3949_v20, %s4219_s25  ;;  %3863 = vmatpush3.bf16.msra.mxu0 %v3992_v19 }
0x1b43   :  { %v3956_v30 = vpop.permute.xlu1 %3955 }
0x1b44   :  { %v3958_v32 = vunpack.i.h.bf16 %v3956_v30  ;;  %v3957_v33 = vunpack.i.l.bf16 %v3956_v30 }
0x1b46   :  { %v2961_v51 = vsel %vm1402_vm5, %v2957_v49, %v3957_v33  ;;  %v2962_v62 = vsel %vm1402_vm5, %v2958_v53, %v3958_v32 }
0x1b47   :  { %v3951_v47 = vpop.permute.xlu0 %3950  ;;  %v2964_v5 = vpack.c.bf16 %v2962_v62, %v2961_v51  ;;  %v3500_v62 = vld [vmem:[%s5018_s3 + $0xc] ss:$0 sm:$0xff] }
0x1b48   :  { %v3953_v54 = vunpack.i.h.bf16 %v3951_v47  ;;  %v3952_v55 = vunpack.i.l.bf16 %v3951_v47 }
0x1b4a   :  { %v2960_v46 = vsel %vm1402_vm5, %v2956_v1, %v3953_v54  ;;  %v2959_v4 = vsel %vm1402_vm5, %v2955_v45, %v3952_v55 }
0x1b4b   :  { %v2963_v43 = vpack.c.bf16 %v2960_v46, %v2959_v4 }
0x1b4d   :  { %3856 = vmatprep.mubr.msk.bf16.mxu1 %vm225_vm1, %v2963_v43 }
0x1b4e   :  { %3857 = vmatmul.mubr.msk.bf16.vlgmr.msra.gmra.mxu1 %vm225_vm1, %v2964_v5 }
0x1c0e   :  { %v3858_v37 = vpop.f32.mrf.mxu1 }
0x1c0f   :  { %v3030_v6 = vadd.f32 %v3858_v37, %v3495_v48  ;;  %v3501_v37 = vld [vmem:[%s5018_s3 + $0xd] ss:$0 sm:$0xff] }
0x1c10   :  { %v3021_v41 = vpop.f32.mrf.mxu1 }
0x1c11   :  { %v4908_v50 = vadd.f32 %v3030_v6, %v4645_v16  ;;  %v3022_v57 = vadd.f32 %v3495_v48, %v3021_v41 }
0x1c12   :  { %v3859_v2 = vpop.f32.mrf.mxu1 }
0x1c13   :  { %v4911_v3 = vadd.f32 %v3022_v57, %v4648_v25  ;;  %v3033_v58 = vadd.f32 %v3859_v2, %v3495_v48  ;;  %v3046_v7 = vsel %vm225_vm1, %v4908_v50, 0.0  ;;  %v3058_v14 = vmul.f32 %v4908_v50, %v4908_v50 }
0x1c14   :  { %3047 = vadd.xlane.f32.xlu0 %v3046_v7  ;;  %v3024_v52 = vpop.f32.mrf.mxu1 }
0x1c15   :  { %v3025_v59 = vadd.f32 %v3495_v48, %v3024_v52  ;;  %v4916_v60 = vadd.f32 %v3033_v58, %v4653_v22  ;;  %v3040_v16 = vsel %vm225_vm1, %v4911_v3, 0.0  ;;  %v3056_v22 = vmul.f32 %v4911_v3, %v4911_v3 }
0x1c16   :  { %v3066_v10 = vsel %vm225_vm1, %v3058_v14, 0.0  ;;  %v3996_v14 = vld [vmem:[%s5017_s2 + $0xe0] sm:$0xff]  }
0x1c17   :  { %v4919_v9 = vadd.f32 %v3025_v59, %v4656_v24  ;;  %v3049_v63 = vsel %vm225_vm1, %v4916_v60, 0.0  ;;  %v3059_v0 = vmul.f32 %v4916_v60, %v4916_v60  ;;  %v3060_v13 = vsel %vm225_vm1, %v3056_v22, 0.0 }
0x1c18   :  { %3041 = vadd.xlane.f32.xlu0 %v3040_v16 }
0x1c19   :  { %v3043_v25 = vsel %vm225_vm1, %v4919_v9, 0.0  ;;  %v3057_v56 = vmul.f32 %v4919_v9, %v4919_v9  ;;  %v3069_v8 = vsel %vm225_vm1, %v3059_v0, 0.0  ;;  %v3994_v0 = vld [vmem:[%s5017_s2 + $0xf0] sm:$0xff]  }
0x1c1a   :  { %3044 = vadd.xlane.f32.xlu1 %v3043_v25 }
0x1c1b   :  { %v3063_v24 = vsel %vm225_vm1, %v3057_v56, 0.0 }
0x1c1c   :  { %3050 = vadd.xlane.f32.xlu0 %v3049_v63 }
0x1c1e   :  { %3064 = vadd.xlane.f32.xlu1 %v3063_v24  ;;  %v3993_v24 = vld [vmem:[%s5017_s2 + $0xf8] sm:$0xff]  }
0x1c1f   :  { %3868 = vmatprep.subr.bf16.mxu1 %v3993_v24 }
0x1c20   :  { %3061 = vadd.xlane.f32.xlu0 %v3060_v13  ;;  %3869 = vmatpush3.bf16.msra.mxu1 %v3993_v24  ;;  %v3995_v13 = vld [vmem:[%s5017_s2 + $0xe8] sm:$0xff]  }
0x1c21   :  { %3870 = vmatprep.subr.bf16.mxu1 %v3994_v0 }
0x1c22   :  { %3070 = vadd.xlane.f32.xlu1 %v3069_v8  ;;  %v3502_v8 = vld [vmem:[%s5018_s3 + $0xe] ss:$0 sm:$0xff] }
0x1c24   :  { %3067 = vadd.xlane.f32.xlu0 %v3066_v10  ;;  %3871 = vmatpush3.bf16.msra.mxu1 %v3994_v0 }
0x1c25   :  { %3872 = vmatprep.subr.bf16.mxu1 %v3995_v13 }
0x1c28   :  { %3873 = vmatpush3.bf16.msra.mxu1 %v3995_v13 }
0x1c29   :  { %3874 = vmatprep.subr.bf16.mxu1 %v3996_v14 }
0x1c2c   :  { %3875 = vmatpush3.bf16.msra.mxu1 %v3996_v14 }
0x1c9d   :  { %v3048_v17 = vpop.xlane.xlu0 %3047 }
0x1c9e   :  { %v3054_v27 = vmul.f32 0.03125, %v3048_v17 }
0x1ca0   :  { %v3078_v36 = vmul.f32 %v3054_v27, %v3054_v27  ;;  %v3094_v6 = vsub.f32 %v4908_v50, %v3054_v27 }
0x1ca1   :  { %v3042_v39 = vpop.xlane.xlu0 %3041 }
0x1ca2   :  { %v3052_v23 = vmul.f32 0.03125, %v3042_v39 }
0x1ca3   :  { %v3045_v18 = vpop.xlane.xlu1 %3044 }
0x1ca4   :  { %v3053_v20 = vmul.f32 0.03125, %v3045_v18  ;;  %v3076_v15 = vmul.f32 %v3052_v23, %v3052_v23  ;;  %v3092_v45 = vsub.f32 %v4911_v3, %v3052_v23 }
0x1ca5   :  { %v3051_v21 = vpop.xlane.xlu0 %3050 }
0x1ca6   :  { %v3077_v12 = vmul.f32 %v3053_v20, %v3053_v20  ;;  %v3055_v38 = vmul.f32 0.03125, %v3051_v21  ;;  %v3093_v55 = vsub.f32 %v4919_v9, %v3053_v20 }
0x1ca7   :  { %v3065_v61 = vpop.xlane.xlu1 %3064 }
0x1ca8   :  { %v3073_v26 = vmul.f32 0.03125, %v3065_v61  ;;  %v3079_v32 = vmul.f32 %v3055_v38, %v3055_v38  ;;  %v3095_v4 = vsub.f32 %v4916_v60, %v3055_v38 }
0x1ca9   :  { %v3062_v11 = vpop.xlane.xlu0 %3061 }
0x1caa   :  { %v3081_v28 = vsub.f32 %v3073_v26, %v3077_v12  ;;  %v3072_v29 = vmul.f32 0.03125, %v3062_v11 }
0x1cab   :  { %v3071_v30 = vpop.xlane.xlu1 %3070 }
0x1cac   :  { %v3085_v33 = vadd.f32 1e-06, %v3081_v28  ;;  %v3080_v34 = vsub.f32 %v3072_v29, %v3076_v15  ;;  %v3075_v35 = vmul.f32 0.03125, %v3071_v30 }
0x1cad   :  { %v3068_v40 = vpop.xlane.xlu0 %3067 }
0x1cae   :  { %4157 = vrsqrt.f32 %v3085_v33  ;;  %v3084_v42 = vadd.f32 1e-06, %v3080_v34  ;;  %v3083_v44 = vsub.f32 %v3075_v35, %v3079_v32  ;;  %v3074_v47 = vmul.f32 0.03125, %v3068_v40 }
0x1cb0   :  { %4159 = vrsqrt.f32 %v3084_v42  ;;  %v3087_v49 = vadd.f32 1e-06, %v3083_v44  ;;  %v3082_v53 = vsub.f32 %v3074_v47, %v3078_v36 }
0x1cb2   :  { %4161 = vrsqrt.f32 %v3087_v49  ;;  %v3086_v54 = vadd.f32 1e-06, %v3082_v53 }
0x1cb4   :  { %4163 = vrsqrt.f32 %v3086_v54 }
0x1cbb   :  { %v4158_v51 = vpop.eup %4157 }
0x1cbc   :  { %v3097_v1 = vmul.f32 %v4158_v51, %v3093_v55 }
0x1cbd   :  { %v4160_v46 = vpop.eup %4159 }
0x1cbe   :  { %v3096_v43 = vmul.f32 %v4160_v46, %v3092_v45  ;;  %v3105_v5 = vmul.f32 %v3500_v62, %v3097_v1 }
0x1cbf   :  { %v4162_v48 = vpop.eup %4161 }
0x1cc0   :  { %v3099_v41 = vmul.f32 %v4162_v48, %v3095_v4  ;;  %v3104_v57 = vmul.f32 %v3500_v62, %v3096_v43  ;;  %v3113_v52 = vadd.f32 %v3501_v37, %v3105_v5 }
0x1cc1   :  { %v4164_v2 = vpop.eup %4163 }
0x1cc2   :  { %v3098_v58 = vmul.f32 %v4164_v2, %v3094_v6  ;;  %v3112_v7 = vadd.f32 %v3501_v37, %v3104_v57  ;;  %v3107_v59 = vmul.f32 %v3500_v62, %v3099_v41 }
0x1cc4   :  { %v3116_v16 = vpack.c.bf16 %v3113_v52, %v3112_v7  ;;  %v3106_v25 = vmul.f32 %v3500_v62, %v3098_v58  ;;  %v3115_v63 = vadd.f32 %v3501_v37, %v3107_v59  ;;  %v3507_v58 = vld [vmem:[%s5018_s3 + $0xf] ss:$0 sm:$0xff] }
0x1cc6   :  { %3864 = vmatprep.mubr.msk.bf16.mxu0 %vm225_vm1, %v3116_v16  ;;  %v3114_v56 = vadd.f32 %v3501_v37, %v3106_v25 }
0x1cc8   :  { %v3117_v22 = vpack.c.bf16 %v3115_v63, %v3114_v56 }
0x1cca   :  { %3865 = vmatmul.mubr.msk.bf16.vlgmr.msra.gmra.mxu0 %vm225_vm1, %v3117_v22 }
0x1d8a   :  { %v3866_v10 = vpop.f32.mrf.mxu0 }
0x1d8b   :  { %v3183_v31 = vadd.f32 %v3866_v10, %v3502_v8 }
0x1d8c   :  { %v3174_v19 = vpop.f32.mrf.mxu0 }
0x1d8d   :  { %v3195_v17 = vmul.f32 0.044715, %v3183_v31  ;;  %v3175_v39 = vadd.f32 %v3502_v8, %v3174_v19  ;;  %v3191_v5 = vmul.f32 0.5, %v3183_v31 }
0x1d8e   :  { %v3867_v18 = vpop.f32.mrf.mxu0 }
0x1d8f   :  { %v3199_v20 = vmul.f32 %v3195_v17, %v3183_v31  ;;  %v3193_v21 = vmul.f32 0.044715, %v3175_v39  ;;  %v3186_v23 = vadd.f32 %v3867_v18, %v3502_v8  ;;  %v3189_v46 = vmul.f32 0.5, %v3175_v39 }
0x1d90   :  { %v3177_v61 = vpop.f32.mrf.mxu0 }
0x1d91   :  { %v3203_v12 = vmul.f32 %v3199_v20, %v3183_v31  ;;  %v3197_v38 = vmul.f32 %v3193_v21, %v3175_v39  ;;  %v3196_v26 = vmul.f32 0.044715, %v3186_v23  ;;  %v3178_v27 = vadd.f32 %v3502_v8, %v3177_v61 }
0x1d92   :  { %v3192_v45 = vmul.f32 0.5, %v3186_v23 }
0x1d93   :  { %v3207_v11 = vadd.f32 %v3203_v12, %v3183_v31  ;;  %v3201_v15 = vmul.f32 %v3197_v38, %v3175_v39  ;;  %v3200_v28 = vmul.f32 %v3196_v26, %v3186_v23  ;;  %v3194_v29 = vmul.f32 0.044715, %v3178_v27 }
0x1d94   :  { %v3190_v4 = vmul.f32 0.5, %v3178_v27 }
0x1d95   :  { %v3211_v30 = vmul.f32 0.7978845, %v3207_v11  ;;  %v3205_v32 = vadd.f32 %v3201_v15, %v3175_v39  ;;  %v3204_v33 = vmul.f32 %v3200_v28, %v3186_v23  ;;  %v3198_v34 = vmul.f32 %v3194_v29, %v3178_v27 }
0x1d97   :  { %v3209_v35 = vmul.f32 0.7978845, %v3205_v32  ;;  %v3208_v36 = vadd.f32 %v3204_v33, %v3186_v23  ;;  %v3202_v40 = vmul.f32 %v3198_v34, %v3178_v27  ;;  %4165 = vtanh.f32 %v3211_v30 }
0x1d99   :  { %v3212_v42 = vmul.f32 0.7978845, %v3208_v36  ;;  %4167 = vtanh.f32 %v3209_v35  ;;  %v3206_v44 = vadd.f32 %v3202_v40, %v3178_v27 }
0x1d9b   :  { %4169 = vtanh.f32 %v3212_v42  ;;  %v3210_v47 = vmul.f32 0.7978845, %v3206_v44 }
0x1d9d   :  { %4171 = vtanh.f32 %v3210_v47 }
0x1da4   :  { %v4166_v49 = vpop.eup %4165 }
0x1da5   :  { %v3219_v1 = vadd.f32 1.0, %v4166_v49 }
0x1da6   :  { %v4168_v53 = vpop.eup %4167 }
0x1da7   :  { %v3217_v51 = vadd.f32 1.0, %v4168_v53  ;;  %v3223_v41 = vmul.f32 %v3219_v1, %v3191_v5  ;;  %v3515_v5 = vld [vmem:[%s5018_s3 + $0x11] ss:$0 sm:$0xff] }
0x1da8   :  { %v4170_v54 = vpop.eup %4169 }
0x1da9   :  { %v3220_v55 = vadd.f32 1.0, %v4170_v54  ;;  %v3221_v37 = vmul.f32 %v3217_v51, %v3189_v46 }
0x1daa   :  { %v4172_v62 = vpop.eup %4171 }
0x1dab   :  { %v3218_v43 = vadd.f32 1.0, %v4172_v62  ;;  %v3224_v48 = vmul.f32 %v3220_v55, %v3192_v45 }
0x1dad   :  { %v3222_v6 = vmul.f32 %v3218_v43, %v3190_v4  ;;  %v3226_v2 = vpack.c.bf16 %v3224_v48, %v3223_v41  ;;  %v3514_v4 = vld [vmem:[%s5018_s3 + $0x10] ss:$0 sm:$0xff]  ;;  %s4220_s3 = smov [#allocation2]  }
0x1dae   :  { %s3401_s13 = sshll.u32 %s4220_s3, 4  ;;  %s3402_s13 = int_to_ptr.vmem [resolvable:$true] %s3401_s13 }
0x1daf   :  { %v3225_v57 = vpack.c.bf16 %v3222_v6, %v3221_v37  ;;  %s4181_s14 = scalar_lea.vmem %s3402_s13, 512  ;;  %p4186_p1 = scmp.lt.s32.totalorder %s3402_s13, %s3402_s13 }
0x1db0   :  { %p4182_p0 = scmp.ne.s32.totalorder %s3402_s13, %s4181_s14  ;;  %p4187_p2 = scmp.lt.s32.totalorder %s4181_s14, %s4181_s14 }
0x1db1   :  { %3876 = vmatprep.mubr.msk.bf16.mxu1 %vm141_vm0, %v3225_v57 }
0x1db2   :  { %3877 = vmatmul.mubr.msk.bf16.vlgmr.msra.gmra.mxu1 %vm141_vm0, %v3226_v2  ;;  %p4188_p3 = por %p4187_p2, %p4186_p1 }
0x1db4   :  { %p4189_p4 = pnand %p4188_p3, %p4182_p0 }
0x1e72   :  { %v3878_v7 = vpop.f32.mrf.mxu1 }
0x1e73   :  { %v3304_v52 = vadd.f32 %v3878_v7, %v3507_v58 }
0x1e74   :  { %v3295_v59 = vpop.f32.mrf.mxu1 }
0x1e75   :  { %v4978_v16 = vadd.f32 %v3304_v52, %v4908_v50  ;;  %v3296_v25 = vadd.f32 %v3507_v58, %v3295_v59 }
0x1e76   :  { %v3879_v56 = vpop.f32.mrf.mxu1 }
0x1e77   :  { %v3310_v63 = vadd.f32 %v3296_v25, %v4911_v3  ;;  %v3307_v22 = vadd.f32 %v3879_v56, %v3507_v58  ;;  %v3322_v24 = vsel %vm225_vm1, %v4978_v16, 0.0 }
0x1e78   :  { %3323 = vadd.xlane.f32.xlu0 %v3322_v24  ;;  %v3298_v0 = vpop.f32.mrf.mxu1 }
0x1e79   :  { %v4984_v13 = vadd.f32 %v3307_v22, %v4916_v60  ;;  %v3299_v14 = vadd.f32 %v3507_v58, %v3298_v0  ;;  %v3316_v10 = vsel %vm225_vm1, %v3310_v63, 0.0  ;;  %v3332_v31 = vmul.f32 %v3310_v63, %v3310_v63 }
0x1e7a   :  { %v3334_v60 = vmul.f32 %v4978_v16, %v4978_v16 }
0x1e7b   :  { %v3311_v8 = vadd.f32 %v3299_v14, %v4919_v9  ;;  %v3325_v50 = vsel %vm225_vm1, %v4984_v13, 0.0  ;;  %v3336_v19 = vsel %vm225_vm1, %v3332_v31, 0.0  ;;  %v3335_v18 = vmul.f32 %v4984_v13, %v4984_v13 }
0x1e7c   :  { %3326 = vadd.xlane.f32.xlu1 %v3325_v50  ;;  %3317 = vadd.xlane.f32.xlu0 %v3316_v10  ;;  %v3342_v39 = vsel %vm225_vm1, %v3334_v60, 0.0 }
0x1e7d   :  { %v3319_v3 = vsel %vm225_vm1, %v3311_v8, 0.0  ;;  %v3333_v17 = vmul.f32 %v3311_v8, %v3311_v8  ;;  %v3345_v20 = vsel %vm225_vm1, %v3335_v18, 0.0 }
0x1e7f   :  { %v3339_v9 = vsel %vm225_vm1, %v3333_v17, 0.0 }
0x1e80   :  { %3320 = vadd.xlane.f32.xlu1 %v3319_v3  ;;  %3337 = vadd.xlane.f32.xlu0 %v3336_v19 }
0x1e84   :  { %3340 = vadd.xlane.f32.xlu1 %v3339_v9  ;;  %3343 = vadd.xlane.f32.xlu0 %v3342_v39 }
0x1e88   :  { %3346 = vadd.xlane.f32.xlu1 %v3345_v20 }
0x1f01   :  { %v3324_v21 = vpop.xlane.xlu0 %3323 }
0x1f02   :  { %v3330_v38 = vmul.f32 0.03125, %v3324_v21 }
0x1f04   :  { %v3354_v30 = vmul.f32 %v3330_v38, %v3330_v38  ;;  %v3370_v41 = vsub.f32 %v4978_v16, %v3330_v38 }
0x1f05   :  { %v3327_v23 = vpop.xlane.xlu1 %3326  ;;  %v3318_v61 = vpop.xlane.xlu0 %3317 }
0x1f06   :  { %v3328_v12 = vmul.f32 0.03125, %v3318_v61  ;;  %v3331_v32 = vmul.f32 0.03125, %v3327_v23 }
0x1f08   :  { %v3352_v11 = vmul.f32 %v3328_v12, %v3328_v12  ;;  %v3355_v53 = vmul.f32 %v3331_v32, %v3331_v32  ;;  %v3368_v1 = vsub.f32 %v3310_v63, %v3328_v12  ;;  %v3371_v52 = vsub.f32 %v4984_v13, %v3331_v32 }
0x1f09   :  { %v3321_v26 = vpop.xlane.xlu1 %3320  ;;  %v3338_v27 = vpop.xlane.xlu0 %3337 }
0x1f0a   :  { %v3329_v15 = vmul.f32 0.03125, %v3321_v26  ;;  %v3348_v28 = vmul.f32 0.03125, %v3338_v27 }
0x1f0c   :  { %v3356_v29 = vsub.f32 %v3348_v28, %v3352_v11  ;;  %v3353_v35 = vmul.f32 %v3329_v15, %v3329_v15  ;;  %v3369_v48 = vsub.f32 %v3311_v8, %v3329_v15 }
0x1f0d   :  { %v3341_v33 = vpop.xlane.xlu1 %3340  ;;  %v3344_v34 = vpop.xlane.xlu0 %3343 }
0x1f0e   :  { %v3360_v36 = vadd.f32 1e-06, %v3356_v29  ;;  %v3349_v40 = vmul.f32 0.03125, %v3341_v33  ;;  %v3350_v42 = vmul.f32 0.03125, %v3344_v34 }
0x1f10   :  { %4173 = vrsqrt.f32 %v3360_v36  ;;  %v3357_v44 = vsub.f32 %v3349_v40, %v3353_v35  ;;  %v3358_v47 = vsub.f32 %v3350_v42, %v3354_v30 }
0x1f11   :  { %v3347_v49 = vpop.xlane.xlu1 %3346 }
0x1f12   :  { %v3361_v54 = vadd.f32 1e-06, %v3357_v44  ;;  %v3362_v55 = vadd.f32 1e-06, %v3358_v47  ;;  %v3351_v51 = vmul.f32 0.03125, %v3347_v49 }
0x1f14   :  { %4175 = vrsqrt.f32 %v3361_v54  ;;  %v3359_v62 = vsub.f32 %v3351_v51, %v3355_v53 }
0x1f15   :  { %4177 = vrsqrt.f32 %v3362_v55 }
0x1f16   :  { %v3363_v45 = vadd.f32 1e-06, %v3359_v62 }
0x1f18   :  { %4179 = vrsqrt.f32 %v3363_v45 }
0x1f1d   :  { %v4174_v46 = vpop.eup %4173 }
0x1f1e   :  { %v3372_v43 = vmul.f32 %v4174_v46, %v3368_v1 }
0x1f20   :  { %v3380_v37 = vmul.f32 %v3514_v4, %v3372_v43 }
0x1f21   :  { %v4176_v6 = vpop.eup %4175 }
0x1f22   :  { %v4178_v57 = vpop.eup %4177  ;;  %v3373_v2 = vmul.f32 %v4176_v6, %v3369_v48  ;;  %v3388_v58 = vadd.f32 %v3515_v5, %v3380_v37 }
0x1f23   :  { %v3374_v7 = vmul.f32 %v4178_v57, %v3370_v41 }
0x1f24   :  { %v3381_v59 = vmul.f32 %v3514_v4, %v3373_v2  ;;  %3392 = vst.msk [vmem:[#allocation2] sm:$0xff] %vm225_vm1, %v3388_v58 }
0x1f25   :  { %v4180_v25 = vpop.eup %4179  ;;  %v3382_v56 = vmul.f32 %v3514_v4, %v3374_v7 }
0x1f26   :  { %v3375_v63 = vmul.f32 %v4180_v25, %v3371_v52  ;;  %v3389_v22 = vadd.f32 %v3515_v5, %v3381_v59 }
0x1f27   :  { %v3390_v24 = vadd.f32 %v3515_v5, %v3382_v56 }
0x1f28   :  { %v3383_v0 = vmul.f32 %v3514_v4, %v3375_v63  ;;  %3393 = vst.msk [vmem:[#allocation2 + $0x8] sm:$0xff] %vm225_vm1, %v3389_v22 }
0x1f29   :  { %3394 = vst.msk [vmem:[#allocation2 + $0x10] sm:$0xff] %vm225_vm1, %v3390_v24 }
0x1f2a   :  { %v3391_v16 = vadd.f32 %v3515_v5, %v3383_v0 }
0x1f2c   :  { %3395 = vst.msk [vmem:[#allocation2 + $0x18] sm:$0xff] %vm225_vm1, %v3391_v16 }
0x1f2d   :  { %4192 = shalt.err (!%p4189_p4)
}
0x1f2e   :  { %s4221_s15 = smov 128  }
0x1f2f   :  { %3407 = dma.vmem_to_hbm [thread:$0]  %s3402_s13, 512, %s5019_s4, [#allocation3], %s4221_s15, %s4221_s15, %s4217_s22  }
0x1f30   :  { %4201 = dma.done.wait [#allocation3], 512  }
0x1f31   :  { %4202 = vsyncadd [#allocation3], 4294966784 }
0x1f32   :  { %3411 = vsyncpa [#allocation3], 1 }

</bundles_post_ra>
